<compile_context>
chip_gen: v6e
topology: v6e:2x2x1
jax: 0.10.0
libtpu: 0.0.40
codegen_flags: <defaults>
</compile_context>

<pallas_src>
import math
import functools

import jax
import jax.numpy as jnp
from jax.experimental import pallas as pl
from jax.experimental.pallas import tpu as pltpu


# ----------------------------------------------------------------------------
# helpers
# ----------------------------------------------------------------------------
def _silu(v):
    return v * jax.nn.sigmoid(v)


def _round_up(v, m):
    return ((v + m - 1) // m) * m


# ----------------------------------------------------------------------------
# fused EGNNScore kernel
# ----------------------------------------------------------------------------
def _egnn_fused_kernel(
    # inputs (all whole-array resident in VMEM)
    row_sub_ref, col_sub_ref, row_lan_ref, batch_sub_ref, batch_lan_ref,
    x_in_ref, h0_ref,
    emb_w_ref, emb_b_ref, out_w_ref, out_b_ref,
    e_w1_ref, e_b1_ref, e_w2_ref, e_b2_ref,
    n_w1_ref, n_b1_ref, n_w2_ref, n_b2_ref,
    c_w1_ref, c_b1_ref, c_w2_ref, c_b2_ref, c_w3_ref,
    # output
    out_ref,
    # VMEM scratch
    h_sc, x_sc, x0_sc, agg_sc, xagg_sc,
    *, n_layers, n_tiles, tile_e, n_pad, hidden_nf, out_nf, num_graphs,
    coords_range, norm_constant, normalization_factor,
):
    f32 = jnp.float32
    H = hidden_nf
    inv_nf = 1.0 / normalization_factor

    def center(xv):
        # TODO(synk): center_zero was not provided in the source file; assumed
        # standard per-graph mean centering (scatter-mean over `batch`, subtract).
        # Per-graph one-hots are built on the fly (no [G,N] matrix in HBM).
        oh_ng = (batch_sub_ref[...] ==
                 jax.lax.broadcasted_iota(jnp.int32, (n_pad, num_graphs), 1)
                 ).astype(f32)                                              # [N,G]
        oh_gn = (batch_lan_ref[...] ==
                 jax.lax.broadcasted_iota(jnp.int32, (num_graphs, n_pad), 0)
                 ).astype(f32)                                              # [G,N]
        sums = jnp.dot(oh_gn, xv, preferred_element_type=f32)               # [G,3]
        counts = jnp.dot(oh_gn, jnp.ones((n_pad, 1), f32),
                         preferred_element_type=f32)                        # [G,1]
        mean = sums / counts
        return xv - jnp.dot(oh_ng, mean, preferred_element_type=f32)

    def edge_phase(blk, is_coord):
        """One sweep over edge tiles; accumulates per-node segment sums in VMEM."""
        h_nodes = h_sc[...]
        x_cur = x_sc[...]
        x0 = x0_sc[...]
        if is_coord:   # EquivariantUpdate.coord_mlp (tanh head, scatters [TE,3])
            w1 = c_w1_ref[blk]; b1 = c_b1_ref[blk]
            w2 = c_w2_ref[blk]; b2 = c_b2_ref[blk]
            w3 = c_w3_ref[blk]
            acc = xagg_sc
        else:          # GCL.edge_mlp (scatters [TE,H])
            w1 = e_w1_ref[blk]; b1 = e_b1_ref[blk]
            w2 = e_w2_ref[blk]; b2 = e_b2_ref[blk]
            w3 = None
            acc = agg_sc

        # Hoist node-side projections of W1 out of the per-edge loop:
        #   [h_row | h_col | attr] @ W1
        #     == gather(h @ W1[:H]) + gather(h @ W1[H:2H]) + rad*W1[2H] + rad0*W1[2H+1]
        p_r = jnp.dot(h_nodes, w1[0:H, :], preferred_element_type=f32)       # [N,H]
        p_c = jnp.dot(h_nodes, w1[H:2 * H, :], preferred_element_type=f32)   # [N,H]
        w1_rad = w1[2 * H:2 * H + 1, :]                                      # [1,H]
        w1_rad0 = w1[2 * H + 1:2 * H + 2, :]                                 # [1,H]
        ones3 = jnp.ones((3, 1), f32)

        acc[...] = jnp.zeros_like(acc)

        def tile_body(tidx, carry):
            e0 = pl.multiple_of(tidx * tile_e, 8)
            r_sub = row_sub_ref[pl.ds(e0, tile_e), :]                        # [TE,1]
            c_sub = col_sub_ref[pl.ds(e0, tile_e), :]                        # [TE,1]
            niota = jax.lax.broadcasted_iota(jnp.int32, (tile_e, n_pad), 1)
            oh_r = (r_sub == niota).astype(f32)                              # gather(row)
            oh_c = (c_sub == niota).astype(f32)                              # gather(col)

            # coord2diff on current and original coordinates (padded edges -> 0 rows)
            oh_d = oh_r - oh_c
            diff = jnp.dot(oh_d, x_cur, preferred_element_type=f32)          # [TE,3]
            diff0 = jnp.dot(oh_d, x0, preferred_element_type=f32)            # [TE,3]
            rad = jnp.dot(diff * diff, ones3, preferred_element_type=f32)    # [TE,1]
            rad0 = jnp.dot(diff0 * diff0, ones3, preferred_element_type=f32) # [TE,1]

            # first MLP layer (split-weight form), then second layer
            pre1 = (jnp.dot(oh_r, p_r, preferred_element_type=f32)
                    + jnp.dot(oh_c, p_c, preferred_element_type=f32)
                    + rad * w1_rad + rad0 * w1_rad0 + b1)
            a1 = _silu(pre1)
            a2 = jnp.dot(a1, w2, preferred_element_type=f32) + b2
            if is_coord:
                a2 = _silu(a2)
                s = jnp.tanh(jnp.dot(a2, w3, preferred_element_type=f32))    # [TE,1]
                coord_diff = diff / (jnp.sqrt(rad + 1e-08) + norm_constant)
                vals = coord_diff * s * coords_range                         # [TE,3]
            else:
                vals = _silu(a2)                                             # [TE,H]

            # unsorted_segment_sum over `row`: lane-oriented one-hot, no transposes.
            r_lan = row_lan_ref[pl.ds(tidx, 1), :]                           # [1,TE]
            siota = jax.lax.broadcasted_iota(jnp.int32, (n_pad, tile_e), 0)
            oh_s = (r_lan == siota).astype(f32)                              # [N,TE]
            acc[...] += jnp.dot(oh_s, vals, preferred_element_type=f32)
            return carry

        jax.lax.fori_loop(0, n_tiles, tile_body, 0)

    # ---- boundary: center coordinates, embed node features ---------------------
    x0c = center(x_in_ref[...])
    x0_sc[...] = x0c
    x_sc[...] = x0c
    h_sc[...] = (jnp.dot(h0_ref[...], emb_w_ref[...], preferred_element_type=f32)
                 + emb_b_ref[...])

    # ---- n_layers EquivariantBlocks (inv_sublayers = 1) -------------------------
    for blk in range(n_layers):
        # GCL: edge model + segment sum + node model (residual)
        edge_phase(blk, is_coord=False)
        agg = agg_sc[...] * inv_nf
        h_cur = h_sc[...]
        nw1 = n_w1_ref[blk]
        pre = (jnp.dot(h_cur, nw1[0:H, :], preferred_element_type=f32)
               + jnp.dot(agg, nw1[H:2 * H, :], preferred_element_type=f32)
               + n_b1_ref[blk])
        nh1 = _silu(pre)
        h_sc[...] = (h_cur
                     + jnp.dot(nh1, n_w2_ref[blk], preferred_element_type=f32)
                     + n_b2_ref[blk])

        # EquivariantUpdate: coord MLP + segment sum + coordinate update
        edge_phase(blk, is_coord=True)
        x_sc[...] = x_sc[...] + xagg_sc[...] * inv_nf

    # ---- output head ------------------------------------------------------------
    h_out = (jnp.dot(h_sc[...], out_w_ref[...], preferred_element_type=f32)
             + out_b_ref[...])
    x_out = center(x_sc[...]) - x0_sc[...]

    # Assemble [x_out | h_out] with constant selector matmuls (avoids a lane concat).
    ow = 3 + out_nf
    sel_x = (jax.lax.broadcasted_iota(jnp.int32, (3, ow), 1)
             == jax.lax.broadcasted_iota(jnp.int32, (3, ow), 0)).astype(f32)
    sel_h = (jax.lax.broadcasted_iota(jnp.int32, (out_nf, ow), 1)
             == (jax.lax.broadcasted_iota(jnp.int32, (out_nf, ow), 0) + 3)).astype(f32)
    out_ref[...] = (jnp.dot(x_out, sel_x, preferred_element_type=f32)
                    + jnp.dot(h_out, sel_h, preferred_element_type=f32))


# ----------------------------------------------------------------------------
# wrapper: padding + one pallas_call
# ----------------------------------------------------------------------------
def egnn_score_forward(params, z_t, t, edge_index, batch, num_graphs,
                       coords_range=15.0, norm_constant=1.0,
                       normalization_factor=1.0, edge_tile=512):
    n_nodes = z_t.shape[0]
    n_edges = edge_index.shape[1]
    hidden_nf = params["emb_w"].shape[1]
    in_nf = params["emb_w"].shape[0]
    out_nf = params["out_w"].shape[1]
    n_layers = params["e_w1"].shape[0]

    n_pad = _round_up(n_nodes, 8)
    tile_e = min(edge_tile, _round_up(n_edges, 8))
    e_pad = _round_up(n_edges, tile_e)
    n_tiles = e_pad // tile_e

    row = edge_index[0].astype(jnp.int32)
    col = edge_index[1].astype(jnp.int32)
    # padded edges use sentinel index n_pad -> all-zero one-hot rows (no contribution)
    row_p = jnp.full((e_pad,), n_pad, dtype=jnp.int32).at[:n_edges].set(row)
    col_p = jnp.full((e_pad,), n_pad, dtype=jnp.int32).at[:n_edges].set(col)
    row_sub = row_p[:, None]                     # [E,1]  (row on sublanes, gather)
    col_sub = col_p[:, None]                     # [E,1]
    row_lan = row_p.reshape(n_tiles, tile_e)     # [tiles,TE] (row on lanes, scatter)
    batch_p = (jnp.full((n_pad,), num_graphs, dtype=jnp.int32)
               .at[:n_nodes].set(batch.astype(jnp.int32)))
    batch_sub = batch_p[:, None]                 # [N,1]
    batch_lan = batch_p[None, :]                 # [1,N]

    x_in = jnp.zeros((n_pad, 3), jnp.float32).at[:n_nodes].set(z_t[:, 0:3])
    h0 = jnp.zeros((n_pad, in_nf), jnp.float32).at[:n_nodes].set(
        jnp.concatenate([z_t[:, 3:], t[:, None]], axis=1))

    kernel = functools.partial(
        _egnn_fused_kernel,
        n_layers=int(n_layers), n_tiles=n_tiles, tile_e=tile_e, n_pad=n_pad,
        hidden_nf=hidden_nf, out_nf=out_nf, num_graphs=int(num_graphs),
        coords_range=float(coords_range), norm_constant=float(norm_constant),
        normalization_factor=float(normalization_factor))

    vmem = pl.BlockSpec(memory_space=pltpu.MemorySpace.VMEM)
    out_pad = pl.pallas_call(
        kernel,
        out_shape=jax.ShapeDtypeStruct((n_pad, 3 + out_nf), jnp.float32),
        in_specs=[vmem] * 24,
        out_specs=vmem,
        scratch_shapes=[
            pltpu.VMEM((n_pad, hidden_nf), jnp.float32),  # h
            pltpu.VMEM((n_pad, 3), jnp.float32),          # x (current)
            pltpu.VMEM((n_pad, 3), jnp.float32),          # x0 (centered input)
            pltpu.VMEM((n_pad, hidden_nf), jnp.float32),  # edge-feature segment sum
            pltpu.VMEM((n_pad, 3), jnp.float32),          # coord-trans segment sum
        ],
        # Footprint is ~node-sized + weights (<1 MiB here); 32 MiB scoped limit is
        # safe on every generation incl. v7x's 64 MiB physical VMEM.
        compiler_params=pltpu.CompilerParams(vmem_limit_bytes=32 * 1024 * 1024),
    )(row_sub, col_sub, row_lan, batch_sub, batch_lan, x_in, h0,
      params["emb_w"], params["emb_b"], params["out_w"], params["out_b"],
      params["e_w1"], params["e_b1"], params["e_w2"], params["e_b2"],
      params["n_w1"], params["n_b1"], params["n_w2"], params["n_b2"],
      params["c_w1"], params["c_b1"], params["c_w2"], params["c_b2"],
      params["c_w3"])
    # TODO(synk): the on-the-fly one-hot gather/scatter is O(N) work per edge tile;
    # for very large node counts a DMA-gather path would be needed instead.
    return out_pad[:n_nodes]


# ----------------------------------------------------------------------------
# Parameter init (deterministic; weights stored as [fan_in, fan_out], per-block
# tensors stacked on a leading layer axis)
# ----------------------------------------------------------------------------
def _init_linear(key, fan_in, fan_out):
    k1, k2 = jax.random.split(key)
    bound = 1.0 / math.sqrt(fan_in)
    w = jax.random.uniform(k1, (fan_in, fan_out), jnp.float32, -bound, bound)
    b = jax.random.uniform(k2, (1, fan_out), jnp.float32, -bound, bound)
    return w, b


def init_params(key, in_node_nf, hidden_nf, out_node_nf, n_layers):
    keys = jax.random.split(key, 2 + n_layers)
    p = {}
    p["emb_w"], p["emb_b"] = _init_linear(keys[0], in_node_nf, hidden_nf)
    p["out_w"], p["out_b"] = _init_linear(keys[1], hidden_nf, out_node_nf)
    names = ["e_w1", "e_b1", "e_w2", "e_b2", "n_w1", "n_b1", "n_w2", "n_b2",
             "c_w1", "c_b1", "c_w2", "c_b2", "c_w3"]
    per = {k: [] for k in names}
    input_edge = 2 * hidden_nf + 2  # edge_feat_nf = 2
    for i in range(n_layers):
        bk = jax.random.split(keys[2 + i], 7)
        w, b = _init_linear(bk[0], input_edge, hidden_nf); per["e_w1"].append(w); per["e_b1"].append(b)
        w, b = _init_linear(bk[1], hidden_nf, hidden_nf);  per["e_w2"].append(w); per["e_b2"].append(b)
        w, b = _init_linear(bk[2], 2 * hidden_nf, hidden_nf); per["n_w1"].append(w); per["n_b1"].append(b)
        w, b = _init_linear(bk[3], hidden_nf, hidden_nf);  per["n_w2"].append(w); per["n_b2"].append(b)
        w, b = _init_linear(bk[4], input_edge, hidden_nf); per["c_w1"].append(w); per["c_b1"].append(b)
        w, b = _init_linear(bk[5], hidden_nf, hidden_nf);  per["c_w2"].append(w); per["c_b2"].append(b)
        xav = 0.001 * math.sqrt(6.0 / (hidden_nf + 1))     # xavier_uniform_, gain=0.001
        per["c_w3"].append(jax.random.uniform(bk[6], (hidden_nf, 1), jnp.float32, -xav, xav))
    for k in names:
        p[k] = jnp.stack(per[k], axis=0)
    return p


# ----------------------------------------------------------------------------
# Main
# ----------------------------------------------------------------------------
if __name__ == "__main__":
    key = jax.random.PRNGKey(0)

    # Small synthetic graph batch: 2 graphs x 4 nodes, fully connected, no self loops.
    num_graphs = 2
    nodes_per_graph = 4
    n_nodes = num_graphs * nodes_per_graph
    h_feat = 5                      # z_t = [xyz(3) | node feats(5)]
    in_node_nf = h_feat + 1         # + time feature
    hidden_nf = 32
    out_node_nf = in_node_nf        # out_node_nf=None -> defaults to in_node_nf
    n_layers = 3

    rows, cols = [], []
    for g in range(num_graphs):
        off = g * nodes_per_graph
        for i in range(nodes_per_graph):
            for j in range(nodes_per_graph):
                if i != j:
                    rows.append(off + i)
                    cols.append(off + j)
    edge_index = jnp.array([rows, cols], dtype=jnp.int32)            # [2, 24]
    batch = jnp.repeat(jnp.arange(num_graphs, dtype=jnp.int32), nodes_per_graph)

    k1, k2, k3 = jax.random.split(key, 3)
    z_t = jax.random.normal(k1, (n_nodes, 3 + h_feat), dtype=jnp.float32)
    t = jax.random.uniform(k2, (n_nodes,), dtype=jnp.float32)

    params = init_params(k3, in_node_nf, hidden_nf, out_node_nf, n_layers)

    fwd = jax.jit(egnn_score_forward, static_argnames=("num_graphs",))
    out = fwd(params, z_t, t, edge_index, batch, num_graphs=num_graphs)
    out = jax.block_until_ready(out)

    assert out.shape == (n_nodes, 3 + out_node_nf), out.shape
    assert jnp.all(jnp.isfinite(out))
    print("KERNEL_OK")
</pallas_src>

<mosaic_0001>
module attributes {stable_mosaic.version = 11 : i64} {
  func.func @_egnn_fused_kernel(%arg0: memref<24x1xi32, #tpu.memory_space<vmem>>, %arg1: memref<24x1xi32, #tpu.memory_space<vmem>>, %arg2: memref<1x24xi32, #tpu.memory_space<vmem>>, %arg3: memref<8x1xi32, #tpu.memory_space<vmem>>, %arg4: memref<1x8xi32, #tpu.memory_space<vmem>>, %arg5: memref<8x3xf32, #tpu.memory_space<vmem>>, %arg6: memref<8x6xf32, #tpu.memory_space<vmem>>, %arg7: memref<6x32xf32, #tpu.memory_space<vmem>>, %arg8: memref<1x32xf32, #tpu.memory_space<vmem>>, %arg9: memref<32x6xf32, #tpu.memory_space<vmem>>, %arg10: memref<1x6xf32, #tpu.memory_space<vmem>>, %arg11: memref<3x66x32xf32, #tpu.memory_space<vmem>>, %arg12: memref<3x1x32xf32, #tpu.memory_space<vmem>>, %arg13: memref<3x32x32xf32, #tpu.memory_space<vmem>>, %arg14: memref<3x1x32xf32, #tpu.memory_space<vmem>>, %arg15: memref<3x64x32xf32, #tpu.memory_space<vmem>>, %arg16: memref<3x1x32xf32, #tpu.memory_space<vmem>>, %arg17: memref<3x32x32xf32, #tpu.memory_space<vmem>>, %arg18: memref<3x1x32xf32, #tpu.memory_space<vmem>>, %arg19: memref<3x66x32xf32, #tpu.memory_space<vmem>>, %arg20: memref<3x1x32xf32, #tpu.memory_space<vmem>>, %arg21: memref<3x32x32xf32, #tpu.memory_space<vmem>>, %arg22: memref<3x1x32xf32, #tpu.memory_space<vmem>>, %arg23: memref<3x32x1xf32, #tpu.memory_space<vmem>>, %arg24: memref<8x9xf32, #tpu.memory_space<vmem>>, %arg25: memref<8x32xf32, #tpu.memory_space<vmem>>, %arg26: memref<8x3xf32, #tpu.memory_space<vmem>>, %arg27: memref<8x3xf32, #tpu.memory_space<vmem>>, %arg28: memref<8x32xf32, #tpu.memory_space<vmem>>, %arg29: memref<8x3xf32, #tpu.memory_space<vmem>>) attributes {dimension_semantics = [], scalar_prefetch = 0 : i64, scratch_operands = 5 : i64, tpu.core_type = #tpu.core_type<tc>} {
    %c0 = arith.constant 0 : index
    %c0_0 = arith.constant 0 : index
    %0 = vector.load %arg5[%c0, %c0_0] : memref<8x3xf32, #tpu.memory_space<vmem>>, vector<8x3xf32>
    %c0_1 = arith.constant 0 : index
    %c0_2 = arith.constant 0 : index
    %1 = vector.load %arg3[%c0_1, %c0_2] : memref<8x1xi32, #tpu.memory_space<vmem>>, vector<8x1xi32>
    %2 = tpu.iota {dimensions = array<i32: 1>} : vector<8x2xi32>
    %3 = vector.broadcast %1 : vector<8x1xi32> to vector<8x2xi32>
    %4 = arith.cmpi eq, %3, %2 : vector<8x2xi32>
    %5 = arith.extui %4 : vector<8x2xi1> to vector<8x2xi32>
    %6 = arith.sitofp %5 : vector<8x2xi32> to vector<8x2xf32>
    %c0_3 = arith.constant 0 : index
    %c0_4 = arith.constant 0 : index
    %7 = vector.load %arg4[%c0_3, %c0_4] : memref<1x8xi32, #tpu.memory_space<vmem>>, vector<1x8xi32>
    %8 = tpu.iota {dimensions = array<i32: 0>} : vector<2x8xi32>
    %9 = vector.broadcast %7 : vector<1x8xi32> to vector<2x8xi32>
    %10 = arith.cmpi eq, %9, %8 : vector<2x8xi32>
    %11 = arith.extui %10 : vector<2x8xi1> to vector<2x8xi32>
    %12 = arith.sitofp %11 : vector<2x8xi32> to vector<2x8xf32>
    %cst = arith.constant dense<0.000000e+00> : vector<2x3xf32>
    %13 = tpu.matmul %12, %0, %cst {dimension_numbers = #tpu.dot_dimension_numbers<[1], [0], [0], [1], [0, 0, 1, 1], [], []>} : vector<2x8xf32>, vector<8x3xf32>, vector<2x3xf32> -> vector<2x3xf32>
    %cst_5 = arith.constant 1.000000e+00 : f32
    %14 = vector.broadcast %cst_5 : f32 to vector<8x1xf32>
    %cst_6 = arith.constant dense<0.000000e+00> : vector<2x1xf32>
    %15 = tpu.matmul %12, %14, %cst_6 {dimension_numbers = #tpu.dot_dimension_numbers<[1], [0], [0], [1], [0, 0, 1, 1], [], []>} : vector<2x8xf32>, vector<8x1xf32>, vector<2x1xf32> -> vector<2x1xf32>
    %16 = vector.broadcast %15 : vector<2x1xf32> to vector<2x3xf32>
    %17 = arith.divf %13, %16 : vector<2x3xf32>
    %cst_7 = arith.constant dense<0.000000e+00> : vector<8x3xf32>
    %18 = tpu.matmul %6, %17, %cst_7 {dimension_numbers = #tpu.dot_dimension_numbers<[1], [0], [0], [1], [0, 0, 1, 1], [], []>} : vector<8x2xf32>, vector<2x3xf32>, vector<8x3xf32> -> vector<8x3xf32>
    %19 = arith.subf %0, %18 : vector<8x3xf32>
    %c0_8 = arith.constant 0 : index
    %c0_9 = arith.constant 0 : index
    %20 = vector.load %arg27[%c0_8, %c0_9] : memref<8x3xf32, #tpu.memory_space<vmem>>, vector<8x3xf32>
    tpu.vector_store %arg27[%c0_8, %c0_9], %19 {strides = array<i32>} : memref<8x3xf32, #tpu.memory_space<vmem>>, vector<8x3xf32>,
    %c0_10 = arith.constant 0 : index
    %c0_11 = arith.constant 0 : index
    %21 = vector.load %arg26[%c0_10, %c0_11] : memref<8x3xf32, #tpu.memory_space<vmem>>, vector<8x3xf32>
    tpu.vector_store %arg26[%c0_10, %c0_11], %19 {strides = array<i32>} : memref<8x3xf32, #tpu.memory_space<vmem>>, vector<8x3xf32>,
    %c0_12 = arith.constant 0 : index
    %c0_13 = arith.constant 0 : index
    %22 = vector.load %arg6[%c0_12, %c0_13] : memref<8x6xf32, #tpu.memory_space<vmem>>, vector<8x6xf32>
    %c0_14 = arith.constant 0 : index
    %c0_15 = arith.constant 0 : index
    %23 = vector.load %arg7[%c0_14, %c0_15] : memref<6x32xf32, #tpu.memory_space<vmem>>, vector<6x32xf32>
    %cst_16 = arith.constant dense<0.000000e+00> : vector<8x32xf32>
    %24 = tpu.matmul %22, %23, %cst_16 {dimension_numbers = #tpu.dot_dimension_numbers<[1], [0], [0], [1], [0, 0, 1, 1], [], []>} : vector<8x6xf32>, vector<6x32xf32>, vector<8x32xf32> -> vector<8x32xf32>
    %c0_17 = arith.constant 0 : index
    %c0_18 = arith.constant 0 : index
    %25 = vector.load %arg8[%c0_17, %c0_18] : memref<1x32xf32, #tpu.memory_space<vmem>>, vector<1x32xf32>
    %26 = vector.broadcast %25 : vector<1x32xf32> to vector<8x32xf32>
    %27 = arith.addf %24, %26 : vector<8x32xf32>
    %c0_19 = arith.constant 0 : index
    %c0_20 = arith.constant 0 : index
    %28 = vector.load %arg25[%c0_19, %c0_20] : memref<8x32xf32, #tpu.memory_space<vmem>>, vector<8x32xf32>
    tpu.vector_store %arg25[%c0_19, %c0_20], %27 {strides = array<i32>} : memref<8x32xf32, #tpu.memory_space<vmem>>, vector<8x32xf32>,
    %c0_21 = arith.constant 0 : index
    %c0_22 = arith.constant 0 : index
    %29 = vector.load %arg25[%c0_21, %c0_22] : memref<8x32xf32, #tpu.memory_space<vmem>>, vector<8x32xf32>
    %c0_23 = arith.constant 0 : index
    %c0_24 = arith.constant 0 : index
    %30 = vector.load %arg26[%c0_23, %c0_24] : memref<8x3xf32, #tpu.memory_space<vmem>>, vector<8x3xf32>
    %c0_25 = arith.constant 0 : index
    %c0_26 = arith.constant 0 : index
    %31 = vector.load %arg27[%c0_25, %c0_26] : memref<8x3xf32, #tpu.memory_space<vmem>>, vector<8x3xf32>
    %c0_27 = arith.constant 0 : index
    %c0_28 = arith.constant 0 : index
    %c0_29 = arith.constant 0 : index
    %32 = vector.load %arg11[%c0_27, %c0_28, %c0_29] : memref<3x66x32xf32, #tpu.memory_space<vmem>>, vector<1x66x32xf32>
    %33 = vector.shape_cast %32 : vector<1x66x32xf32> to vector<66x32xf32>
    %c0_30 = arith.constant 0 : index
    %c0_31 = arith.constant 0 : index
    %c0_32 = arith.constant 0 : index
    %34 = vector.load %arg12[%c0_30, %c0_31, %c0_32] : memref<3x1x32xf32, #tpu.memory_space<vmem>>, vector<1x1x32xf32>
    %35 = vector.shape_cast %34 : vector<1x1x32xf32> to vector<1x32xf32>
    %c0_33 = arith.constant 0 : index
    %c0_34 = arith.constant 0 : index
    %c0_35 = arith.constant 0 : index
    %36 = vector.load %arg13[%c0_33, %c0_34, %c0_35] : memref<3x32x32xf32, #tpu.memory_space<vmem>>, vector<1x32x32xf32>
    %37 = vector.shape_cast %36 : vector<1x32x32xf32> to vector<32x32xf32>
    %c0_36 = arith.constant 0 : index
    %c0_37 = arith.constant 0 : index
    %c0_38 = arith.constant 0 : index
    %38 = vector.load %arg14[%c0_36, %c0_37, %c0_38] : memref<3x1x32xf32, #tpu.memory_space<vmem>>, vector<1x1x32xf32>
    %39 = vector.shape_cast %38 : vector<1x1x32xf32> to vector<1x32xf32>
    %40 = vector.extract_strided_slice %33 {offsets = [0, 0], sizes = [32, 32], strides = [1, 1]} : vector<66x32xf32> to vector<32x32xf32>
    %cst_39 = arith.constant dense<0.000000e+00> : vector<8x32xf32>
    %41 = tpu.matmul %29, %40, %cst_39 {dimension_numbers = #tpu.dot_dimension_numbers<[1], [0], [0], [1], [0, 0, 1, 1], [], []>} : vector<8x32xf32>, vector<32x32xf32>, vector<8x32xf32> -> vector<8x32xf32>
    %42 = vector.extract_strided_slice %33 {offsets = [32, 0], sizes = [32, 32], strides = [1, 1]} : vector<66x32xf32> to vector<32x32xf32>
    %cst_40 = arith.constant dense<0.000000e+00> : vector<8x32xf32>
    %43 = tpu.matmul %29, %42, %cst_40 {dimension_numbers = #tpu.dot_dimension_numbers<[1], [0], [0], [1], [0, 0, 1, 1], [], []>} : vector<8x32xf32>, vector<32x32xf32>, vector<8x32xf32> -> vector<8x32xf32>
    %44 = vector.extract_strided_slice %33 {offsets = [64, 0], sizes = [1, 32], strides = [1, 1]} : vector<66x32xf32> to vector<1x32xf32>
    %45 = vector.extract_strided_slice %33 {offsets = [65, 0], sizes = [1, 32], strides = [1, 1]} : vector<66x32xf32> to vector<1x32xf32>
    %cst_41 = arith.constant 1.000000e+00 : f32
    %46 = vector.broadcast %cst_41 : f32 to vector<3x1xf32>
    %cst_42 = arith.constant 0.000000e+00 : f32
    %47 = vector.broadcast %cst_42 : f32 to vector<8x32xf32>
    %c0_43 = arith.constant 0 : index
    %c0_44 = arith.constant 0 : index
    %48 = vector.load %arg28[%c0_43, %c0_44] : memref<8x32xf32, #tpu.memory_space<vmem>>, vector<8x32xf32>
    tpu.vector_store %arg28[%c0_43, %c0_44], %47 {strides = array<i32>} : memref<8x32xf32, #tpu.memory_space<vmem>>, vector<8x32xf32>,
    %c0_i32 = arith.constant 0 : i32
    %c24_i32 = arith.constant 24 : i32
    %49 = arith.muli %c0_i32, %c24_i32 : i32
    %50 = tpu.assume_multiple %49, 8 : i32
    %51 = arith.index_cast %50 : i32 to index
    %c0_45 = arith.constant 0 : index
    %52 = vector.load %arg0[%51, %c0_45] : memref<24x1xi32, #tpu.memory_space<vmem>>, vector<24x1xi32>
    %53 = arith.index_cast %50 : i32 to index
    %c0_46 = arith.constant 0 : index
    %54 = vector.load %arg1[%53, %c0_46] : memref<24x1xi32, #tpu.memory_space<vmem>>, vector<24x1xi32>
    %55 = tpu.iota {dimensions = array<i32: 1>} : vector<24x8xi32>
    %56 = vector.broadcast %52 : vector<24x1xi32> to vector<24x8xi32>
    %57 = arith.cmpi eq, %56, %55 : vector<24x8xi32>
    %58 = arith.extui %57 : vector<24x8xi1> to vector<24x8xi32>
    %59 = arith.sitofp %58 : vector<24x8xi32> to vector<24x8xf32>
    %60 = vector.broadcast %54 : vector<24x1xi32> to vector<24x8xi32>
    %61 = arith.cmpi eq, %60, %55 : vector<24x8xi32>
    %62 = arith.extui %61 : vector<24x8xi1> to vector<24x8xi32>
    %63 = arith.sitofp %62 : vector<24x8xi32> to vector<24x8xf32>
    %64 = arith.subf %59, %63 : vector<24x8xf32>
    %cst_47 = arith.constant dense<0.000000e+00> : vector<24x3xf32>
    %65 = tpu.matmul %64, %30, %cst_47 {dimension_numbers = #tpu.dot_dimension_numbers<[1], [0], [0], [1], [0, 0, 1, 1], [], []>} : vector<24x8xf32>, vector<8x3xf32>, vector<24x3xf32> -> vector<24x3xf32>
    %cst_48 = arith.constant dense<0.000000e+00> : vector<24x3xf32>
    %66 = tpu.matmul %64, %31, %cst_48 {dimension_numbers = #tpu.dot_dimension_numbers<[1], [0], [0], [1], [0, 0, 1, 1], [], []>} : vector<24x8xf32>, vector<8x3xf32>, vector<24x3xf32> -> vector<24x3xf32>
    %67 = arith.mulf %65, %65 : vector<24x3xf32>
    %cst_49 = arith.constant dense<0.000000e+00> : vector<24x1xf32>
    %68 = tpu.matmul %67, %46, %cst_49 {dimension_numbers = #tpu.dot_dimension_numbers<[1], [0], [0], [1], [0, 0, 1, 1], [], []>} : vector<24x3xf32>, vector<3x1xf32>, vector<24x1xf32> -> vector<24x1xf32>
    %69 = arith.mulf %66, %66 : vector<24x3xf32>
    %cst_50 = arith.constant dense<0.000000e+00> : vector<24x1xf32>
    %70 = tpu.matmul %69, %46, %cst_50 {dimension_numbers = #tpu.dot_dimension_numbers<[1], [0], [0], [1], [0, 0, 1, 1], [], []>} : vector<24x3xf32>, vector<3x1xf32>, vector<24x1xf32> -> vector<24x1xf32>
    %cst_51 = arith.constant dense<0.000000e+00> : vector<24x32xf32>
    %71 = tpu.matmul %59, %41, %cst_51 {dimension_numbers = #tpu.dot_dimension_numbers<[1], [0], [0], [1], [0, 0, 1, 1], [], []>} : vector<24x8xf32>, vector<8x32xf32>, vector<24x32xf32> -> vector<24x32xf32>
    %cst_52 = arith.constant dense<0.000000e+00> : vector<24x32xf32>
    %72 = tpu.matmul %63, %43, %cst_52 {dimension_numbers = #tpu.dot_dimension_numbers<[1], [0], [0], [1], [0, 0, 1, 1], [], []>} : vector<24x8xf32>, vector<8x32xf32>, vector<24x32xf32> -> vector<24x32xf32>
    %73 = arith.addf %71, %72 : vector<24x32xf32>
    %74 = vector.broadcast %68 : vector<24x1xf32> to vector<24x32xf32>
    %75 = vector.broadcast %44 : vector<1x32xf32> to vector<24x32xf32>
    %76 = arith.mulf %74, %75 : vector<24x32xf32>
    %77 = arith.addf %73, %76 : vector<24x32xf32>
    %78 = vector.broadcast %70 : vector<24x1xf32> to vector<24x32xf32>
    %79 = vector.broadcast %45 : vector<1x32xf32> to vector<24x32xf32>
    %80 = arith.mulf %78, %79 : vector<24x32xf32>
    %81 = arith.addf %77, %80 : vector<24x32xf32>
    %82 = vector.broadcast %35 : vector<1x32xf32> to vector<24x32xf32>
    %83 = arith.addf %81, %82 : vector<24x32xf32>
    %84 = arith.negf %83 : vector<24x32xf32>
    %85 = math.exp %84 : vector<24x32xf32>
    %cst_53 = arith.constant 1.000000e+00 : f32
    %86 = vector.broadcast %cst_53 : f32 to vector<24x32xf32>
    %87 = arith.addf %86, %85 : vector<24x32xf32>
    %88 = arith.divf %86, %87 : vector<24x32xf32>
    %89 = arith.mulf %83, %88 : vector<24x32xf32>
    %cst_54 = arith.constant dense<0.000000e+00> : vector<24x32xf32>
    %90 = tpu.matmul %89, %37, %cst_54 {dimension_numbers = #tpu.dot_dimension_numbers<[1], [0], [0], [1], [0, 0, 1, 1], [], []>} : vector<24x32xf32>, vector<32x32xf32>, vector<24x32xf32> -> vector<24x32xf32>
    %91 = vector.broadcast %39 : vector<1x32xf32> to vector<24x32xf32>
    %92 = arith.addf %90, %91 : vector<24x32xf32>
    %93 = arith.negf %92 : vector<24x32xf32>
    %94 = math.exp %93 : vector<24x32xf32>
    %cst_55 = arith.constant 1.000000e+00 : f32
    %95 = vector.broadcast %cst_55 : f32 to vector<24x32xf32>
    %96 = arith.addf %95, %94 : vector<24x32xf32>
    %97 = arith.divf %95, %96 : vector<24x32xf32>
    %98 = arith.mulf %92, %97 : vector<24x32xf32>
    %99 = arith.index_cast %c0_i32 : i32 to index
    %c0_56 = arith.constant 0 : index
    %100 = vector.load %arg2[%99, %c0_56] : memref<1x24xi32, #tpu.memory_space<vmem>>, vector<1x24xi32>
    %101 = tpu.iota {dimensions = array<i32: 0>} : vector<8x24xi32>
    %102 = vector.broadcast %100 : vector<1x24xi32> to vector<8x24xi32>
    %103 = arith.cmpi eq, %102, %101 : vector<8x24xi32>
    %104 = arith.extui %103 : vector<8x24xi1> to vector<8x24xi32>
    %105 = arith.sitofp %104 : vector<8x24xi32> to vector<8x24xf32>
    %c0_57 = arith.constant 0 : index
    %c0_58 = arith.constant 0 : index
    %106 = vector.load %arg28[%c0_57, %c0_58] : memref<8x32xf32, #tpu.memory_space<vmem>>, vector<8x32xf32>
    %cst_59 = arith.constant dense<0.000000e+00> : vector<8x32xf32>
    %107 = tpu.matmul %105, %98, %cst_59 {dimension_numbers = #tpu.dot_dimension_numbers<[1], [0], [0], [1], [0, 0, 1, 1], [], []>} : vector<8x24xf32>, vector<24x32xf32>, vector<8x32xf32> -> vector<8x32xf32>
    %108 = arith.addf %106, %107 : vector<8x32xf32>
    %c0_60 = arith.constant 0 : index
    %c0_61 = arith.constant 0 : index
    %109 = vector.load %arg28[%c0_60, %c0_61] : memref<8x32xf32, #tpu.memory_space<vmem>>, vector<8x32xf32>
    tpu.vector_store %arg28[%c0_60, %c0_61], %108 {strides = array<i32>} : memref<8x32xf32, #tpu.memory_space<vmem>>, vector<8x32xf32>,
    %c1_i32 = arith.constant 1 : i32
    %c0_62 = arith.constant 0 : index
    %c0_63 = arith.constant 0 : index
    %110 = vector.load %arg28[%c0_62, %c0_63] : memref<8x32xf32, #tpu.memory_space<vmem>>, vector<8x32xf32>
    %cst_64 = arith.constant 1.000000e+00 : f32
    %111 = vector.broadcast %cst_64 : f32 to vector<8x32xf32>
    %112 = arith.mulf %110, %111 : vector<8x32xf32>
    %c0_65 = arith.constant 0 : index
    %c0_66 = arith.constant 0 : index
    %113 = vector.load %arg25[%c0_65, %c0_66] : memref<8x32xf32, #tpu.memory_space<vmem>>, vector<8x32xf32>
    %c0_67 = arith.constant 0 : index
    %c0_68 = arith.constant 0 : index
    %c0_69 = arith.constant 0 : index
    %114 = vector.load %arg15[%c0_67, %c0_68, %c0_69] : memref<3x64x32xf32, #tpu.memory_space<vmem>>, vector<1x64x32xf32>
    %115 = vector.shape_cast %114 : vector<1x64x32xf32> to vector<64x32xf32>
    %116 = vector.extract_strided_slice %115 {offsets = [0, 0], sizes = [32, 32], strides = [1, 1]} : vector<64x32xf32> to vector<32x32xf32>
    %cst_70 = arith.constant dense<0.000000e+00> : vector<8x32xf32>
    %117 = tpu.matmul %113, %116, %cst_70 {dimension_numbers = #tpu.dot_dimension_numbers<[1], [0], [0], [1], [0, 0, 1, 1], [], []>} : vector<8x32xf32>, vector<32x32xf32>, vector<8x32xf32> -> vector<8x32xf32>
    %118 = vector.extract_strided_slice %115 {offsets = [32, 0], sizes = [32, 32], strides = [1, 1]} : vector<64x32xf32> to vector<32x32xf32>
    %cst_71 = arith.constant dense<0.000000e+00> : vector<8x32xf32>
    %119 = tpu.matmul %112, %118, %cst_71 {dimension_numbers = #tpu.dot_dimension_numbers<[1], [0], [0], [1], [0, 0, 1, 1], [], []>} : vector<8x32xf32>, vector<32x32xf32>, vector<8x32xf32> -> vector<8x32xf32>
    %120 = arith.addf %117, %119 : vector<8x32xf32>
    %c0_72 = arith.constant 0 : index
    %c0_73 = arith.constant 0 : index
    %c0_74 = arith.constant 0 : index
    %121 = vector.load %arg16[%c0_72, %c0_73, %c0_74] : memref<3x1x32xf32, #tpu.memory_space<vmem>>, vector<1x1x32xf32>
    %122 = vector.shape_cast %121 : vector<1x1x32xf32> to vector<1x32xf32>
    %123 = vector.broadcast %122 : vector<1x32xf32> to vector<8x32xf32>
    %124 = arith.addf %120, %123 : vector<8x32xf32>
    %125 = arith.negf %124 : vector<8x32xf32>
    %126 = math.exp %125 : vector<8x32xf32>
    %cst_75 = arith.constant 1.000000e+00 : f32
    %127 = vector.broadcast %cst_75 : f32 to vector<8x32xf32>
    %128 = arith.addf %127, %126 : vector<8x32xf32>
    %129 = arith.divf %127, %128 : vector<8x32xf32>
    %130 = arith.mulf %124, %129 : vector<8x32xf32>
    %c0_76 = arith.constant 0 : index
    %c0_77 = arith.constant 0 : index
    %c0_78 = arith.constant 0 : index
    %131 = vector.load %arg17[%c0_76, %c0_77, %c0_78] : memref<3x32x32xf32, #tpu.memory_space<vmem>>, vector<1x32x32xf32>
    %132 = vector.shape_cast %131 : vector<1x32x32xf32> to vector<32x32xf32>
    %cst_79 = arith.constant dense<0.000000e+00> : vector<8x32xf32>
    %133 = tpu.matmul %130, %132, %cst_79 {dimension_numbers = #tpu.dot_dimension_numbers<[1], [0], [0], [1], [0, 0, 1, 1], [], []>} : vector<8x32xf32>, vector<32x32xf32>, vector<8x32xf32> -> vector<8x32xf32>
    %134 = arith.addf %113, %133 : vector<8x32xf32>
    %c0_80 = arith.constant 0 : index
    %c0_81 = arith.constant 0 : index
    %c0_82 = arith.constant 0 : index
    %135 = vector.load %arg18[%c0_80, %c0_81, %c0_82] : memref<3x1x32xf32, #tpu.memory_space<vmem>>, vector<1x1x32xf32>
    %136 = vector.shape_cast %135 : vector<1x1x32xf32> to vector<1x32xf32>
    %137 = vector.broadcast %136 : vector<1x32xf32> to vector<8x32xf32>
    %138 = arith.addf %134, %137 : vector<8x32xf32>
    %c0_83 = arith.constant 0 : index
    %c0_84 = arith.constant 0 : index
    %139 = vector.load %arg25[%c0_83, %c0_84] : memref<8x32xf32, #tpu.memory_space<vmem>>, vector<8x32xf32>
    tpu.vector_store %arg25[%c0_83, %c0_84], %138 {strides = array<i32>} : memref<8x32xf32, #tpu.memory_space<vmem>>, vector<8x32xf32>,
    %c0_85 = arith.constant 0 : index
    %c0_86 = arith.constant 0 : index
    %140 = vector.load %arg25[%c0_85, %c0_86] : memref<8x32xf32, #tpu.memory_space<vmem>>, vector<8x32xf32>
    %c0_87 = arith.constant 0 : index
    %c0_88 = arith.constant 0 : index
    %141 = vector.load %arg26[%c0_87, %c0_88] : memref<8x3xf32, #tpu.memory_space<vmem>>, vector<8x3xf32>
    %c0_89 = arith.constant 0 : index
    %c0_90 = arith.constant 0 : index
    %142 = vector.load %arg27[%c0_89, %c0_90] : memref<8x3xf32, #tpu.memory_space<vmem>>, vector<8x3xf32>
    %c0_91 = arith.constant 0 : index
    %c0_92 = arith.constant 0 : index
    %c0_93 = arith.constant 0 : index
    %143 = vector.load %arg19[%c0_91, %c0_92, %c0_93] : memref<3x66x32xf32, #tpu.memory_space<vmem>>, vector<1x66x32xf32>
    %144 = vector.shape_cast %143 : vector<1x66x32xf32> to vector<66x32xf32>
    %c0_94 = arith.constant 0 : index
    %c0_95 = arith.constant 0 : index
    %c0_96 = arith.constant 0 : index
    %145 = vector.load %arg20[%c0_94, %c0_95, %c0_96] : memref<3x1x32xf32, #tpu.memory_space<vmem>>, vector<1x1x32xf32>
    %146 = vector.shape_cast %145 : vector<1x1x32xf32> to vector<1x32xf32>
    %c0_97 = arith.constant 0 : index
    %c0_98 = arith.constant 0 : index
    %c0_99 = arith.constant 0 : index
    %147 = vector.load %arg21[%c0_97, %c0_98, %c0_99] : memref<3x32x32xf32, #tpu.memory_space<vmem>>, vector<1x32x32xf32>
    %148 = vector.shape_cast %147 : vector<1x32x32xf32> to vector<32x32xf32>
    %c0_100 = arith.constant 0 : index
    %c0_101 = arith.constant 0 : index
    %c0_102 = arith.constant 0 : index
    %149 = vector.load %arg22[%c0_100, %c0_101, %c0_102] : memref<3x1x32xf32, #tpu.memory_space<vmem>>, vector<1x1x32xf32>
    %150 = vector.shape_cast %149 : vector<1x1x32xf32> to vector<1x32xf32>
    %c0_103 = arith.constant 0 : index
    %c0_104 = arith.constant 0 : index
    %c0_105 = arith.constant 0 : index
    %151 = vector.load %arg23[%c0_103, %c0_104, %c0_105] : memref<3x32x1xf32, #tpu.memory_space<vmem>>, vector<1x32x1xf32>
    %152 = vector.shape_cast %151 : vector<1x32x1xf32> to vector<32x1xf32>
    %153 = vector.extract_strided_slice %144 {offsets = [0, 0], sizes = [32, 32], strides = [1, 1]} : vector<66x32xf32> to vector<32x32xf32>
    %cst_106 = arith.constant dense<0.000000e+00> : vector<8x32xf32>
    %154 = tpu.matmul %140, %153, %cst_106 {dimension_numbers = #tpu.dot_dimension_numbers<[1], [0], [0], [1], [0, 0, 1, 1], [], []>} : vector<8x32xf32>, vector<32x32xf32>, vector<8x32xf32> -> vector<8x32xf32>
    %155 = vector.extract_strided_slice %144 {offsets = [32, 0], sizes = [32, 32], strides = [1, 1]} : vector<66x32xf32> to vector<32x32xf32>
    %cst_107 = arith.constant dense<0.000000e+00> : vector<8x32xf32>
    %156 = tpu.matmul %140, %155, %cst_107 {dimension_numbers = #tpu.dot_dimension_numbers<[1], [0], [0], [1], [0, 0, 1, 1], [], []>} : vector<8x32xf32>, vector<32x32xf32>, vector<8x32xf32> -> vector<8x32xf32>
    %157 = vector.extract_strided_slice %144 {offsets = [64, 0], sizes = [1, 32], strides = [1, 1]} : vector<66x32xf32> to vector<1x32xf32>
    %158 = vector.extract_strided_slice %144 {offsets = [65, 0], sizes = [1, 32], strides = [1, 1]} : vector<66x32xf32> to vector<1x32xf32>
    %cst_108 = arith.constant 1.000000e+00 : f32
    %159 = vector.broadcast %cst_108 : f32 to vector<3x1xf32>
    %cst_109 = arith.constant 0.000000e+00 : f32
    %160 = vector.broadcast %cst_109 : f32 to vector<8x3xf32>
    %c0_110 = arith.constant 0 : index
    %c0_111 = arith.constant 0 : index
    %161 = vector.load %arg29[%c0_110, %c0_111] : memref<8x3xf32, #tpu.memory_space<vmem>>, vector<8x3xf32>
    tpu.vector_store %arg29[%c0_110, %c0_111], %160 {strides = array<i32>} : memref<8x3xf32, #tpu.memory_space<vmem>>, vector<8x3xf32>,
    %c0_i32_112 = arith.constant 0 : i32
    %c24_i32_113 = arith.constant 24 : i32
    %162 = arith.muli %c0_i32_112, %c24_i32_113 : i32
    %163 = tpu.assume_multiple %162, 8 : i32
    %164 = arith.index_cast %163 : i32 to index
    %c0_114 = arith.constant 0 : index
    %165 = vector.load %arg0[%164, %c0_114] : memref<24x1xi32, #tpu.memory_space<vmem>>, vector<24x1xi32>
    %166 = arith.index_cast %163 : i32 to index
    %c0_115 = arith.constant 0 : index
    %167 = vector.load %arg1[%166, %c0_115] : memref<24x1xi32, #tpu.memory_space<vmem>>, vector<24x1xi32>
    %168 = tpu.iota {dimensions = array<i32: 1>} : vector<24x8xi32>
    %169 = vector.broadcast %165 : vector<24x1xi32> to vector<24x8xi32>
    %170 = arith.cmpi eq, %169, %168 : vector<24x8xi32>
    %171 = arith.extui %170 : vector<24x8xi1> to vector<24x8xi32>
    %172 = arith.sitofp %171 : vector<24x8xi32> to vector<24x8xf32>
    %173 = vector.broadcast %167 : vector<24x1xi32> to vector<24x8xi32>
    %174 = arith.cmpi eq, %173, %168 : vector<24x8xi32>
    %175 = arith.extui %174 : vector<24x8xi1> to vector<24x8xi32>
    %176 = arith.sitofp %175 : vector<24x8xi32> to vector<24x8xf32>
    %177 = arith.subf %172, %176 : vector<24x8xf32>
    %cst_116 = arith.constant dense<0.000000e+00> : vector<24x3xf32>
    %178 = tpu.matmul %177, %141, %cst_116 {dimension_numbers = #tpu.dot_dimension_numbers<[1], [0], [0], [1], [0, 0, 1, 1], [], []>} : vector<24x8xf32>, vector<8x3xf32>, vector<24x3xf32> -> vector<24x3xf32>
    %cst_117 = arith.constant dense<0.000000e+00> : vector<24x3xf32>
    %179 = tpu.matmul %177, %142, %cst_117 {dimension_numbers = #tpu.dot_dimension_numbers<[1], [0], [0], [1], [0, 0, 1, 1], [], []>} : vector<24x8xf32>, vector<8x3xf32>, vector<24x3xf32> -> vector<24x3xf32>
    %180 = arith.mulf %178, %178 : vector<24x3xf32>
    %cst_118 = arith.constant dense<0.000000e+00> : vector<24x1xf32>
    %181 = tpu.matmul %180, %159, %cst_118 {dimension_numbers = #tpu.dot_dimension_numbers<[1], [0], [0], [1], [0, 0, 1, 1], [], []>} : vector<24x3xf32>, vector<3x1xf32>, vector<24x1xf32> -> vector<24x1xf32>
    %182 = arith.mulf %179, %179 : vector<24x3xf32>
    %cst_119 = arith.constant dense<0.000000e+00> : vector<24x1xf32>
    %183 = tpu.matmul %182, %159, %cst_119 {dimension_numbers = #tpu.dot_dimension_numbers<[1], [0], [0], [1], [0, 0, 1, 1], [], []>} : vector<24x3xf32>, vector<3x1xf32>, vector<24x1xf32> -> vector<24x1xf32>
    %cst_120 = arith.constant dense<0.000000e+00> : vector<24x32xf32>
    %184 = tpu.matmul %172, %154, %cst_120 {dimension_numbers = #tpu.dot_dimension_numbers<[1], [0], [0], [1], [0, 0, 1, 1], [], []>} : vector<24x8xf32>, vector<8x32xf32>, vector<24x32xf32> -> vector<24x32xf32>
    %cst_121 = arith.constant dense<0.000000e+00> : vector<24x32xf32>
    %185 = tpu.matmul %176, %156, %cst_121 {dimension_numbers = #tpu.dot_dimension_numbers<[1], [0], [0], [1], [0, 0, 1, 1], [], []>} : vector<24x8xf32>, vector<8x32xf32>, vector<24x32xf32> -> vector<24x32xf32>
    %186 = arith.addf %184, %185 : vector<24x32xf32>
    %187 = vector.broadcast %181 : vector<24x1xf32> to vector<24x32xf32>
    %188 = vector.broadcast %157 : vector<1x32xf32> to vector<24x32xf32>
    %189 = arith.mulf %187, %188 : vector<24x32xf32>
    %190 = arith.addf %186, %189 : vector<24x32xf32>
    %191 = vector.broadcast %183 : vector<24x1xf32> to vector<24x32xf32>
    %192 = vector.broadcast %158 : vector<1x32xf32> to vector<24x32xf32>
    %193 = arith.mulf %191, %192 : vector<24x32xf32>
    %194 = arith.addf %190, %193 : vector<24x32xf32>
    %195 = vector.broadcast %146 : vector<1x32xf32> to vector<24x32xf32>
    %196 = arith.addf %194, %195 : vector<24x32xf32>
    %197 = arith.negf %196 : vector<24x32xf32>
    %198 = math.exp %197 : vector<24x32xf32>
    %cst_122 = arith.constant 1.000000e+00 : f32
    %199 = vector.broadcast %cst_122 : f32 to vector<24x32xf32>
    %200 = arith.addf %199, %198 : vector<24x32xf32>
    %201 = arith.divf %199, %200 : vector<24x32xf32>
    %202 = arith.mulf %196, %201 : vector<24x32xf32>
    %cst_123 = arith.constant dense<0.000000e+00> : vector<24x32xf32>
    %203 = tpu.matmul %202, %148, %cst_123 {dimension_numbers = #tpu.dot_dimension_numbers<[1], [0], [0], [1], [0, 0, 1, 1], [], []>} : vector<24x32xf32>, vector<32x32xf32>, vector<24x32xf32> -> vector<24x32xf32>
    %204 = vector.broadcast %150 : vector<1x32xf32> to vector<24x32xf32>
    %205 = arith.addf %203, %204 : vector<24x32xf32>
    %206 = arith.negf %205 : vector<24x32xf32>
    %207 = math.exp %206 : vector<24x32xf32>
    %cst_124 = arith.constant 1.000000e+00 : f32
    %208 = vector.broadcast %cst_124 : f32 to vector<24x32xf32>
    %209 = arith.addf %208, %207 : vector<24x32xf32>
    %210 = arith.divf %208, %209 : vector<24x32xf32>
    %211 = arith.mulf %205, %210 : vector<24x32xf32>
    %cst_125 = arith.constant dense<0.000000e+00> : vector<24x1xf32>
    %212 = tpu.matmul %211, %152, %cst_125 {dimension_numbers = #tpu.dot_dimension_numbers<[1], [0], [0], [1], [0, 0, 1, 1], [], []>} : vector<24x32xf32>, vector<32x1xf32>, vector<24x1xf32> -> vector<24x1xf32>
    %213 = math.tanh %212 : vector<24x1xf32>
    %cst_126 = arith.constant 9.99999993E-9 : f32
    %214 = vector.broadcast %cst_126 : f32 to vector<24x1xf32>
    %215 = arith.addf %181, %214 : vector<24x1xf32>
    %216 = math.sqrt %215 : vector<24x1xf32>
    %cst_127 = arith.constant 1.000000e+00 : f32
    %217 = vector.broadcast %cst_127 : f32 to vector<24x1xf32>
    %218 = arith.addf %216, %217 : vector<24x1xf32>
    %219 = vector.broadcast %218 : vector<24x1xf32> to vector<24x3xf32>
    %220 = arith.divf %178, %219 : vector<24x3xf32>
    %221 = vector.broadcast %213 : vector<24x1xf32> to vector<24x3xf32>
    %222 = arith.mulf %220, %221 : vector<24x3xf32>
    %cst_128 = arith.constant 1.500000e+01 : f32
    %223 = vector.broadcast %cst_128 : f32 to vector<24x3xf32>
    %224 = arith.mulf %222, %223 : vector<24x3xf32>
    %225 = arith.index_cast %c0_i32_112 : i32 to index
    %c0_129 = arith.constant 0 : index
    %226 = vector.load %arg2[%225, %c0_129] : memref<1x24xi32, #tpu.memory_space<vmem>>, vector<1x24xi32>
    %227 = tpu.iota {dimensions = array<i32: 0>} : vector<8x24xi32>
    %228 = vector.broadcast %226 : vector<1x24xi32> to vector<8x24xi32>
    %229 = arith.cmpi eq, %228, %227 : vector<8x24xi32>
    %230 = arith.extui %229 : vector<8x24xi1> to vector<8x24xi32>
    %231 = arith.sitofp %230 : vector<8x24xi32> to vector<8x24xf32>
    %c0_130 = arith.constant 0 : index
    %c0_131 = arith.constant 0 : index
    %232 = vector.load %arg29[%c0_130, %c0_131] : memref<8x3xf32, #tpu.memory_space<vmem>>, vector<8x3xf32>
    %cst_132 = arith.constant dense<0.000000e+00> : vector<8x3xf32>
    %233 = tpu.matmul %231, %224, %cst_132 {dimension_numbers = #tpu.dot_dimension_numbers<[1], [0], [0], [1], [0, 0, 1, 1], [], []>} : vector<8x24xf32>, vector<24x3xf32>, vector<8x3xf32> -> vector<8x3xf32>
    %234 = arith.addf %232, %233 : vector<8x3xf32>
    %c0_133 = arith.constant 0 : index
    %c0_134 = arith.constant 0 : index
    %235 = vector.load %arg29[%c0_133, %c0_134] : memref<8x3xf32, #tpu.memory_space<vmem>>, vector<8x3xf32>
    tpu.vector_store %arg29[%c0_133, %c0_134], %234 {strides = array<i32>} : memref<8x3xf32, #tpu.memory_space<vmem>>, vector<8x3xf32>,
    %c1_i32_135 = arith.constant 1 : i32
    %c0_136 = arith.constant 0 : index
    %c0_137 = arith.constant 0 : index
    %236 = vector.load %arg26[%c0_136, %c0_137] : memref<8x3xf32, #tpu.memory_space<vmem>>, vector<8x3xf32>
    %c0_138 = arith.constant 0 : index
    %c0_139 = arith.constant 0 : index
    %237 = vector.load %arg29[%c0_138, %c0_139] : memref<8x3xf32, #tpu.memory_space<vmem>>, vector<8x3xf32>
    %cst_140 = arith.constant 1.000000e+00 : f32
    %238 = vector.broadcast %cst_140 : f32 to vector<8x3xf32>
    %239 = arith.mulf %237, %238 : vector<8x3xf32>
    %240 = arith.addf %236, %239 : vector<8x3xf32>
    %c0_141 = arith.constant 0 : index
    %c0_142 = arith.constant 0 : index
    %241 = vector.load %arg26[%c0_141, %c0_142] : memref<8x3xf32, #tpu.memory_space<vmem>>, vector<8x3xf32>
    tpu.vector_store %arg26[%c0_141, %c0_142], %240 {strides = array<i32>} : memref<8x3xf32, #tpu.memory_space<vmem>>, vector<8x3xf32>,
    %c0_143 = arith.constant 0 : index
    %c0_144 = arith.constant 0 : index
    %242 = vector.load %arg25[%c0_143, %c0_144] : memref<8x32xf32, #tpu.memory_space<vmem>>, vector<8x32xf32>
    %c0_145 = arith.constant 0 : index
    %c0_146 = arith.constant 0 : index
    %243 = vector.load %arg26[%c0_145, %c0_146] : memref<8x3xf32, #tpu.memory_space<vmem>>, vector<8x3xf32>
    %c0_147 = arith.constant 0 : index
    %c0_148 = arith.constant 0 : index
    %244 = vector.load %arg27[%c0_147, %c0_148] : memref<8x3xf32, #tpu.memory_space<vmem>>, vector<8x3xf32>
    %c1 = arith.constant 1 : index
    %c0_149 = arith.constant 0 : index
    %c0_150 = arith.constant 0 : index
    %245 = vector.load %arg11[%c1, %c0_149, %c0_150] : memref<3x66x32xf32, #tpu.memory_space<vmem>>, vector<1x66x32xf32>
    %246 = vector.shape_cast %245 : vector<1x66x32xf32> to vector<66x32xf32>
    %c1_151 = arith.constant 1 : index
    %c0_152 = arith.constant 0 : index
    %c0_153 = arith.constant 0 : index
    %247 = vector.load %arg12[%c1_151, %c0_152, %c0_153] : memref<3x1x32xf32, #tpu.memory_space<vmem>>, vector<1x1x32xf32>
    %248 = vector.shape_cast %247 : vector<1x1x32xf32> to vector<1x32xf32>
    %c1_154 = arith.constant 1 : index
    %c0_155 = arith.constant 0 : index
    %c0_156 = arith.constant 0 : index
    %249 = vector.load %arg13[%c1_154, %c0_155, %c0_156] : memref<3x32x32xf32, #tpu.memory_space<vmem>>, vector<1x32x32xf32>
    %250 = vector.shape_cast %249 : vector<1x32x32xf32> to vector<32x32xf32>
    %c1_157 = arith.constant 1 : index
    %c0_158 = arith.constant 0 : index
    %c0_159 = arith.constant 0 : index
    %251 = vector.load %arg14[%c1_157, %c0_158, %c0_159] : memref<3x1x32xf32, #tpu.memory_space<vmem>>, vector<1x1x32xf32>
    %252 = vector.shape_cast %251 : vector<1x1x32xf32> to vector<1x32xf32>
    %253 = vector.extract_strided_slice %246 {offsets = [0, 0], sizes = [32, 32], strides = [1, 1]} : vector<66x32xf32> to vector<32x32xf32>
    %cst_160 = arith.constant dense<0.000000e+00> : vector<8x32xf32>
    %254 = tpu.matmul %242, %253, %cst_160 {dimension_numbers = #tpu.dot_dimension_numbers<[1], [0], [0], [1], [0, 0, 1, 1], [], []>} : vector<8x32xf32>, vector<32x32xf32>, vector<8x32xf32> -> vector<8x32xf32>
    %255 = vector.extract_strided_slice %246 {offsets = [32, 0], sizes = [32, 32], strides = [1, 1]} : vector<66x32xf32> to vector<32x32xf32>
    %cst_161 = arith.constant dense<0.000000e+00> : vector<8x32xf32>
    %256 = tpu.matmul %242, %255, %cst_161 {dimension_numbers = #tpu.dot_dimension_numbers<[1], [0], [0], [1], [0, 0, 1, 1], [], []>} : vector<8x32xf32>, vector<32x32xf32>, vector<8x32xf32> -> vector<8x32xf32>
    %257 = vector.extract_strided_slice %246 {offsets = [64, 0], sizes = [1, 32], strides = [1, 1]} : vector<66x32xf32> to vector<1x32xf32>
    %258 = vector.extract_strided_slice %246 {offsets = [65, 0], sizes = [1, 32], strides = [1, 1]} : vector<66x32xf32> to vector<1x32xf32>
    %cst_162 = arith.constant 1.000000e+00 : f32
    %259 = vector.broadcast %cst_162 : f32 to vector<3x1xf32>
    %cst_163 = arith.constant 0.000000e+00 : f32
    %260 = vector.broadcast %cst_163 : f32 to vector<8x32xf32>
    %c0_164 = arith.constant 0 : index
    %c0_165 = arith.constant 0 : index
    %261 = vector.load %arg28[%c0_164, %c0_165] : memref<8x32xf32, #tpu.memory_space<vmem>>, vector<8x32xf32>
    tpu.vector_store %arg28[%c0_164, %c0_165], %260 {strides = array<i32>} : memref<8x32xf32, #tpu.memory_space<vmem>>, vector<8x32xf32>,
    %c0_i32_166 = arith.constant 0 : i32
    %c24_i32_167 = arith.constant 24 : i32
    %262 = arith.muli %c0_i32_166, %c24_i32_167 : i32
    %263 = tpu.assume_multiple %262, 8 : i32
    %264 = arith.index_cast %263 : i32 to index
    %c0_168 = arith.constant 0 : index
    %265 = vector.load %arg0[%264, %c0_168] : memref<24x1xi32, #tpu.memory_space<vmem>>, vector<24x1xi32>
    %266 = arith.index_cast %263 : i32 to index
    %c0_169 = arith.constant 0 : index
    %267 = vector.load %arg1[%266, %c0_169] : memref<24x1xi32, #tpu.memory_space<vmem>>, vector<24x1xi32>
    %268 = tpu.iota {dimensions = array<i32: 1>} : vector<24x8xi32>
    %269 = vector.broadcast %265 : vector<24x1xi32> to vector<24x8xi32>
    %270 = arith.cmpi eq, %269, %268 : vector<24x8xi32>
    %271 = arith.extui %270 : vector<24x8xi1> to vector<24x8xi32>
    %272 = arith.sitofp %271 : vector<24x8xi32> to vector<24x8xf32>
    %273 = vector.broadcast %267 : vector<24x1xi32> to vector<24x8xi32>
    %274 = arith.cmpi eq, %273, %268 : vector<24x8xi32>
    %275 = arith.extui %274 : vector<24x8xi1> to vector<24x8xi32>
    %276 = arith.sitofp %275 : vector<24x8xi32> to vector<24x8xf32>
    %277 = arith.subf %272, %276 : vector<24x8xf32>
    %cst_170 = arith.constant dense<0.000000e+00> : vector<24x3xf32>
    %278 = tpu.matmul %277, %243, %cst_170 {dimension_numbers = #tpu.dot_dimension_numbers<[1], [0], [0], [1], [0, 0, 1, 1], [], []>} : vector<24x8xf32>, vector<8x3xf32>, vector<24x3xf32> -> vector<24x3xf32>
    %cst_171 = arith.constant dense<0.000000e+00> : vector<24x3xf32>
    %279 = tpu.matmul %277, %244, %cst_171 {dimension_numbers = #tpu.dot_dimension_numbers<[1], [0], [0], [1], [0, 0, 1, 1], [], []>} : vector<24x8xf32>, vector<8x3xf32>, vector<24x3xf32> -> vector<24x3xf32>
    %280 = arith.mulf %278, %278 : vector<24x3xf32>
    %cst_172 = arith.constant dense<0.000000e+00> : vector<24x1xf32>
    %281 = tpu.matmul %280, %259, %cst_172 {dimension_numbers = #tpu.dot_dimension_numbers<[1], [0], [0], [1], [0, 0, 1, 1], [], []>} : vector<24x3xf32>, vector<3x1xf32>, vector<24x1xf32> -> vector<24x1xf32>
    %282 = arith.mulf %279, %279 : vector<24x3xf32>
    %cst_173 = arith.constant dense<0.000000e+00> : vector<24x1xf32>
    %283 = tpu.matmul %282, %259, %cst_173 {dimension_numbers = #tpu.dot_dimension_numbers<[1], [0], [0], [1], [0, 0, 1, 1], [], []>} : vector<24x3xf32>, vector<3x1xf32>, vector<24x1xf32> -> vector<24x1xf32>
    %cst_174 = arith.constant dense<0.000000e+00> : vector<24x32xf32>
    %284 = tpu.matmul %272, %254, %cst_174 {dimension_numbers = #tpu.dot_dimension_numbers<[1], [0], [0], [1], [0, 0, 1, 1], [], []>} : vector<24x8xf32>, vector<8x32xf32>, vector<24x32xf32> -> vector<24x32xf32>
    %cst_175 = arith.constant dense<0.000000e+00> : vector<24x32xf32>
    %285 = tpu.matmul %276, %256, %cst_175 {dimension_numbers = #tpu.dot_dimension_numbers<[1], [0], [0], [1], [0, 0, 1, 1], [], []>} : vector<24x8xf32>, vector<8x32xf32>, vector<24x32xf32> -> vector<24x32xf32>
    %286 = arith.addf %284, %285 : vector<24x32xf32>
    %287 = vector.broadcast %281 : vector<24x1xf32> to vector<24x32xf32>
    %288 = vector.broadcast %257 : vector<1x32xf32> to vector<24x32xf32>
    %289 = arith.mulf %287, %288 : vector<24x32xf32>
    %290 = arith.addf %286, %289 : vector<24x32xf32>
    %291 = vector.broadcast %283 : vector<24x1xf32> to vector<24x32xf32>
    %292 = vector.broadcast %258 : vector<1x32xf32> to vector<24x32xf32>
    %293 = arith.mulf %291, %292 : vector<24x32xf32>
    %294 = arith.addf %290, %293 : vector<24x32xf32>
    %295 = vector.broadcast %248 : vector<1x32xf32> to vector<24x32xf32>
    %296 = arith.addf %294, %295 : vector<24x32xf32>
    %297 = arith.negf %296 : vector<24x32xf32>
    %298 = math.exp %297 : vector<24x32xf32>
    %cst_176 = arith.constant 1.000000e+00 : f32
    %299 = vector.broadcast %cst_176 : f32 to vector<24x32xf32>
    %300 = arith.addf %299, %298 : vector<24x32xf32>
    %301 = arith.divf %299, %300 : vector<24x32xf32>
    %302 = arith.mulf %296, %301 : vector<24x32xf32>
    %cst_177 = arith.constant dense<0.000000e+00> : vector<24x32xf32>
    %303 = tpu.matmul %302, %250, %cst_177 {dimension_numbers = #tpu.dot_dimension_numbers<[1], [0], [0], [1], [0, 0, 1, 1], [], []>} : vector<24x32xf32>, vector<32x32xf32>, vector<24x32xf32> -> vector<24x32xf32>
    %304 = vector.broadcast %252 : vector<1x32xf32> to vector<24x32xf32>
    %305 = arith.addf %303, %304 : vector<24x32xf32>
    %306 = arith.negf %305 : vector<24x32xf32>
    %307 = math.exp %306 : vector<24x32xf32>
    %cst_178 = arith.constant 1.000000e+00 : f32
    %308 = vector.broadcast %cst_178 : f32 to vector<24x32xf32>
    %309 = arith.addf %308, %307 : vector<24x32xf32>
    %310 = arith.divf %308, %309 : vector<24x32xf32>
    %311 = arith.mulf %305, %310 : vector<24x32xf32>
    %312 = arith.index_cast %c0_i32_166 : i32 to index
    %c0_179 = arith.constant 0 : index
    %313 = vector.load %arg2[%312, %c0_179] : memref<1x24xi32, #tpu.memory_space<vmem>>, vector<1x24xi32>
    %314 = tpu.iota {dimensions = array<i32: 0>} : vector<8x24xi32>
    %315 = vector.broadcast %313 : vector<1x24xi32> to vector<8x24xi32>
    %316 = arith.cmpi eq, %315, %314 : vector<8x24xi32>
    %317 = arith.extui %316 : vector<8x24xi1> to vector<8x24xi32>
    %318 = arith.sitofp %317 : vector<8x24xi32> to vector<8x24xf32>
    %c0_180 = arith.constant 0 : index
    %c0_181 = arith.constant 0 : index
    %319 = vector.load %arg28[%c0_180, %c0_181] : memref<8x32xf32, #tpu.memory_space<vmem>>, vector<8x32xf32>
    %cst_182 = arith.constant dense<0.000000e+00> : vector<8x32xf32>
    %320 = tpu.matmul %318, %311, %cst_182 {dimension_numbers = #tpu.dot_dimension_numbers<[1], [0], [0], [1], [0, 0, 1, 1], [], []>} : vector<8x24xf32>, vector<24x32xf32>, vector<8x32xf32> -> vector<8x32xf32>
    %321 = arith.addf %319, %320 : vector<8x32xf32>
    %c0_183 = arith.constant 0 : index
    %c0_184 = arith.constant 0 : index
    %322 = vector.load %arg28[%c0_183, %c0_184] : memref<8x32xf32, #tpu.memory_space<vmem>>, vector<8x32xf32>
    tpu.vector_store %arg28[%c0_183, %c0_184], %321 {strides = array<i32>} : memref<8x32xf32, #tpu.memory_space<vmem>>, vector<8x32xf32>,
    %c1_i32_185 = arith.constant 1 : i32
    %c0_186 = arith.constant 0 : index
    %c0_187 = arith.constant 0 : index
    %323 = vector.load %arg28[%c0_186, %c0_187] : memref<8x32xf32, #tpu.memory_space<vmem>>, vector<8x32xf32>
    %cst_188 = arith.constant 1.000000e+00 : f32
    %324 = vector.broadcast %cst_188 : f32 to vector<8x32xf32>
    %325 = arith.mulf %323, %324 : vector<8x32xf32>
    %c0_189 = arith.constant 0 : index
    %c0_190 = arith.constant 0 : index
    %326 = vector.load %arg25[%c0_189, %c0_190] : memref<8x32xf32, #tpu.memory_space<vmem>>, vector<8x32xf32>
    %c1_191 = arith.constant 1 : index
    %c0_192 = arith.constant 0 : index
    %c0_193 = arith.constant 0 : index
    %327 = vector.load %arg15[%c1_191, %c0_192, %c0_193] : memref<3x64x32xf32, #tpu.memory_space<vmem>>, vector<1x64x32xf32>
    %328 = vector.shape_cast %327 : vector<1x64x32xf32> to vector<64x32xf32>
    %329 = vector.extract_strided_slice %328 {offsets = [0, 0], sizes = [32, 32], strides = [1, 1]} : vector<64x32xf32> to vector<32x32xf32>
    %cst_194 = arith.constant dense<0.000000e+00> : vector<8x32xf32>
    %330 = tpu.matmul %326, %329, %cst_194 {dimension_numbers = #tpu.dot_dimension_numbers<[1], [0], [0], [1], [0, 0, 1, 1], [], []>} : vector<8x32xf32>, vector<32x32xf32>, vector<8x32xf32> -> vector<8x32xf32>
    %331 = vector.extract_strided_slice %328 {offsets = [32, 0], sizes = [32, 32], strides = [1, 1]} : vector<64x32xf32> to vector<32x32xf32>
    %cst_195 = arith.constant dense<0.000000e+00> : vector<8x32xf32>
    %332 = tpu.matmul %325, %331, %cst_195 {dimension_numbers = #tpu.dot_dimension_numbers<[1], [0], [0], [1], [0, 0, 1, 1], [], []>} : vector<8x32xf32>, vector<32x32xf32>, vector<8x32xf32> -> vector<8x32xf32>
    %333 = arith.addf %330, %332 : vector<8x32xf32>
    %c1_196 = arith.constant 1 : index
    %c0_197 = arith.constant 0 : index
    %c0_198 = arith.constant 0 : index
    %334 = vector.load %arg16[%c1_196, %c0_197, %c0_198] : memref<3x1x32xf32, #tpu.memory_space<vmem>>, vector<1x1x32xf32>
    %335 = vector.shape_cast %334 : vector<1x1x32xf32> to vector<1x32xf32>
    %336 = vector.broadcast %335 : vector<1x32xf32> to vector<8x32xf32>
    %337 = arith.addf %333, %336 : vector<8x32xf32>
    %338 = arith.negf %337 : vector<8x32xf32>
    %339 = math.exp %338 : vector<8x32xf32>
    %cst_199 = arith.constant 1.000000e+00 : f32
    %340 = vector.broadcast %cst_199 : f32 to vector<8x32xf32>
    %341 = arith.addf %340, %339 : vector<8x32xf32>
    %342 = arith.divf %340, %341 : vector<8x32xf32>
    %343 = arith.mulf %337, %342 : vector<8x32xf32>
    %c1_200 = arith.constant 1 : index
    %c0_201 = arith.constant 0 : index
    %c0_202 = arith.constant 0 : index
    %344 = vector.load %arg17[%c1_200, %c0_201, %c0_202] : memref<3x32x32xf32, #tpu.memory_space<vmem>>, vector<1x32x32xf32>
    %345 = vector.shape_cast %344 : vector<1x32x32xf32> to vector<32x32xf32>
    %cst_203 = arith.constant dense<0.000000e+00> : vector<8x32xf32>
    %346 = tpu.matmul %343, %345, %cst_203 {dimension_numbers = #tpu.dot_dimension_numbers<[1], [0], [0], [1], [0, 0, 1, 1], [], []>} : vector<8x32xf32>, vector<32x32xf32>, vector<8x32xf32> -> vector<8x32xf32>
    %347 = arith.addf %326, %346 : vector<8x32xf32>
    %c1_204 = arith.constant 1 : index
    %c0_205 = arith.constant 0 : index
    %c0_206 = arith.constant 0 : index
    %348 = vector.load %arg18[%c1_204, %c0_205, %c0_206] : memref<3x1x32xf32, #tpu.memory_space<vmem>>, vector<1x1x32xf32>
    %349 = vector.shape_cast %348 : vector<1x1x32xf32> to vector<1x32xf32>
    %350 = vector.broadcast %349 : vector<1x32xf32> to vector<8x32xf32>
    %351 = arith.addf %347, %350 : vector<8x32xf32>
    %c0_207 = arith.constant 0 : index
    %c0_208 = arith.constant 0 : index
    %352 = vector.load %arg25[%c0_207, %c0_208] : memref<8x32xf32, #tpu.memory_space<vmem>>, vector<8x32xf32>
    tpu.vector_store %arg25[%c0_207, %c0_208], %351 {strides = array<i32>} : memref<8x32xf32, #tpu.memory_space<vmem>>, vector<8x32xf32>,
    %c0_209 = arith.constant 0 : index
    %c0_210 = arith.constant 0 : index
    %353 = vector.load %arg25[%c0_209, %c0_210] : memref<8x32xf32, #tpu.memory_space<vmem>>, vector<8x32xf32>
    %c0_211 = arith.constant 0 : index
    %c0_212 = arith.constant 0 : index
    %354 = vector.load %arg26[%c0_211, %c0_212] : memref<8x3xf32, #tpu.memory_space<vmem>>, vector<8x3xf32>
    %c0_213 = arith.constant 0 : index
    %c0_214 = arith.constant 0 : index
    %355 = vector.load %arg27[%c0_213, %c0_214] : memref<8x3xf32, #tpu.memory_space<vmem>>, vector<8x3xf32>
    %c1_215 = arith.constant 1 : index
    %c0_216 = arith.constant 0 : index
    %c0_217 = arith.constant 0 : index
    %356 = vector.load %arg19[%c1_215, %c0_216, %c0_217] : memref<3x66x32xf32, #tpu.memory_space<vmem>>, vector<1x66x32xf32>
    %357 = vector.shape_cast %356 : vector<1x66x32xf32> to vector<66x32xf32>
    %c1_218 = arith.constant 1 : index
    %c0_219 = arith.constant 0 : index
    %c0_220 = arith.constant 0 : index
    %358 = vector.load %arg20[%c1_218, %c0_219, %c0_220] : memref<3x1x32xf32, #tpu.memory_space<vmem>>, vector<1x1x32xf32>
    %359 = vector.shape_cast %358 : vector<1x1x32xf32> to vector<1x32xf32>
    %c1_221 = arith.constant 1 : index
    %c0_222 = arith.constant 0 : index
    %c0_223 = arith.constant 0 : index
    %360 = vector.load %arg21[%c1_221, %c0_222, %c0_223] : memref<3x32x32xf32, #tpu.memory_space<vmem>>, vector<1x32x32xf32>
    %361 = vector.shape_cast %360 : vector<1x32x32xf32> to vector<32x32xf32>
    %c1_224 = arith.constant 1 : index
    %c0_225 = arith.constant 0 : index
    %c0_226 = arith.constant 0 : index
    %362 = vector.load %arg22[%c1_224, %c0_225, %c0_226] : memref<3x1x32xf32, #tpu.memory_space<vmem>>, vector<1x1x32xf32>
    %363 = vector.shape_cast %362 : vector<1x1x32xf32> to vector<1x32xf32>
    %c1_227 = arith.constant 1 : index
    %c0_228 = arith.constant 0 : index
    %c0_229 = arith.constant 0 : index
    %364 = vector.load %arg23[%c1_227, %c0_228, %c0_229] : memref<3x32x1xf32, #tpu.memory_space<vmem>>, vector<1x32x1xf32>
    %365 = vector.shape_cast %364 : vector<1x32x1xf32> to vector<32x1xf32>
    %366 = vector.extract_strided_slice %357 {offsets = [0, 0], sizes = [32, 32], strides = [1, 1]} : vector<66x32xf32> to vector<32x32xf32>
    %cst_230 = arith.constant dense<0.000000e+00> : vector<8x32xf32>
    %367 = tpu.matmul %353, %366, %cst_230 {dimension_numbers = #tpu.dot_dimension_numbers<[1], [0], [0], [1], [0, 0, 1, 1], [], []>} : vector<8x32xf32>, vector<32x32xf32>, vector<8x32xf32> -> vector<8x32xf32>
    %368 = vector.extract_strided_slice %357 {offsets = [32, 0], sizes = [32, 32], strides = [1, 1]} : vector<66x32xf32> to vector<32x32xf32>
    %cst_231 = arith.constant dense<0.000000e+00> : vector<8x32xf32>
    %369 = tpu.matmul %353, %368, %cst_231 {dimension_numbers = #tpu.dot_dimension_numbers<[1], [0], [0], [1], [0, 0, 1, 1], [], []>} : vector<8x32xf32>, vector<32x32xf32>, vector<8x32xf32> -> vector<8x32xf32>
    %370 = vector.extract_strided_slice %357 {offsets = [64, 0], sizes = [1, 32], strides = [1, 1]} : vector<66x32xf32> to vector<1x32xf32>
    %371 = vector.extract_strided_slice %357 {offsets = [65, 0], sizes = [1, 32], strides = [1, 1]} : vector<66x32xf32> to vector<1x32xf32>
    %cst_232 = arith.constant 1.000000e+00 : f32
    %372 = vector.broadcast %cst_232 : f32 to vector<3x1xf32>
    %cst_233 = arith.constant 0.000000e+00 : f32
    %373 = vector.broadcast %cst_233 : f32 to vector<8x3xf32>
    %c0_234 = arith.constant 0 : index
    %c0_235 = arith.constant 0 : index
    %374 = vector.load %arg29[%c0_234, %c0_235] : memref<8x3xf32, #tpu.memory_space<vmem>>, vector<8x3xf32>
    tpu.vector_store %arg29[%c0_234, %c0_235], %373 {strides = array<i32>} : memref<8x3xf32, #tpu.memory_space<vmem>>, vector<8x3xf32>,
    %c0_i32_236 = arith.constant 0 : i32
    %c24_i32_237 = arith.constant 24 : i32
    %375 = arith.muli %c0_i32_236, %c24_i32_237 : i32
    %376 = tpu.assume_multiple %375, 8 : i32
    %377 = arith.index_cast %376 : i32 to index
    %c0_238 = arith.constant 0 : index
    %378 = vector.load %arg0[%377, %c0_238] : memref<24x1xi32, #tpu.memory_space<vmem>>, vector<24x1xi32>
    %379 = arith.index_cast %376 : i32 to index
    %c0_239 = arith.constant 0 : index
    %380 = vector.load %arg1[%379, %c0_239] : memref<24x1xi32, #tpu.memory_space<vmem>>, vector<24x1xi32>
    %381 = tpu.iota {dimensions = array<i32: 1>} : vector<24x8xi32>
    %382 = vector.broadcast %378 : vector<24x1xi32> to vector<24x8xi32>
    %383 = arith.cmpi eq, %382, %381 : vector<24x8xi32>
    %384 = arith.extui %383 : vector<24x8xi1> to vector<24x8xi32>
    %385 = arith.sitofp %384 : vector<24x8xi32> to vector<24x8xf32>
    %386 = vector.broadcast %380 : vector<24x1xi32> to vector<24x8xi32>
    %387 = arith.cmpi eq, %386, %381 : vector<24x8xi32>
    %388 = arith.extui %387 : vector<24x8xi1> to vector<24x8xi32>
    %389 = arith.sitofp %388 : vector<24x8xi32> to vector<24x8xf32>
    %390 = arith.subf %385, %389 : vector<24x8xf32>
    %cst_240 = arith.constant dense<0.000000e+00> : vector<24x3xf32>
    %391 = tpu.matmul %390, %354, %cst_240 {dimension_numbers = #tpu.dot_dimension_numbers<[1], [0], [0], [1], [0, 0, 1, 1], [], []>} : vector<24x8xf32>, vector<8x3xf32>, vector<24x3xf32> -> vector<24x3xf32>
    %cst_241 = arith.constant dense<0.000000e+00> : vector<24x3xf32>
    %392 = tpu.matmul %390, %355, %cst_241 {dimension_numbers = #tpu.dot_dimension_numbers<[1], [0], [0], [1], [0, 0, 1, 1], [], []>} : vector<24x8xf32>, vector<8x3xf32>, vector<24x3xf32> -> vector<24x3xf32>
    %393 = arith.mulf %391, %391 : vector<24x3xf32>
    %cst_242 = arith.constant dense<0.000000e+00> : vector<24x1xf32>
    %394 = tpu.matmul %393, %372, %cst_242 {dimension_numbers = #tpu.dot_dimension_numbers<[1], [0], [0], [1], [0, 0, 1, 1], [], []>} : vector<24x3xf32>, vector<3x1xf32>, vector<24x1xf32> -> vector<24x1xf32>
    %395 = arith.mulf %392, %392 : vector<24x3xf32>
    %cst_243 = arith.constant dense<0.000000e+00> : vector<24x1xf32>
    %396 = tpu.matmul %395, %372, %cst_243 {dimension_numbers = #tpu.dot_dimension_numbers<[1], [0], [0], [1], [0, 0, 1, 1], [], []>} : vector<24x3xf32>, vector<3x1xf32>, vector<24x1xf32> -> vector<24x1xf32>
    %cst_244 = arith.constant dense<0.000000e+00> : vector<24x32xf32>
    %397 = tpu.matmul %385, %367, %cst_244 {dimension_numbers = #tpu.dot_dimension_numbers<[1], [0], [0], [1], [0, 0, 1, 1], [], []>} : vector<24x8xf32>, vector<8x32xf32>, vector<24x32xf32> -> vector<24x32xf32>
    %cst_245 = arith.constant dense<0.000000e+00> : vector<24x32xf32>
    %398 = tpu.matmul %389, %369, %cst_245 {dimension_numbers = #tpu.dot_dimension_numbers<[1], [0], [0], [1], [0, 0, 1, 1], [], []>} : vector<24x8xf32>, vector<8x32xf32>, vector<24x32xf32> -> vector<24x32xf32>
    %399 = arith.addf %397, %398 : vector<24x32xf32>
    %400 = vector.broadcast %394 : vector<24x1xf32> to vector<24x32xf32>
    %401 = vector.broadcast %370 : vector<1x32xf32> to vector<24x32xf32>
    %402 = arith.mulf %400, %401 : vector<24x32xf32>
    %403 = arith.addf %399, %402 : vector<24x32xf32>
    %404 = vector.broadcast %396 : vector<24x1xf32> to vector<24x32xf32>
    %405 = vector.broadcast %371 : vector<1x32xf32> to vector<24x32xf32>
    %406 = arith.mulf %404, %405 : vector<24x32xf32>
    %407 = arith.addf %403, %406 : vector<24x32xf32>
    %408 = vector.broadcast %359 : vector<1x32xf32> to vector<24x32xf32>
    %409 = arith.addf %407, %408 : vector<24x32xf32>
    %410 = arith.negf %409 : vector<24x32xf32>
    %411 = math.exp %410 : vector<24x32xf32>
    %cst_246 = arith.constant 1.000000e+00 : f32
    %412 = vector.broadcast %cst_246 : f32 to vector<24x32xf32>
    %413 = arith.addf %412, %411 : vector<24x32xf32>
    %414 = arith.divf %412, %413 : vector<24x32xf32>
    %415 = arith.mulf %409, %414 : vector<24x32xf32>
    %cst_247 = arith.constant dense<0.000000e+00> : vector<24x32xf32>
    %416 = tpu.matmul %415, %361, %cst_247 {dimension_numbers = #tpu.dot_dimension_numbers<[1], [0], [0], [1], [0, 0, 1, 1], [], []>} : vector<24x32xf32>, vector<32x32xf32>, vector<24x32xf32> -> vector<24x32xf32>
    %417 = vector.broadcast %363 : vector<1x32xf32> to vector<24x32xf32>
    %418 = arith.addf %416, %417 : vector<24x32xf32>
    %419 = arith.negf %418 : vector<24x32xf32>
    %420 = math.exp %419 : vector<24x32xf32>
    %cst_248 = arith.constant 1.000000e+00 : f32
    %421 = vector.broadcast %cst_248 : f32 to vector<24x32xf32>
    %422 = arith.addf %421, %420 : vector<24x32xf32>
    %423 = arith.divf %421, %422 : vector<24x32xf32>
    %424 = arith.mulf %418, %423 : vector<24x32xf32>
    %cst_249 = arith.constant dense<0.000000e+00> : vector<24x1xf32>
    %425 = tpu.matmul %424, %365, %cst_249 {dimension_numbers = #tpu.dot_dimension_numbers<[1], [0], [0], [1], [0, 0, 1, 1], [], []>} : vector<24x32xf32>, vector<32x1xf32>, vector<24x1xf32> -> vector<24x1xf32>
    %426 = math.tanh %425 : vector<24x1xf32>
    %cst_250 = arith.constant 9.99999993E-9 : f32
    %427 = vector.broadcast %cst_250 : f32 to vector<24x1xf32>
    %428 = arith.addf %394, %427 : vector<24x1xf32>
    %429 = math.sqrt %428 : vector<24x1xf32>
    %cst_251 = arith.constant 1.000000e+00 : f32
    %430 = vector.broadcast %cst_251 : f32 to vector<24x1xf32>
    %431 = arith.addf %429, %430 : vector<24x1xf32>
    %432 = vector.broadcast %431 : vector<24x1xf32> to vector<24x3xf32>
    %433 = arith.divf %391, %432 : vector<24x3xf32>
    %434 = vector.broadcast %426 : vector<24x1xf32> to vector<24x3xf32>
    %435 = arith.mulf %433, %434 : vector<24x3xf32>
    %cst_252 = arith.constant 1.500000e+01 : f32
    %436 = vector.broadcast %cst_252 : f32 to vector<24x3xf32>
    %437 = arith.mulf %435, %436 : vector<24x3xf32>
    %438 = arith.index_cast %c0_i32_236 : i32 to index
    %c0_253 = arith.constant 0 : index
    %439 = vector.load %arg2[%438, %c0_253] : memref<1x24xi32, #tpu.memory_space<vmem>>, vector<1x24xi32>
    %440 = tpu.iota {dimensions = array<i32: 0>} : vector<8x24xi32>
    %441 = vector.broadcast %439 : vector<1x24xi32> to vector<8x24xi32>
    %442 = arith.cmpi eq, %441, %440 : vector<8x24xi32>
    %443 = arith.extui %442 : vector<8x24xi1> to vector<8x24xi32>
    %444 = arith.sitofp %443 : vector<8x24xi32> to vector<8x24xf32>
    %c0_254 = arith.constant 0 : index
    %c0_255 = arith.constant 0 : index
    %445 = vector.load %arg29[%c0_254, %c0_255] : memref<8x3xf32, #tpu.memory_space<vmem>>, vector<8x3xf32>
    %cst_256 = arith.constant dense<0.000000e+00> : vector<8x3xf32>
    %446 = tpu.matmul %444, %437, %cst_256 {dimension_numbers = #tpu.dot_dimension_numbers<[1], [0], [0], [1], [0, 0, 1, 1], [], []>} : vector<8x24xf32>, vector<24x3xf32>, vector<8x3xf32> -> vector<8x3xf32>
    %447 = arith.addf %445, %446 : vector<8x3xf32>
    %c0_257 = arith.constant 0 : index
    %c0_258 = arith.constant 0 : index
    %448 = vector.load %arg29[%c0_257, %c0_258] : memref<8x3xf32, #tpu.memory_space<vmem>>, vector<8x3xf32>
    tpu.vector_store %arg29[%c0_257, %c0_258], %447 {strides = array<i32>} : memref<8x3xf32, #tpu.memory_space<vmem>>, vector<8x3xf32>,
    %c1_i32_259 = arith.constant 1 : i32
    %c0_260 = arith.constant 0 : index
    %c0_261 = arith.constant 0 : index
    %449 = vector.load %arg26[%c0_260, %c0_261] : memref<8x3xf32, #tpu.memory_space<vmem>>, vector<8x3xf32>
    %c0_262 = arith.constant 0 : index
    %c0_263 = arith.constant 0 : index
    %450 = vector.load %arg29[%c0_262, %c0_263] : memref<8x3xf32, #tpu.memory_space<vmem>>, vector<8x3xf32>
    %cst_264 = arith.constant 1.000000e+00 : f32
    %451 = vector.broadcast %cst_264 : f32 to vector<8x3xf32>
    %452 = arith.mulf %450, %451 : vector<8x3xf32>
    %453 = arith.addf %449, %452 : vector<8x3xf32>
    %c0_265 = arith.constant 0 : index
    %c0_266 = arith.constant 0 : index
    %454 = vector.load %arg26[%c0_265, %c0_266] : memref<8x3xf32, #tpu.memory_space<vmem>>, vector<8x3xf32>
    tpu.vector_store %arg26[%c0_265, %c0_266], %453 {strides = array<i32>} : memref<8x3xf32, #tpu.memory_space<vmem>>, vector<8x3xf32>,
    %c0_267 = arith.constant 0 : index
    %c0_268 = arith.constant 0 : index
    %455 = vector.load %arg25[%c0_267, %c0_268] : memref<8x32xf32, #tpu.memory_space<vmem>>, vector<8x32xf32>
    %c0_269 = arith.constant 0 : index
    %c0_270 = arith.constant 0 : index
    %456 = vector.load %arg26[%c0_269, %c0_270] : memref<8x3xf32, #tpu.memory_space<vmem>>, vector<8x3xf32>
    %c0_271 = arith.constant 0 : index
    %c0_272 = arith.constant 0 : index
    %457 = vector.load %arg27[%c0_271, %c0_272] : memref<8x3xf32, #tpu.memory_space<vmem>>, vector<8x3xf32>
    %c2 = arith.constant 2 : index
    %c0_273 = arith.constant 0 : index
    %c0_274 = arith.constant 0 : index
    %458 = vector.load %arg11[%c2, %c0_273, %c0_274] : memref<3x66x32xf32, #tpu.memory_space<vmem>>, vector<1x66x32xf32>
    %459 = vector.shape_cast %458 : vector<1x66x32xf32> to vector<66x32xf32>
    %c2_275 = arith.constant 2 : index
    %c0_276 = arith.constant 0 : index
    %c0_277 = arith.constant 0 : index
    %460 = vector.load %arg12[%c2_275, %c0_276, %c0_277] : memref<3x1x32xf32, #tpu.memory_space<vmem>>, vector<1x1x32xf32>
    %461 = vector.shape_cast %460 : vector<1x1x32xf32> to vector<1x32xf32>
    %c2_278 = arith.constant 2 : index
    %c0_279 = arith.constant 0 : index
    %c0_280 = arith.constant 0 : index
    %462 = vector.load %arg13[%c2_278, %c0_279, %c0_280] : memref<3x32x32xf32, #tpu.memory_space<vmem>>, vector<1x32x32xf32>
    %463 = vector.shape_cast %462 : vector<1x32x32xf32> to vector<32x32xf32>
    %c2_281 = arith.constant 2 : index
    %c0_282 = arith.constant 0 : index
    %c0_283 = arith.constant 0 : index
    %464 = vector.load %arg14[%c2_281, %c0_282, %c0_283] : memref<3x1x32xf32, #tpu.memory_space<vmem>>, vector<1x1x32xf32>
    %465 = vector.shape_cast %464 : vector<1x1x32xf32> to vector<1x32xf32>
    %466 = vector.extract_strided_slice %459 {offsets = [0, 0], sizes = [32, 32], strides = [1, 1]} : vector<66x32xf32> to vector<32x32xf32>
    %cst_284 = arith.constant dense<0.000000e+00> : vector<8x32xf32>
    %467 = tpu.matmul %455, %466, %cst_284 {dimension_numbers = #tpu.dot_dimension_numbers<[1], [0], [0], [1], [0, 0, 1, 1], [], []>} : vector<8x32xf32>, vector<32x32xf32>, vector<8x32xf32> -> vector<8x32xf32>
    %468 = vector.extract_strided_slice %459 {offsets = [32, 0], sizes = [32, 32], strides = [1, 1]} : vector<66x32xf32> to vector<32x32xf32>
    %cst_285 = arith.constant dense<0.000000e+00> : vector<8x32xf32>
    %469 = tpu.matmul %455, %468, %cst_285 {dimension_numbers = #tpu.dot_dimension_numbers<[1], [0], [0], [1], [0, 0, 1, 1], [], []>} : vector<8x32xf32>, vector<32x32xf32>, vector<8x32xf32> -> vector<8x32xf32>
    %470 = vector.extract_strided_slice %459 {offsets = [64, 0], sizes = [1, 32], strides = [1, 1]} : vector<66x32xf32> to vector<1x32xf32>
    %471 = vector.extract_strided_slice %459 {offsets = [65, 0], sizes = [1, 32], strides = [1, 1]} : vector<66x32xf32> to vector<1x32xf32>
    %cst_286 = arith.constant 1.000000e+00 : f32
    %472 = vector.broadcast %cst_286 : f32 to vector<3x1xf32>
    %cst_287 = arith.constant 0.000000e+00 : f32
    %473 = vector.broadcast %cst_287 : f32 to vector<8x32xf32>
    %c0_288 = arith.constant 0 : index
    %c0_289 = arith.constant 0 : index
    %474 = vector.load %arg28[%c0_288, %c0_289] : memref<8x32xf32, #tpu.memory_space<vmem>>, vector<8x32xf32>
    tpu.vector_store %arg28[%c0_288, %c0_289], %473 {strides = array<i32>} : memref<8x32xf32, #tpu.memory_space<vmem>>, vector<8x32xf32>,
    %c0_i32_290 = arith.constant 0 : i32
    %c24_i32_291 = arith.constant 24 : i32
    %475 = arith.muli %c0_i32_290, %c24_i32_291 : i32
    %476 = tpu.assume_multiple %475, 8 : i32
    %477 = arith.index_cast %476 : i32 to index
    %c0_292 = arith.constant 0 : index
    %478 = vector.load %arg0[%477, %c0_292] : memref<24x1xi32, #tpu.memory_space<vmem>>, vector<24x1xi32>
    %479 = arith.index_cast %476 : i32 to index
    %c0_293 = arith.constant 0 : index
    %480 = vector.load %arg1[%479, %c0_293] : memref<24x1xi32, #tpu.memory_space<vmem>>, vector<24x1xi32>
    %481 = tpu.iota {dimensions = array<i32: 1>} : vector<24x8xi32>
    %482 = vector.broadcast %478 : vector<24x1xi32> to vector<24x8xi32>
    %483 = arith.cmpi eq, %482, %481 : vector<24x8xi32>
    %484 = arith.extui %483 : vector<24x8xi1> to vector<24x8xi32>
    %485 = arith.sitofp %484 : vector<24x8xi32> to vector<24x8xf32>
    %486 = vector.broadcast %480 : vector<24x1xi32> to vector<24x8xi32>
    %487 = arith.cmpi eq, %486, %481 : vector<24x8xi32>
    %488 = arith.extui %487 : vector<24x8xi1> to vector<24x8xi32>
    %489 = arith.sitofp %488 : vector<24x8xi32> to vector<24x8xf32>
    %490 = arith.subf %485, %489 : vector<24x8xf32>
    %cst_294 = arith.constant dense<0.000000e+00> : vector<24x3xf32>
    %491 = tpu.matmul %490, %456, %cst_294 {dimension_numbers = #tpu.dot_dimension_numbers<[1], [0], [0], [1], [0, 0, 1, 1], [], []>} : vector<24x8xf32>, vector<8x3xf32>, vector<24x3xf32> -> vector<24x3xf32>
    %cst_295 = arith.constant dense<0.000000e+00> : vector<24x3xf32>
    %492 = tpu.matmul %490, %457, %cst_295 {dimension_numbers = #tpu.dot_dimension_numbers<[1], [0], [0], [1], [0, 0, 1, 1], [], []>} : vector<24x8xf32>, vector<8x3xf32>, vector<24x3xf32> -> vector<24x3xf32>
    %493 = arith.mulf %491, %491 : vector<24x3xf32>
    %cst_296 = arith.constant dense<0.000000e+00> : vector<24x1xf32>
    %494 = tpu.matmul %493, %472, %cst_296 {dimension_numbers = #tpu.dot_dimension_numbers<[1], [0], [0], [1], [0, 0, 1, 1], [], []>} : vector<24x3xf32>, vector<3x1xf32>, vector<24x1xf32> -> vector<24x1xf32>
    %495 = arith.mulf %492, %492 : vector<24x3xf32>
    %cst_297 = arith.constant dense<0.000000e+00> : vector<24x1xf32>
    %496 = tpu.matmul %495, %472, %cst_297 {dimension_numbers = #tpu.dot_dimension_numbers<[1], [0], [0], [1], [0, 0, 1, 1], [], []>} : vector<24x3xf32>, vector<3x1xf32>, vector<24x1xf32> -> vector<24x1xf32>
    %cst_298 = arith.constant dense<0.000000e+00> : vector<24x32xf32>
    %497 = tpu.matmul %485, %467, %cst_298 {dimension_numbers = #tpu.dot_dimension_numbers<[1], [0], [0], [1], [0, 0, 1, 1], [], []>} : vector<24x8xf32>, vector<8x32xf32>, vector<24x32xf32> -> vector<24x32xf32>
    %cst_299 = arith.constant dense<0.000000e+00> : vector<24x32xf32>
    %498 = tpu.matmul %489, %469, %cst_299 {dimension_numbers = #tpu.dot_dimension_numbers<[1], [0], [0], [1], [0, 0, 1, 1], [], []>} : vector<24x8xf32>, vector<8x32xf32>, vector<24x32xf32> -> vector<24x32xf32>
    %499 = arith.addf %497, %498 : vector<24x32xf32>
    %500 = vector.broadcast %494 : vector<24x1xf32> to vector<24x32xf32>
    %501 = vector.broadcast %470 : vector<1x32xf32> to vector<24x32xf32>
    %502 = arith.mulf %500, %501 : vector<24x32xf32>
    %503 = arith.addf %499, %502 : vector<24x32xf32>
    %504 = vector.broadcast %496 : vector<24x1xf32> to vector<24x32xf32>
    %505 = vector.broadcast %471 : vector<1x32xf32> to vector<24x32xf32>
    %506 = arith.mulf %504, %505 : vector<24x32xf32>
    %507 = arith.addf %503, %506 : vector<24x32xf32>
    %508 = vector.broadcast %461 : vector<1x32xf32> to vector<24x32xf32>
    %509 = arith.addf %507, %508 : vector<24x32xf32>
    %510 = arith.negf %509 : vector<24x32xf32>
    %511 = math.exp %510 : vector<24x32xf32>
    %cst_300 = arith.constant 1.000000e+00 : f32
    %512 = vector.broadcast %cst_300 : f32 to vector<24x32xf32>
    %513 = arith.addf %512, %511 : vector<24x32xf32>
    %514 = arith.divf %512, %513 : vector<24x32xf32>
    %515 = arith.mulf %509, %514 : vector<24x32xf32>
    %cst_301 = arith.constant dense<0.000000e+00> : vector<24x32xf32>
    %516 = tpu.matmul %515, %463, %cst_301 {dimension_numbers = #tpu.dot_dimension_numbers<[1], [0], [0], [1], [0, 0, 1, 1], [], []>} : vector<24x32xf32>, vector<32x32xf32>, vector<24x32xf32> -> vector<24x32xf32>
    %517 = vector.broadcast %465 : vector<1x32xf32> to vector<24x32xf32>
    %518 = arith.addf %516, %517 : vector<24x32xf32>
    %519 = arith.negf %518 : vector<24x32xf32>
    %520 = math.exp %519 : vector<24x32xf32>
    %cst_302 = arith.constant 1.000000e+00 : f32
    %521 = vector.broadcast %cst_302 : f32 to vector<24x32xf32>
    %522 = arith.addf %521, %520 : vector<24x32xf32>
    %523 = arith.divf %521, %522 : vector<24x32xf32>
    %524 = arith.mulf %518, %523 : vector<24x32xf32>
    %525 = arith.index_cast %c0_i32_290 : i32 to index
    %c0_303 = arith.constant 0 : index
    %526 = vector.load %arg2[%525, %c0_303] : memref<1x24xi32, #tpu.memory_space<vmem>>, vector<1x24xi32>
    %527 = tpu.iota {dimensions = array<i32: 0>} : vector<8x24xi32>
    %528 = vector.broadcast %526 : vector<1x24xi32> to vector<8x24xi32>
    %529 = arith.cmpi eq, %528, %527 : vector<8x24xi32>
    %530 = arith.extui %529 : vector<8x24xi1> to vector<8x24xi32>
    %531 = arith.sitofp %530 : vector<8x24xi32> to vector<8x24xf32>
    %c0_304 = arith.constant 0 : index
    %c0_305 = arith.constant 0 : index
    %532 = vector.load %arg28[%c0_304, %c0_305] : memref<8x32xf32, #tpu.memory_space<vmem>>, vector<8x32xf32>
    %cst_306 = arith.constant dense<0.000000e+00> : vector<8x32xf32>
    %533 = tpu.matmul %531, %524, %cst_306 {dimension_numbers = #tpu.dot_dimension_numbers<[1], [0], [0], [1], [0, 0, 1, 1], [], []>} : vector<8x24xf32>, vector<24x32xf32>, vector<8x32xf32> -> vector<8x32xf32>
    %534 = arith.addf %532, %533 : vector<8x32xf32>
    %c0_307 = arith.constant 0 : index
    %c0_308 = arith.constant 0 : index
    %535 = vector.load %arg28[%c0_307, %c0_308] : memref<8x32xf32, #tpu.memory_space<vmem>>, vector<8x32xf32>
    tpu.vector_store %arg28[%c0_307, %c0_308], %534 {strides = array<i32>} : memref<8x32xf32, #tpu.memory_space<vmem>>, vector<8x32xf32>,
    %c1_i32_309 = arith.constant 1 : i32
    %c0_310 = arith.constant 0 : index
    %c0_311 = arith.constant 0 : index
    %536 = vector.load %arg28[%c0_310, %c0_311] : memref<8x32xf32, #tpu.memory_space<vmem>>, vector<8x32xf32>
    %cst_312 = arith.constant 1.000000e+00 : f32
    %537 = vector.broadcast %cst_312 : f32 to vector<8x32xf32>
    %538 = arith.mulf %536, %537 : vector<8x32xf32>
    %c0_313 = arith.constant 0 : index
    %c0_314 = arith.constant 0 : index
    %539 = vector.load %arg25[%c0_313, %c0_314] : memref<8x32xf32, #tpu.memory_space<vmem>>, vector<8x32xf32>
    %c2_315 = arith.constant 2 : index
    %c0_316 = arith.constant 0 : index
    %c0_317 = arith.constant 0 : index
    %540 = vector.load %arg15[%c2_315, %c0_316, %c0_317] : memref<3x64x32xf32, #tpu.memory_space<vmem>>, vector<1x64x32xf32>
    %541 = vector.shape_cast %540 : vector<1x64x32xf32> to vector<64x32xf32>
    %542 = vector.extract_strided_slice %541 {offsets = [0, 0], sizes = [32, 32], strides = [1, 1]} : vector<64x32xf32> to vector<32x32xf32>
    %cst_318 = arith.constant dense<0.000000e+00> : vector<8x32xf32>
    %543 = tpu.matmul %539, %542, %cst_318 {dimension_numbers = #tpu.dot_dimension_numbers<[1], [0], [0], [1], [0, 0, 1, 1], [], []>} : vector<8x32xf32>, vector<32x32xf32>, vector<8x32xf32> -> vector<8x32xf32>
    %544 = vector.extract_strided_slice %541 {offsets = [32, 0], sizes = [32, 32], strides = [1, 1]} : vector<64x32xf32> to vector<32x32xf32>
    %cst_319 = arith.constant dense<0.000000e+00> : vector<8x32xf32>
    %545 = tpu.matmul %538, %544, %cst_319 {dimension_numbers = #tpu.dot_dimension_numbers<[1], [0], [0], [1], [0, 0, 1, 1], [], []>} : vector<8x32xf32>, vector<32x32xf32>, vector<8x32xf32> -> vector<8x32xf32>
    %546 = arith.addf %543, %545 : vector<8x32xf32>
    %c2_320 = arith.constant 2 : index
    %c0_321 = arith.constant 0 : index
    %c0_322 = arith.constant 0 : index
    %547 = vector.load %arg16[%c2_320, %c0_321, %c0_322] : memref<3x1x32xf32, #tpu.memory_space<vmem>>, vector<1x1x32xf32>
    %548 = vector.shape_cast %547 : vector<1x1x32xf32> to vector<1x32xf32>
    %549 = vector.broadcast %548 : vector<1x32xf32> to vector<8x32xf32>
    %550 = arith.addf %546, %549 : vector<8x32xf32>
    %551 = arith.negf %550 : vector<8x32xf32>
    %552 = math.exp %551 : vector<8x32xf32>
    %cst_323 = arith.constant 1.000000e+00 : f32
    %553 = vector.broadcast %cst_323 : f32 to vector<8x32xf32>
    %554 = arith.addf %553, %552 : vector<8x32xf32>
    %555 = arith.divf %553, %554 : vector<8x32xf32>
    %556 = arith.mulf %550, %555 : vector<8x32xf32>
    %c2_324 = arith.constant 2 : index
    %c0_325 = arith.constant 0 : index
    %c0_326 = arith.constant 0 : index
    %557 = vector.load %arg17[%c2_324, %c0_325, %c0_326] : memref<3x32x32xf32, #tpu.memory_space<vmem>>, vector<1x32x32xf32>
    %558 = vector.shape_cast %557 : vector<1x32x32xf32> to vector<32x32xf32>
    %cst_327 = arith.constant dense<0.000000e+00> : vector<8x32xf32>
    %559 = tpu.matmul %556, %558, %cst_327 {dimension_numbers = #tpu.dot_dimension_numbers<[1], [0], [0], [1], [0, 0, 1, 1], [], []>} : vector<8x32xf32>, vector<32x32xf32>, vector<8x32xf32> -> vector<8x32xf32>
    %560 = arith.addf %539, %559 : vector<8x32xf32>
    %c2_328 = arith.constant 2 : index
    %c0_329 = arith.constant 0 : index
    %c0_330 = arith.constant 0 : index
    %561 = vector.load %arg18[%c2_328, %c0_329, %c0_330] : memref<3x1x32xf32, #tpu.memory_space<vmem>>, vector<1x1x32xf32>
    %562 = vector.shape_cast %561 : vector<1x1x32xf32> to vector<1x32xf32>
    %563 = vector.broadcast %562 : vector<1x32xf32> to vector<8x32xf32>
    %564 = arith.addf %560, %563 : vector<8x32xf32>
    %c0_331 = arith.constant 0 : index
    %c0_332 = arith.constant 0 : index
    %565 = vector.load %arg25[%c0_331, %c0_332] : memref<8x32xf32, #tpu.memory_space<vmem>>, vector<8x32xf32>
    tpu.vector_store %arg25[%c0_331, %c0_332], %564 {strides = array<i32>} : memref<8x32xf32, #tpu.memory_space<vmem>>, vector<8x32xf32>,
    %c0_333 = arith.constant 0 : index
    %c0_334 = arith.constant 0 : index
    %566 = vector.load %arg25[%c0_333, %c0_334] : memref<8x32xf32, #tpu.memory_space<vmem>>, vector<8x32xf32>
    %c0_335 = arith.constant 0 : index
    %c0_336 = arith.constant 0 : index
    %567 = vector.load %arg26[%c0_335, %c0_336] : memref<8x3xf32, #tpu.memory_space<vmem>>, vector<8x3xf32>
    %c0_337 = arith.constant 0 : index
    %c0_338 = arith.constant 0 : index
    %568 = vector.load %arg27[%c0_337, %c0_338] : memref<8x3xf32, #tpu.memory_space<vmem>>, vector<8x3xf32>
    %c2_339 = arith.constant 2 : index
    %c0_340 = arith.constant 0 : index
    %c0_341 = arith.constant 0 : index
    %569 = vector.load %arg19[%c2_339, %c0_340, %c0_341] : memref<3x66x32xf32, #tpu.memory_space<vmem>>, vector<1x66x32xf32>
    %570 = vector.shape_cast %569 : vector<1x66x32xf32> to vector<66x32xf32>
    %c2_342 = arith.constant 2 : index
    %c0_343 = arith.constant 0 : index
    %c0_344 = arith.constant 0 : index
    %571 = vector.load %arg20[%c2_342, %c0_343, %c0_344] : memref<3x1x32xf32, #tpu.memory_space<vmem>>, vector<1x1x32xf32>
    %572 = vector.shape_cast %571 : vector<1x1x32xf32> to vector<1x32xf32>
    %c2_345 = arith.constant 2 : index
    %c0_346 = arith.constant 0 : index
    %c0_347 = arith.constant 0 : index
    %573 = vector.load %arg21[%c2_345, %c0_346, %c0_347] : memref<3x32x32xf32, #tpu.memory_space<vmem>>, vector<1x32x32xf32>
    %574 = vector.shape_cast %573 : vector<1x32x32xf32> to vector<32x32xf32>
    %c2_348 = arith.constant 2 : index
    %c0_349 = arith.constant 0 : index
    %c0_350 = arith.constant 0 : index
    %575 = vector.load %arg22[%c2_348, %c0_349, %c0_350] : memref<3x1x32xf32, #tpu.memory_space<vmem>>, vector<1x1x32xf32>
    %576 = vector.shape_cast %575 : vector<1x1x32xf32> to vector<1x32xf32>
    %c2_351 = arith.constant 2 : index
    %c0_352 = arith.constant 0 : index
    %c0_353 = arith.constant 0 : index
    %577 = vector.load %arg23[%c2_351, %c0_352, %c0_353] : memref<3x32x1xf32, #tpu.memory_space<vmem>>, vector<1x32x1xf32>
    %578 = vector.shape_cast %577 : vector<1x32x1xf32> to vector<32x1xf32>
    %579 = vector.extract_strided_slice %570 {offsets = [0, 0], sizes = [32, 32], strides = [1, 1]} : vector<66x32xf32> to vector<32x32xf32>
    %cst_354 = arith.constant dense<0.000000e+00> : vector<8x32xf32>
    %580 = tpu.matmul %566, %579, %cst_354 {dimension_numbers = #tpu.dot_dimension_numbers<[1], [0], [0], [1], [0, 0, 1, 1], [], []>} : vector<8x32xf32>, vector<32x32xf32>, vector<8x32xf32> -> vector<8x32xf32>
    %581 = vector.extract_strided_slice %570 {offsets = [32, 0], sizes = [32, 32], strides = [1, 1]} : vector<66x32xf32> to vector<32x32xf32>
    %cst_355 = arith.constant dense<0.000000e+00> : vector<8x32xf32>
    %582 = tpu.matmul %566, %581, %cst_355 {dimension_numbers = #tpu.dot_dimension_numbers<[1], [0], [0], [1], [0, 0, 1, 1], [], []>} : vector<8x32xf32>, vector<32x32xf32>, vector<8x32xf32> -> vector<8x32xf32>
    %583 = vector.extract_strided_slice %570 {offsets = [64, 0], sizes = [1, 32], strides = [1, 1]} : vector<66x32xf32> to vector<1x32xf32>
    %584 = vector.extract_strided_slice %570 {offsets = [65, 0], sizes = [1, 32], strides = [1, 1]} : vector<66x32xf32> to vector<1x32xf32>
    %cst_356 = arith.constant 1.000000e+00 : f32
    %585 = vector.broadcast %cst_356 : f32 to vector<3x1xf32>
    %cst_357 = arith.constant 0.000000e+00 : f32
    %586 = vector.broadcast %cst_357 : f32 to vector<8x3xf32>
    %c0_358 = arith.constant 0 : index
    %c0_359 = arith.constant 0 : index
    %587 = vector.load %arg29[%c0_358, %c0_359] : memref<8x3xf32, #tpu.memory_space<vmem>>, vector<8x3xf32>
    tpu.vector_store %arg29[%c0_358, %c0_359], %586 {strides = array<i32>} : memref<8x3xf32, #tpu.memory_space<vmem>>, vector<8x3xf32>,
    %c0_i32_360 = arith.constant 0 : i32
    %c24_i32_361 = arith.constant 24 : i32
    %588 = arith.muli %c0_i32_360, %c24_i32_361 : i32
    %589 = tpu.assume_multiple %588, 8 : i32
    %590 = arith.index_cast %589 : i32 to index
    %c0_362 = arith.constant 0 : index
    %591 = vector.load %arg0[%590, %c0_362] : memref<24x1xi32, #tpu.memory_space<vmem>>, vector<24x1xi32>
    %592 = arith.index_cast %589 : i32 to index
    %c0_363 = arith.constant 0 : index
    %593 = vector.load %arg1[%592, %c0_363] : memref<24x1xi32, #tpu.memory_space<vmem>>, vector<24x1xi32>
    %594 = tpu.iota {dimensions = array<i32: 1>} : vector<24x8xi32>
    %595 = vector.broadcast %591 : vector<24x1xi32> to vector<24x8xi32>
    %596 = arith.cmpi eq, %595, %594 : vector<24x8xi32>
    %597 = arith.extui %596 : vector<24x8xi1> to vector<24x8xi32>
    %598 = arith.sitofp %597 : vector<24x8xi32> to vector<24x8xf32>
    %599 = vector.broadcast %593 : vector<24x1xi32> to vector<24x8xi32>
    %600 = arith.cmpi eq, %599, %594 : vector<24x8xi32>
    %601 = arith.extui %600 : vector<24x8xi1> to vector<24x8xi32>
    %602 = arith.sitofp %601 : vector<24x8xi32> to vector<24x8xf32>
    %603 = arith.subf %598, %602 : vector<24x8xf32>
    %cst_364 = arith.constant dense<0.000000e+00> : vector<24x3xf32>
    %604 = tpu.matmul %603, %567, %cst_364 {dimension_numbers = #tpu.dot_dimension_numbers<[1], [0], [0], [1], [0, 0, 1, 1], [], []>} : vector<24x8xf32>, vector<8x3xf32>, vector<24x3xf32> -> vector<24x3xf32>
    %cst_365 = arith.constant dense<0.000000e+00> : vector<24x3xf32>
    %605 = tpu.matmul %603, %568, %cst_365 {dimension_numbers = #tpu.dot_dimension_numbers<[1], [0], [0], [1], [0, 0, 1, 1], [], []>} : vector<24x8xf32>, vector<8x3xf32>, vector<24x3xf32> -> vector<24x3xf32>
    %606 = arith.mulf %604, %604 : vector<24x3xf32>
    %cst_366 = arith.constant dense<0.000000e+00> : vector<24x1xf32>
    %607 = tpu.matmul %606, %585, %cst_366 {dimension_numbers = #tpu.dot_dimension_numbers<[1], [0], [0], [1], [0, 0, 1, 1], [], []>} : vector<24x3xf32>, vector<3x1xf32>, vector<24x1xf32> -> vector<24x1xf32>
    %608 = arith.mulf %605, %605 : vector<24x3xf32>
    %cst_367 = arith.constant dense<0.000000e+00> : vector<24x1xf32>
    %609 = tpu.matmul %608, %585, %cst_367 {dimension_numbers = #tpu.dot_dimension_numbers<[1], [0], [0], [1], [0, 0, 1, 1], [], []>} : vector<24x3xf32>, vector<3x1xf32>, vector<24x1xf32> -> vector<24x1xf32>
    %cst_368 = arith.constant dense<0.000000e+00> : vector<24x32xf32>
    %610 = tpu.matmul %598, %580, %cst_368 {dimension_numbers = #tpu.dot_dimension_numbers<[1], [0], [0], [1], [0, 0, 1, 1], [], []>} : vector<24x8xf32>, vector<8x32xf32>, vector<24x32xf32> -> vector<24x32xf32>
    %cst_369 = arith.constant dense<0.000000e+00> : vector<24x32xf32>
    %611 = tpu.matmul %602, %582, %cst_369 {dimension_numbers = #tpu.dot_dimension_numbers<[1], [0], [0], [1], [0, 0, 1, 1], [], []>} : vector<24x8xf32>, vector<8x32xf32>, vector<24x32xf32> -> vector<24x32xf32>
    %612 = arith.addf %610, %611 : vector<24x32xf32>
    %613 = vector.broadcast %607 : vector<24x1xf32> to vector<24x32xf32>
    %614 = vector.broadcast %583 : vector<1x32xf32> to vector<24x32xf32>
    %615 = arith.mulf %613, %614 : vector<24x32xf32>
    %616 = arith.addf %612, %615 : vector<24x32xf32>
    %617 = vector.broadcast %609 : vector<24x1xf32> to vector<24x32xf32>
    %618 = vector.broadcast %584 : vector<1x32xf32> to vector<24x32xf32>
    %619 = arith.mulf %617, %618 : vector<24x32xf32>
    %620 = arith.addf %616, %619 : vector<24x32xf32>
    %621 = vector.broadcast %572 : vector<1x32xf32> to vector<24x32xf32>
    %622 = arith.addf %620, %621 : vector<24x32xf32>
    %623 = arith.negf %622 : vector<24x32xf32>
    %624 = math.exp %623 : vector<24x32xf32>
    %cst_370 = arith.constant 1.000000e+00 : f32
    %625 = vector.broadcast %cst_370 : f32 to vector<24x32xf32>
    %626 = arith.addf %625, %624 : vector<24x32xf32>
    %627 = arith.divf %625, %626 : vector<24x32xf32>
    %628 = arith.mulf %622, %627 : vector<24x32xf32>
    %cst_371 = arith.constant dense<0.000000e+00> : vector<24x32xf32>
    %629 = tpu.matmul %628, %574, %cst_371 {dimension_numbers = #tpu.dot_dimension_numbers<[1], [0], [0], [1], [0, 0, 1, 1], [], []>} : vector<24x32xf32>, vector<32x32xf32>, vector<24x32xf32> -> vector<24x32xf32>
    %630 = vector.broadcast %576 : vector<1x32xf32> to vector<24x32xf32>
    %631 = arith.addf %629, %630 : vector<24x32xf32>
    %632 = arith.negf %631 : vector<24x32xf32>
    %633 = math.exp %632 : vector<24x32xf32>
    %cst_372 = arith.constant 1.000000e+00 : f32
    %634 = vector.broadcast %cst_372 : f32 to vector<24x32xf32>
    %635 = arith.addf %634, %633 : vector<24x32xf32>
    %636 = arith.divf %634, %635 : vector<24x32xf32>
    %637 = arith.mulf %631, %636 : vector<24x32xf32>
    %cst_373 = arith.constant dense<0.000000e+00> : vector<24x1xf32>
    %638 = tpu.matmul %637, %578, %cst_373 {dimension_numbers = #tpu.dot_dimension_numbers<[1], [0], [0], [1], [0, 0, 1, 1], [], []>} : vector<24x32xf32>, vector<32x1xf32>, vector<24x1xf32> -> vector<24x1xf32>
    %639 = math.tanh %638 : vector<24x1xf32>
    %cst_374 = arith.constant 9.99999993E-9 : f32
    %640 = vector.broadcast %cst_374 : f32 to vector<24x1xf32>
    %641 = arith.addf %607, %640 : vector<24x1xf32>
    %642 = math.sqrt %641 : vector<24x1xf32>
    %cst_375 = arith.constant 1.000000e+00 : f32
    %643 = vector.broadcast %cst_375 : f32 to vector<24x1xf32>
    %644 = arith.addf %642, %643 : vector<24x1xf32>
    %645 = vector.broadcast %644 : vector<24x1xf32> to vector<24x3xf32>
    %646 = arith.divf %604, %645 : vector<24x3xf32>
    %647 = vector.broadcast %639 : vector<24x1xf32> to vector<24x3xf32>
    %648 = arith.mulf %646, %647 : vector<24x3xf32>
    %cst_376 = arith.constant 1.500000e+01 : f32
    %649 = vector.broadcast %cst_376 : f32 to vector<24x3xf32>
    %650 = arith.mulf %648, %649 : vector<24x3xf32>
    %651 = arith.index_cast %c0_i32_360 : i32 to index
    %c0_377 = arith.constant 0 : index
    %652 = vector.load %arg2[%651, %c0_377] : memref<1x24xi32, #tpu.memory_space<vmem>>, vector<1x24xi32>
    %653 = tpu.iota {dimensions = array<i32: 0>} : vector<8x24xi32>
    %654 = vector.broadcast %652 : vector<1x24xi32> to vector<8x24xi32>
    %655 = arith.cmpi eq, %654, %653 : vector<8x24xi32>
    %656 = arith.extui %655 : vector<8x24xi1> to vector<8x24xi32>
    %657 = arith.sitofp %656 : vector<8x24xi32> to vector<8x24xf32>
    %c0_378 = arith.constant 0 : index
    %c0_379 = arith.constant 0 : index
    %658 = vector.load %arg29[%c0_378, %c0_379] : memref<8x3xf32, #tpu.memory_space<vmem>>, vector<8x3xf32>
    %cst_380 = arith.constant dense<0.000000e+00> : vector<8x3xf32>
    %659 = tpu.matmul %657, %650, %cst_380 {dimension_numbers = #tpu.dot_dimension_numbers<[1], [0], [0], [1], [0, 0, 1, 1], [], []>} : vector<8x24xf32>, vector<24x3xf32>, vector<8x3xf32> -> vector<8x3xf32>
    %660 = arith.addf %658, %659 : vector<8x3xf32>
    %c0_381 = arith.constant 0 : index
    %c0_382 = arith.constant 0 : index
    %661 = vector.load %arg29[%c0_381, %c0_382] : memref<8x3xf32, #tpu.memory_space<vmem>>, vector<8x3xf32>
    tpu.vector_store %arg29[%c0_381, %c0_382], %660 {strides = array<i32>} : memref<8x3xf32, #tpu.memory_space<vmem>>, vector<8x3xf32>,
    %c1_i32_383 = arith.constant 1 : i32
    %c0_384 = arith.constant 0 : index
    %c0_385 = arith.constant 0 : index
    %662 = vector.load %arg26[%c0_384, %c0_385] : memref<8x3xf32, #tpu.memory_space<vmem>>, vector<8x3xf32>
    %c0_386 = arith.constant 0 : index
    %c0_387 = arith.constant 0 : index
    %663 = vector.load %arg29[%c0_386, %c0_387] : memref<8x3xf32, #tpu.memory_space<vmem>>, vector<8x3xf32>
    %cst_388 = arith.constant 1.000000e+00 : f32
    %664 = vector.broadcast %cst_388 : f32 to vector<8x3xf32>
    %665 = arith.mulf %663, %664 : vector<8x3xf32>
    %666 = arith.addf %662, %665 : vector<8x3xf32>
    %c0_389 = arith.constant 0 : index
    %c0_390 = arith.constant 0 : index
    %667 = vector.load %arg26[%c0_389, %c0_390] : memref<8x3xf32, #tpu.memory_space<vmem>>, vector<8x3xf32>
    tpu.vector_store %arg26[%c0_389, %c0_390], %666 {strides = array<i32>} : memref<8x3xf32, #tpu.memory_space<vmem>>, vector<8x3xf32>,
    %c0_391 = arith.constant 0 : index
    %c0_392 = arith.constant 0 : index
    %668 = vector.load %arg25[%c0_391, %c0_392] : memref<8x32xf32, #tpu.memory_space<vmem>>, vector<8x32xf32>
    %c0_393 = arith.constant 0 : index
    %c0_394 = arith.constant 0 : index
    %669 = vector.load %arg9[%c0_393, %c0_394] : memref<32x6xf32, #tpu.memory_space<vmem>>, vector<32x6xf32>
    %cst_395 = arith.constant dense<0.000000e+00> : vector<8x6xf32>
    %670 = tpu.matmul %668, %669, %cst_395 {dimension_numbers = #tpu.dot_dimension_numbers<[1], [0], [0], [1], [0, 0, 1, 1], [], []>} : vector<8x32xf32>, vector<32x6xf32>, vector<8x6xf32> -> vector<8x6xf32>
    %c0_396 = arith.constant 0 : index
    %c0_397 = arith.constant 0 : index
    %671 = vector.load %arg10[%c0_396, %c0_397] : memref<1x6xf32, #tpu.memory_space<vmem>>, vector<1x6xf32>
    %672 = vector.broadcast %671 : vector<1x6xf32> to vector<8x6xf32>
    %673 = arith.addf %670, %672 : vector<8x6xf32>
    %c0_398 = arith.constant 0 : index
    %c0_399 = arith.constant 0 : index
    %674 = vector.load %arg26[%c0_398, %c0_399] : memref<8x3xf32, #tpu.memory_space<vmem>>, vector<8x3xf32>
    %c0_400 = arith.constant 0 : index
    %c0_401 = arith.constant 0 : index
    %675 = vector.load %arg3[%c0_400, %c0_401] : memref<8x1xi32, #tpu.memory_space<vmem>>, vector<8x1xi32>
    %676 = tpu.iota {dimensions = array<i32: 1>} : vector<8x2xi32>
    %677 = vector.broadcast %675 : vector<8x1xi32> to vector<8x2xi32>
    %678 = arith.cmpi eq, %677, %676 : vector<8x2xi32>
    %679 = arith.extui %678 : vector<8x2xi1> to vector<8x2xi32>
    %680 = arith.sitofp %679 : vector<8x2xi32> to vector<8x2xf32>
    %c0_402 = arith.constant 0 : index
    %c0_403 = arith.constant 0 : index
    %681 = vector.load %arg4[%c0_402, %c0_403] : memref<1x8xi32, #tpu.memory_space<vmem>>, vector<1x8xi32>
    %682 = tpu.iota {dimensions = array<i32: 0>} : vector<2x8xi32>
    %683 = vector.broadcast %681 : vector<1x8xi32> to vector<2x8xi32>
    %684 = arith.cmpi eq, %683, %682 : vector<2x8xi32>
    %685 = arith.extui %684 : vector<2x8xi1> to vector<2x8xi32>
    %686 = arith.sitofp %685 : vector<2x8xi32> to vector<2x8xf32>
    %cst_404 = arith.constant dense<0.000000e+00> : vector<2x3xf32>
    %687 = tpu.matmul %686, %674, %cst_404 {dimension_numbers = #tpu.dot_dimension_numbers<[1], [0], [0], [1], [0, 0, 1, 1], [], []>} : vector<2x8xf32>, vector<8x3xf32>, vector<2x3xf32> -> vector<2x3xf32>
    %cst_405 = arith.constant 1.000000e+00 : f32
    %688 = vector.broadcast %cst_405 : f32 to vector<8x1xf32>
    %cst_406 = arith.constant dense<0.000000e+00> : vector<2x1xf32>
    %689 = tpu.matmul %686, %688, %cst_406 {dimension_numbers = #tpu.dot_dimension_numbers<[1], [0], [0], [1], [0, 0, 1, 1], [], []>} : vector<2x8xf32>, vector<8x1xf32>, vector<2x1xf32> -> vector<2x1xf32>
    %690 = vector.broadcast %689 : vector<2x1xf32> to vector<2x3xf32>
    %691 = arith.divf %687, %690 : vector<2x3xf32>
    %cst_407 = arith.constant dense<0.000000e+00> : vector<8x3xf32>
    %692 = tpu.matmul %680, %691, %cst_407 {dimension_numbers = #tpu.dot_dimension_numbers<[1], [0], [0], [1], [0, 0, 1, 1], [], []>} : vector<8x2xf32>, vector<2x3xf32>, vector<8x3xf32> -> vector<8x3xf32>
    %693 = arith.subf %674, %692 : vector<8x3xf32>
    %c0_408 = arith.constant 0 : index
    %c0_409 = arith.constant 0 : index
    %694 = vector.load %arg27[%c0_408, %c0_409] : memref<8x3xf32, #tpu.memory_space<vmem>>, vector<8x3xf32>
    %695 = arith.subf %693, %694 : vector<8x3xf32>
    %696 = tpu.iota {dimensions = array<i32: 1>} : vector<3x9xi32>
    %697 = tpu.iota {dimensions = array<i32: 0>} : vector<3x9xi32>
    %698 = arith.cmpi eq, %696, %697 : vector<3x9xi32>
    %699 = arith.extui %698 : vector<3x9xi1> to vector<3x9xi32>
    %700 = arith.sitofp %699 : vector<3x9xi32> to vector<3x9xf32>
    %701 = tpu.iota {dimensions = array<i32: 1>} : vector<6x9xi32>
    %702 = tpu.iota {dimensions = array<i32: 0>} : vector<6x9xi32>
    %c3_i32 = arith.constant 3 : i32
    %703 = vector.broadcast %c3_i32 : i32 to vector<6x9xi32>
    %704 = arith.addi %702, %703 : vector<6x9xi32>
    %705 = arith.cmpi eq, %701, %704 : vector<6x9xi32>
    %706 = arith.extui %705 : vector<6x9xi1> to vector<6x9xi32>
    %707 = arith.sitofp %706 : vector<6x9xi32> to vector<6x9xf32>
    %cst_410 = arith.constant dense<0.000000e+00> : vector<8x9xf32>
    %708 = tpu.matmul %695, %700, %cst_410 {dimension_numbers = #tpu.dot_dimension_numbers<[1], [0], [0], [1], [0, 0, 1, 1], [], []>} : vector<8x3xf32>, vector<3x9xf32>, vector<8x9xf32> -> vector<8x9xf32>
    %cst_411 = arith.constant dense<0.000000e+00> : vector<8x9xf32>
    %709 = tpu.matmul %673, %707, %cst_411 {dimension_numbers = #tpu.dot_dimension_numbers<[1], [0], [0], [1], [0, 0, 1, 1], [], []>} : vector<8x6xf32>, vector<6x9xf32>, vector<8x9xf32> -> vector<8x9xf32>
    %710 = arith.addf %708, %709 : vector<8x9xf32>
    %c0_412 = arith.constant 0 : index
    %c0_413 = arith.constant 0 : index
    %711 = vector.load %arg24[%c0_412, %c0_413] : memref<8x9xf32, #tpu.memory_space<vmem>>, vector<8x9xf32>
    tpu.vector_store %arg24[%c0_412, %c0_413], %710 {strides = array<i32>} : memref<8x9xf32, #tpu.memory_space<vmem>>, vector<8x9xf32>,
    return
  }
}

</mosaic_0001>

<bundles_post_ra>
// kernel: egnn_score_forward.1
= control target key start
LH: loop header
LB: loop body
LE: loop exit
PB: predicated region body
PF: predicated region fallthrough
CT: control target
= control target key end

     0   :  { %s12075_s0 = inlined_call_operand.vmem [shape: s32[24,1], index: 0, kind: input, shape index: {}]   ;;  %s12076_s1 = inlined_call_operand.vmem [shape: s32[24,1], index: 1, kind: input, shape index: {}]   ;;  %s12077_s2 = inlined_call_operand.vmem [shape: s32[1,24], index: 2, kind: input, shape index: {}]   ;;  %s12078_s3 = inlined_call_operand.vmem [shape: s32[8,1], index: 3, kind: input, shape index: {}]   ;;  %s12079_s4 = inlined_call_operand.vmem [shape: s32[1,8], index: 4, kind: input, shape index: {}]   ;;  %s12080_s5 = inlined_call_operand.vmem [shape: f32[8,3], index: 5, kind: input, shape index: {}]   ;;  %s12081_s6 = inlined_call_operand.vmem [shape: f32[8,6], index: 6, kind: input, shape index: {}]   ;;  %s12082_s7 = inlined_call_operand.vmem [shape: f32[6,32], index: 7, kind: input, shape index: {}]   ;;  %s12083_s8 = inlined_call_operand.vmem [shape: f32[1,32], index: 8, kind: input, shape index: {}]   ;;  %s12084_s9 = inlined_call_operand.vmem [shape: f32[32,6], index: 9, kind: input, shape index: {}]   ;;  %s12085_s10 = inlined_call_operand.vmem [shape: f32[1,6], index: 10, kind: input, shape index: {}]   ;;  %s12086_s11 = inlined_call_operand.vmem [shape: f32[3,66,32], index: 11, kind: input, shape index: {}]   ;;  %s12087_s12 = inlined_call_operand.vmem [shape: f32[3,1,32], index: 12, kind: input, shape index: {}]   ;;  %s12088_s13 = inlined_call_operand.vmem [shape: f32[3,32,32], index: 13, kind: input, shape index: {}]   ;;  %s12089_s14 = inlined_call_operand.vmem [shape: f32[3,1,32], index: 14, kind: input, shape index: {}]   ;;  %s12090_s15 = inlined_call_operand.vmem [shape: f32[3,64,32], index: 15, kind: input, shape index: {}]   ;;  %s12091_s16 = inlined_call_operand.vmem [shape: f32[3,1,32], index: 16, kind: input, shape index: {}]   ;;  %s12092_s17 = inlined_call_operand.vmem [shape: f32[3,32,32], index: 17, kind: input, shape index: {}]   ;;  %s12093_s18 = inlined_call_operand.vmem [shape: f32[3,1,32], index: 18, kind: input, shape index: {}]   ;;  %s12094_s19 = inlined_call_operand.vmem [shape: f32[3,66,32], index: 19, kind: input, shape index: {}]   ;;  %s12095_s20 = inlined_call_operand.vmem [shape: f32[3,1,32], index: 20, kind: input, shape index: {}]   ;;  %s12096_s21 = inlined_call_operand.vmem [shape: f32[3,32,32], index: 21, kind: input, shape index: {}]   ;;  %s12097_s22 = inlined_call_operand.vmem [shape: f32[3,1,32], index: 22, kind: input, shape index: {}]   ;;  %s12098_s23 = inlined_call_operand.vmem [shape: f32[3,32,1], index: 23, kind: input, shape index: {}]   ;;  %s12099_s24 = inlined_call_operand.hbm [shape: f32[8,9], index: 24, kind: output, shape index: {}]  }
   0x1   :  { %12105 = sst [smem:[#allocation10_spill]] %s12075_s0 }
   0x2   :  { %12106 = sst [smem:[#allocation11_spill]] %s12076_s1 }
   0x3   :  { %12107 = sst [smem:[#allocation12_spill]] %s12077_s2 }
   0x4   :  { %12108 = sst [smem:[#allocation13_spill]] %s12078_s3 }
   0x5   :  { %12109 = sst [smem:[#allocation14_spill]] %s12079_s4 }
   0x6   :  { %12110 = sst [smem:[#allocation15_spill]] %s12080_s5 }
   0x7   :  { %12111 = sst [smem:[#allocation16_spill]] %s12081_s6 }
   0x8   :  { %12112 = sst [smem:[#allocation17_spill]] %s12082_s7 }
   0x9   :  { %12113 = sst [smem:[#allocation18_spill]] %s12083_s8 }
   0xa   :  { %v80_v0 = vlaneseq  ;;  %s12114_s27 = sld [smem:[#allocation15_spill]]  ;;  %v10238_v2 = vmov 0.0   ;;  %vm10239_vm0 = vmmov 0  }
   0xb   :  { %9109 = vmatprep.subr.mxu1 %v10238_v2  ;;  %9111 = vmatprep.mubr.msk.f32.mxu1 %vm10239_vm0, %v10238_v2  ;;  %s12115_s2 = sld [smem:[#allocation14_spill]] }
  0x10   :  { %v10371_v1 = vld [vmem:[%s12114_s27] sm:$0xff] }
  0x11   :  { %v8346_v3 = vld [vmem:[%s12115_s2] ss:$0 sm:$0xff] }
  0x12   :  { %29 = vsyncpa [#allocation8], 0  ;;  %v10240_v4 = vmov 1.0   ;;  %v10380_v5 = vshrl.u32 %v80_v0, 7  ;;  %9104 = vmatprep.subr.mxu0 %v10238_v2  ;;  %vm98_vm1 = vcmask 64512   ;;  %9106 = vmatprep.mubr.msk.f32.mxu0 %vm10239_vm0, %v10238_v2  ;;  %v10241_v6 = vmov 0  }
  0x13   :  { %9110 = vmatpush3.msra.mxu1 %v10240_v4  ;;  %9105 = vmatpush3.msra.mxu0 %v10371_v1  ;;  %s12116_s7 = sld [smem:[#allocation10_spill]]  ;;  %vm344_vm3 = vcmask 1045504   ;;  %vm340_vm4 = vcmask 48128   ;;  %vm418_vm5 = vcmask 261120   ;;  %v430_v21 = vld [vmem:[%s12086_s11 + $0x38] sm:$0xff]  ;;  %v10452_v23 = vand.u32 127, %v80_v0 }
  0x14   :  { %vm95_vm2 = vcmp.eq.s32.totalorder %v8346_v3, %v10380_v5  ;;  %10000 = vset.pattern.permute.xlu1 %v10241_v6  ;;  %9999 = vset.pattern.permute.xlu0 %v10241_v6  ;;  %s12117_s25 = sld [smem:[#allocation11_spill]]  ;;  %581 = vst.msk [vmem:[#allocation5] sm:$0xff] %vm418_vm5, %v10238_v2  ;;  %vm253_vm7 = vcmask 1041408   ;;  %vm249_vm8 = vcmask 15360   ;;  %v426_v27 = vld [vmem:[%s12086_s11 + $0x18] sm:$0xff]  ;;  %v425_v33 = vld [vmem:[%s12086_s11 + $0x10] sm:$0xff] }
  0x15   :  { %v8347_v7 = vsel %vm95_vm2, 1.0, %v10238_v2  ;;  %9119 = vmatprep.subr.mxu1 %v10238_v2  ;;  %9114 = vmatprep.subr.mxu0 %v10238_v2  ;;  %s12118_s28 = sld [smem:[#allocation13_spill]]  ;;  %v429_v34 = vld [vmem:[%s12086_s11 + $0x30] sm:$0xff]  ;;  %vm328_vm9 = vcmask 23552   ;;  %v424_v35 = vld [vmem:[%s12086_s11 + $0x8] sm:$0xff]  ;;  %v423_v37 = vld [vmem:[%s12086_s11] sm:$0xff] }
  0x16   :  { %9112 = vmatmul.mubr.msk.f32.vlgmr.msra.gmra.mxu1 %vm98_vm1, %v8347_v7  ;;  %9107 = vmatmul.mubr.msk.f32.vlgmr.msra.gmra.mxu0 %vm98_vm1, %v8347_v7  ;;  %s12119_s3 = sld [smem:[#allocation17_spill]]  ;;  %1866 = vst.msk [vmem:[#allocation6] sm:$0xff] %vm328_vm9, %v10238_v2  ;;  %v428_v36 = vld [vmem:[%s12086_s11 + $0x28] sm:$0xff]  ;;  %v427_v38 = vld [vmem:[%s12086_s11 + $0x20] sm:$0xff]  ;;  %vm808_vm2 = vcmask 1042432  }
  0x17   :  { %9121 = vmatprep.mubr.msk.f32.mxu1 %vm10239_vm0, %v10238_v2  ;;  %9116 = vmatprep.mubr.msk.f32.mxu0 %vm10239_vm0, %v10238_v2  ;;  %s12120_s1 = sld [smem:[#allocation16_spill]] }
  0x18   :  { %s12121_s8 = sld [smem:[#allocation18_spill]] }
  0x19   :  { %v10399_v8 = vld [vmem:[%s12116_s7] sm:$0xff]  ;;  %v10426_v15 = vld [vmem:[%s12116_s7 + $0x8] sm:$0xff]  ;;  %v10440_v19 = vld [vmem:[%s12116_s7 + $0x10] sm:$0xff]  ;;  %s12122_s26 = sld [smem:[#allocation12_spill]] }
  0x1a   :  { %589 = vperm.xlu1 %10000, %v10399_v8   ;;  %v10405_v9 = vld [vmem:[%s12117_s25] sm:$0xff]  ;;  %v10411_v10 = vld [vmem:[%s12117_s25 + $0x8] sm:$0xff]  ;;  %v10417_v11 = vld [vmem:[%s12117_s25 + $0x10] sm:$0xff] }
  0x1b   :  { %v79_v14 = vld [vmem:[%s12118_s28] sm:$0xff] }
  0x1c   :  { %v332_v16 = vld [vmem:[%s12119_s3] sm:$0x3f] }
  0x1d   :  { %9120 = vmatpush3.msk.msra.mxu1 %vm344_vm3, %v332_v16  ;;  %v331_v18 = vld [vmem:[%s12120_s1] sm:$0xff] }
  0x1e   :  { %607 = vperm.xlu1 %10000, %v10405_v9   ;;  %9122 = vmatmul.mubr.msk.f32.vlgmr.msra.gmra.mxu1 %vm340_vm4, %v331_v18  ;;  %v8352_v29 = vld [vmem:[%s12121_s8] ss:$0 sm:$0xff] }
  0x1f   :  { %9135 = vmatprep.subr.mxu1 %v10238_v2  ;;  %9143 = vmatprep.mubr.msk.f32.mxu1 %vm10239_vm0, %v10238_v2 }
  0x20   :  { %9136 = vmatpush3.msra.mxu1 %v430_v21 }
  0x21   :  { %9137 = vmatprep.subr.mxu1 %v10238_v2 }
  0x22   :  { %610 = vperm.xlu1 %10000, %v10411_v10   ;;  %9138 = vmatpush3.msra.mxu1 %v429_v34 }
  0x23   :  { %9139 = vmatprep.subr.mxu1 %v10238_v2 }
  0x24   :  { %9140 = vmatpush3.msra.mxu1 %v428_v36 }
  0x25   :  { %9141 = vmatprep.subr.mxu1 %v10238_v2 }
  0x26   :  { %613 = vperm.xlu1 %10000, %v10417_v11   ;;  %9142 = vmatpush3.msra.mxu1 %v427_v38 }
  0x27   :  { %9157 = vmatprep.subr.mxu1 %v10238_v2 }
  0x95   :  { %v590_v40 = vpop.permute.xlu1 %589 }
  0x96   :  { %vm597_vm10 = vcmp.eq.s32.totalorder %v590_v40, %v10452_v23 }
  0x97   :  { %v10511_v47 = vsel %vm597_vm10, 1.0, %v10238_v2  ;;  %vm1367_vm10 = vcmask 195584  }
  0x99   :  { %v608_v41 = vpop.permute.xlu1 %607 }
  0x9a   :  { %vm615_vm11 = vcmp.eq.s32.totalorder %v608_v41, %v10452_v23 }
  0x9b   :  { %v10514_v48 = vsel %vm615_vm11, 1.0, %v10238_v2 }
  0x9c   :  { %v624_v51 = vsub.f32 %v10511_v47, %v10514_v48 }
  0x9d   :  { %v611_v45 = vpop.permute.xlu1 %610 }
  0x9e   :  { %vm616_vm12 = vcmp.eq.s32.totalorder %v611_v45, %v10452_v23 }
  0x9f   :  { %v10525_v54 = vsel %vm616_vm12, 1.0, %v10238_v2 }
  0xa1   :  { %v614_v49 = vpop.permute.xlu1 %613 }
  0xa2   :  { %vm617_vm14 = vcmp.eq.s32.totalorder %v614_v49, %v10452_v23 }
  0xa3   :  { %v8362_v57 = vsel %vm617_vm14, 1.0, %v10238_v2 }
  0xd6   :  { %v238_v12 = vpop.f32.mrf.mxu1  ;;  %v168_v17 = vpop.f32.mrf.mxu0 }
  0xd7   :  { %244 = vperm.xlu0 %9999, %v238_v12  }
  0xd8   :  { %v9113_v13 = vpop.f32.mrf.mxu1  ;;  %v9108_v20 = vpop.f32.mrf.mxu0 }
  0xdb   :  { %83 = vperm.xlu0 %9999, %v79_v14  }
  0xde   :  { %v414_v30 = vpop.f32.mrf.mxu1 }
  0xdf   :  { %592 = vperm.xlu0 %9999, %v10426_v15   ;;  %v415_v31 = vadd.f32 %v8352_v29, %v414_v30 }
  0xe0   :  { %v9123_v32 = vpop.f32.mrf.mxu1 }
  0xe1   :  { %419 = vst.msk [vmem:[#allocation2] sm:$0xff] %vm418_vm5, %v415_v31 }
  0xe3   :  { %595 = vperm.xlu0 %9999, %v10440_v19  }
  0xe8   :  { %v10493_v39 = vld [vmem:[#allocation2] sm:$0xff] }
  0xe9   :  { %9144 = vmatmul.mubr.msk.f32.vlgmr.msra.gmra.mxu1 %vm418_vm5, %v10493_v39 }
  0xea   :  { %9159 = vmatprep.mubr.msk.f32.mxu1 %vm10239_vm0, %v10238_v2 }
 0x152   :  { %v245_v22 = vpop.permute.xlu0 %244 }
 0x153   :  { %10001 = vrcp.f32 %v245_v22 }
 0x156   :  { %v84_v24 = vpop.permute.xlu0 %83 }
 0x157   :  { %vm85_vm6 = vcmp.eq.s32.totalorder %v84_v24, %v10452_v23 }
 0x158   :  { %v8345_v28 = vsel %vm85_vm6, 1.0, %v10238_v2 }
 0x15a   :  { %v593_v46 = vpop.permute.xlu0 %592 }
 0x15b   :  { %vm598_vm13 = vcmp.eq.s32.totalorder %v593_v46, %v10452_v23 }
 0x15c   :  { %v10528_v55 = vsel %vm598_vm13, 1.0, %v10238_v2 }
 0x15d   :  { %v625_v56 = vsub.f32 %v10528_v55, %v10525_v54 }
 0x15e   :  { %v596_v50 = vpop.permute.xlu0 %595 }
 0x15f   :  { %vm599_vm15 = vcmp.eq.s32.totalorder %v596_v50, %v10452_v23 }
 0x160   :  { %v10002_v25 = vpop.eup %10001  ;;  %v8359_v58 = vsel %vm599_vm15, 1.0, %v10238_v2 }
 0x161   :  { %v248_v26 = vmul.f32 %v10002_v25, %v168_v17  ;;  %v626_v59 = vsub.f32 %v8359_v58, %v8362_v57 }
 0x163   :  { %9115 = vmatpush3.msk.msra.mxu0 %vm253_vm7, %v248_v26 }
 0x164   :  { %9117 = vmatmul.mubr.msk.f32.vlgmr.msra.gmra.mxu0 %vm249_vm8, %v8345_v28  ;;  %9124 = vmatprep.subr.mxu0 %v10238_v2 }
 0x165   :  { %9125 = vmatpush3.msra.mxu0 %v426_v27  ;;  %9132 = vmatprep.mubr.msk.f32.mxu0 %vm10239_vm0, %v10238_v2 }
 0x166   :  { %9126 = vmatprep.subr.mxu0 %v10238_v2 }
 0x167   :  { %9127 = vmatpush3.msra.mxu0 %v425_v33 }
 0x168   :  { %9128 = vmatprep.subr.mxu0 %v10238_v2 }
 0x169   :  { %9129 = vmatpush3.msra.mxu0 %v424_v35 }
 0x16a   :  { %9130 = vmatprep.subr.mxu0 %v10238_v2 }
 0x16b   :  { %9131 = vmatpush3.msra.mxu0 %v423_v37 }
 0x16c   :  { %9133 = vmatmul.mubr.msk.f32.vlgmr.msra.gmra.mxu0 %vm418_vm5, %v10493_v39  ;;  %9146 = vmatprep.subr.mxu0 %v10238_v2 }
 0x16d   :  { %9148 = vmatprep.mubr.msk.f32.mxu0 %vm10239_vm0, %v10238_v2 }
 0x1a9   :  { %v577_v61 = vpop.f32.mrf.mxu1 }
 0x1ab   :  { %v9145_v63 = vpop.f32.mrf.mxu1 }
 0x224   :  { %v323_v42 = vpop.f32.mrf.mxu0 }
 0x225   :  { %v327_v43 = vsub.f32 %v10371_v1, %v323_v42 }
 0x226   :  { %v9118_v44 = vpop.f32.mrf.mxu0 }
 0x227   :  { %329 = vst.msk [vmem:[#allocation4] sm:$0xff] %vm328_vm9, %v327_v43  ;;  %330 = vst.msk [vmem:[#allocation3] sm:$0xff] %vm328_vm9, %v327_v43 }
 0x22c   :  { %v507_v60 = vpop.f32.mrf.mxu0 }
 0x22e   :  { %v10520_v52 = vld [vmem:[#allocation3] sm:$0xff]  ;;  %v10522_v53 = vld [vmem:[#allocation4] sm:$0xff]  ;;  %v9134_v62 = vpop.f32.mrf.mxu0 }
 0x22f   :  { %9147 = vmatpush3.msra.mxu0 %v10520_v52  ;;  %9158 = vmatpush3.msra.mxu1 %v10522_v53 }
 0x230   :  { %9149 = vmatmul.mubr.msk.f32.vlgmr.msra.gmra.mxu0 %vm98_vm1, %v624_v51  ;;  %9160 = vmatmul.mubr.msk.f32.vlgmr.msra.gmra.mxu1 %vm98_vm1, %v624_v51 }
 0x231   :  { %9151 = vmatprep.mubr.msk.f32.mxu0 %vm10239_vm0, %v10238_v2  ;;  %9162 = vmatprep.mubr.msk.f32.mxu1 %vm10239_vm0, %v10238_v2 }
 0x232   :  { %9168 = vmatprep.subr.mxu0 %v10238_v2  ;;  %9179 = vmatprep.subr.mxu1 %v10238_v2 }
 0x233   :  { %9169 = vmatpush3.msk.msra.mxu0 %vm808_vm2, %v10240_v4  ;;  %9180 = vmatpush3.msk.msra.mxu1 %vm808_vm2, %v10240_v4 }
 0x234   :  { %9152 = vmatmul.mubr.msk.f32.gmra.mxu0 %vm98_vm1, %v625_v56  ;;  %9163 = vmatmul.mubr.msk.f32.gmra.mxu1 %vm98_vm1, %v625_v56  ;;  %v436_v56 = vld [vmem:[%s12088_s13 + $0x18] sm:$0xff] }
 0x235   :  { %9154 = vmatprep.mubr.msk.f32.mxu0 %vm10239_vm0, %v10238_v2  ;;  %9165 = vmatprep.mubr.msk.f32.mxu1 %vm10239_vm0, %v10238_v2 }
 0x236   :  { %9190 = vmatprep.subr.mxu0 %v10238_v2  ;;  %9201 = vmatprep.subr.mxu1 %v10238_v2 }
 0x238   :  { %9155 = vmatmul.mubr.msk.f32.gmra.mxu0 %vm98_vm1, %v626_v59  ;;  %9166 = vmatmul.mubr.msk.f32.gmra.mxu1 %vm98_vm1, %v626_v59 }
 0x239   :  { %9170 = vmatprep.mubr.msk.f32.mxu0 %vm10239_vm0, %v10238_v2  ;;  %9181 = vmatprep.mubr.msk.f32.mxu1 %vm10239_vm0, %v10238_v2 }
 0x2f0   :  { %v702_v0 = vpop.f32.mrf.mxu0  ;;  %v782_v1 = vpop.f32.mrf.mxu1 }
 0x2f1   :  { %v796_v3 = vmul.f32 %v702_v0, %v702_v0  ;;  %v892_v6 = vmul.f32 %v782_v1, %v782_v1 }
 0x2f2   :  { %v9150_v7 = vpop.f32.mrf.mxu0  ;;  %v9161_v12 = vpop.f32.mrf.mxu1 }
 0x2f3   :  { %9171 = vmatmul.mubr.msk.f32.vlgmr.msra.gmra.mxu0 %vm328_vm9, %v796_v3  ;;  %9182 = vmatmul.mubr.msk.f32.vlgmr.msra.gmra.mxu1 %vm328_vm9, %v892_v6  ;;  %v8383_v3 = vld [vmem:[%s12087_s12] ss:$0 sm:$0xff] }
 0x2f4   :  { %9191 = vmatpush3.msra.mxu0 %v577_v61  ;;  %9202 = vmatpush3.msra.mxu1 %v507_v60  ;;  %v707_v13 = vpop.f32.mrf.mxu0  ;;  %v787_v14 = vpop.f32.mrf.mxu1 }
 0x2f5   :  { %v797_v16 = vmul.f32 %v707_v13, %v707_v13  ;;  %v893_v17 = vmul.f32 %v787_v14, %v787_v14  ;;  %9173 = vmatprep.mubr.msk.f32.mxu0 %vm10239_vm0, %v10238_v2  ;;  %9184 = vmatprep.mubr.msk.f32.mxu1 %vm10239_vm0, %v10238_v2 }
 0x2f6   :  { %v9153_v18 = vpop.f32.mrf.mxu0  ;;  %v9164_v20 = vpop.f32.mrf.mxu1  ;;  %9212 = vmatprep.subr.mxu0 %v10238_v2  ;;  %9229 = vmatprep.subr.mxu1 %v10238_v2 }
 0x2f7   :  { %9174 = vmatmul.mubr.msk.f32.gmra.mxu0 %vm328_vm9, %v797_v16  ;;  %9185 = vmatmul.mubr.msk.f32.gmra.mxu1 %vm328_vm9, %v893_v17 }
 0x2f8   :  { %v712_v21 = vpop.f32.mrf.mxu0  ;;  %v792_v22 = vpop.f32.mrf.mxu1  ;;  %9176 = vmatprep.mubr.msk.f32.mxu0 %vm10239_vm0, %v10238_v2  ;;  %9187 = vmatprep.mubr.msk.f32.mxu1 %vm10239_vm0, %v10238_v2 }
 0x2f9   :  { %v798_v24 = vmul.f32 %v712_v21, %v712_v21  ;;  %v894_v25 = vmul.f32 %v792_v22, %v792_v22 }
 0x2fa   :  { %v9156_v26 = vpop.f32.mrf.mxu0  ;;  %v9167_v27 = vpop.f32.mrf.mxu1 }
 0x2fb   :  { %9177 = vmatmul.mubr.msk.f32.gmra.mxu0 %vm328_vm9, %v798_v24  ;;  %9188 = vmatmul.mubr.msk.f32.gmra.mxu1 %vm328_vm9, %v894_v25 }
 0x2fc   :  { %9192 = vmatprep.mubr.msk.f32.mxu0 %vm10239_vm0, %v10238_v2  ;;  %9203 = vmatprep.mubr.msk.f32.mxu1 %vm10239_vm0, %v10238_v2 }
 0x2ff   :  { %9193 = vmatmul.mubr.msk.f32.vlgmr.msra.gmra.mxu0 %vm98_vm1, %v10514_v48  ;;  %9204 = vmatmul.mubr.msk.f32.vlgmr.msra.gmra.mxu1 %vm98_vm1, %v10511_v47 }
 0x300   :  { %9195 = vmatprep.mubr.msk.f32.mxu0 %vm10239_vm0, %v10238_v2  ;;  %9206 = vmatprep.mubr.msk.f32.mxu1 %vm10239_vm0, %v10238_v2 }
 0x301   :  { %9213 = vmatpush3.msra.mxu0 %v436_v56 }
 0x302   :  { %9214 = vmatprep.subr.mxu0 %v10238_v2 }
 0x303   :  { %9196 = vmatmul.mubr.msk.f32.gmra.mxu0 %vm98_vm1, %v10525_v54  ;;  %9207 = vmatmul.mubr.msk.f32.gmra.mxu1 %vm98_vm1, %v10528_v55 }
 0x304   :  { %9198 = vmatprep.mubr.msk.f32.mxu0 %vm10239_vm0, %v10238_v2  ;;  %9209 = vmatprep.mubr.msk.f32.mxu1 %vm10239_vm0, %v10238_v2 }
 0x307   :  { %9199 = vmatmul.mubr.msk.f32.gmra.mxu0 %vm98_vm1, %v8362_v57  ;;  %9210 = vmatmul.mubr.msk.f32.gmra.mxu1 %vm98_vm1, %v8359_v58  ;;  %v431_v57 = vld [vmem:[%s12086_s11 + $0x40] sm:$0x3]  ;;  %v10635_v58 = vsub.s32 1, %v10380_v5 }
 0x308   :  { %9220 = vmatprep.mubr.msk.f32.mxu0 %vm10239_vm0, %v10238_v2  ;;  %9235 = vmatprep.mubr.msk.f32.mxu1 %vm10239_vm0, %v10238_v2 }
 0x309   :  { %v1205_v60 = vrot.slane %v431_v57, %v10635_v58 }
 0x3b3   :  { %v878_v28 = vpop.f32.mrf.mxu0  ;;  %v970_v29 = vpop.f32.mrf.mxu1 }
 0x3b4   :  { %1189 = vperm.xlu1 %10000, %v970_v29   ;;  %1164 = vperm.xlu0 %9999, %v878_v28  }
 0x3b5   :  { %v9172_v30 = vpop.f32.mrf.mxu0  ;;  %v9183_v31 = vpop.f32.mrf.mxu1 }
 0x3b7   :  { %v883_v32 = vpop.f32.mrf.mxu0  ;;  %v975_v33 = vpop.f32.mrf.mxu1 }
 0x3b8   :  { %1194 = vperm.xlu1 %10000, %v975_v33   ;;  %1169 = vperm.xlu0 %9999, %v883_v32  }
 0x3b9   :  { %v9175_v34 = vpop.f32.mrf.mxu0  ;;  %v9186_v35 = vpop.f32.mrf.mxu1 }
 0x3bb   :  { %v888_v36 = vpop.f32.mrf.mxu0  ;;  %v980_v37 = vpop.f32.mrf.mxu1 }
 0x3bc   :  { %1199 = vperm.xlu1 %10000, %v980_v37   ;;  %1174 = vperm.xlu0 %9999, %v888_v36  }
 0x3bd   :  { %v9178_v38 = vpop.f32.mrf.mxu0  ;;  %v9189_v40 = vpop.f32.mrf.mxu1 }
 0x3bf   :  { %v1059_v41 = vpop.f32.mrf.mxu0  ;;  %v1148_v42 = vpop.f32.mrf.mxu1 }
 0x3c0   :  { %v1149_v43 = vadd.f32 %v1148_v42, %v1059_v41  ;;  %1892 = vperm.xlu1 %10000, %v10405_v9   ;;  %1874 = vperm.xlu0 %9999, %v10399_v8   ;;  %v1448_v41 = vld [vmem:[%s12090_s15 + $0x18] sm:$0xff]  ;;  %v1447_v42 = vld [vmem:[%s12090_s15 + $0x10] sm:$0xff] }
 0x3c1   :  { %v9194_v44 = vpop.f32.mrf.mxu0  ;;  %v9205_v45 = vpop.f32.mrf.mxu1 }
 0x3c2   :  { %v1446_v45 = vld [vmem:[%s12090_s15 + $0x8] sm:$0xff] }
 0x3c3   :  { %v1064_v46 = vpop.f32.mrf.mxu0  ;;  %v1153_v47 = vpop.f32.mrf.mxu1 }
 0x3c4   :  { %v1154_v48 = vadd.f32 %v1153_v47, %v1064_v46  ;;  %1895 = vperm.xlu1 %10000, %v10411_v10   ;;  %1877 = vperm.xlu0 %9999, %v10426_v15   ;;  %v435_v10 = vld [vmem:[%s12088_s13 + $0x10] sm:$0xff]  ;;  %v433_v15 = vld [vmem:[%s12088_s13] sm:$0xff] }
 0x3c5   :  { %v9197_v49 = vpop.f32.mrf.mxu0  ;;  %v9208_v50 = vpop.f32.mrf.mxu1  ;;  %9215 = vmatpush3.msra.mxu0 %v435_v10  ;;  %v1445_v46 = vld [vmem:[%s12090_s15] sm:$0xff] }
 0x3c6   :  { %9216 = vmatprep.subr.mxu0 %v10238_v2  ;;  %v8387_v49 = vld [vmem:[%s12089_s14] ss:$0 sm:$0xff] }
 0x3c7   :  { %v1069_v51 = vpop.f32.mrf.mxu0  ;;  %v1158_v54 = vpop.f32.mrf.mxu1 }
 0x3c8   :  { %v1159_v55 = vadd.f32 %v1158_v54, %v1069_v51  ;;  %1898 = vperm.xlu1 %10000, %v10417_v11   ;;  %1880 = vperm.xlu0 %9999, %v10440_v19   ;;  %v434_v11 = vld [vmem:[%s12088_s13 + $0x8] sm:$0xff]  ;;  %v10629_v19 = vsub.s32 0, %v10380_v5 }
 0x3c9   :  { %v9200_v9 = vpop.f32.mrf.mxu0  ;;  %v9211_v8 = vpop.f32.mrf.mxu1  ;;  %9217 = vmatpush3.msra.mxu0 %v434_v11 }
 0x3ca   :  { %9218 = vmatprep.subr.mxu0 %v10238_v2  ;;  %v1180_v59 = vrot.slane %v431_v57, %v10629_v19 }
 0x3cb   :  { %9219 = vmatpush3.msra.mxu0 %v433_v15 }
 0x3cc   :  { %9249 = vmatprep.subr.mxu0 %v10238_v2 }
 0x42f   :  { %v1190_v61 = vpop.permute.xlu1 %1189  ;;  %v1165_v62 = vpop.permute.xlu0 %1164 }
 0x430   :  { %v1181_v63 = vmul.f32 %v1180_v59, %v1165_v62  ;;  %v1206_v0 = vmul.f32 %v1205_v60, %v1190_v61 }
 0x432   :  { %v1184_v1 = vadd.f32 %v1181_v63, %v1149_v43 }
 0x433   :  { %v1195_v6 = vpop.permute.xlu1 %1194  ;;  %v1170_v7 = vpop.permute.xlu0 %1169 }
 0x434   :  { %v1209_v12 = vadd.f32 %v1206_v0, %v1184_v1  ;;  %v1182_v13 = vmul.f32 %v1180_v59, %v1170_v7  ;;  %v1207_v16 = vmul.f32 %v1205_v60, %v1195_v6 }
 0x436   :  { %v1218_v14 = vadd.f32 %v8383_v3, %v1209_v12  ;;  %v1185_v17 = vadd.f32 %v1182_v13, %v1154_v48  ;;  %v8394_v12 = vld [vmem:[%s12122_s26] ss:$0 sm:$0xff] }
 0x437   :  { %v1200_v18 = vpop.permute.xlu1 %1199  ;;  %v1175_v20 = vpop.permute.xlu0 %1174  ;;  %vm1363_vm6 = vcmp.eq.s32.totalorder %v8394_v12, %v10380_v5 }
 0x438   :  { %v8384_v21 = vmul.f32 -1.442695, %v1218_v14  ;;  %v1210_v22 = vadd.f32 %v1207_v16, %v1185_v17  ;;  %v1183_v24 = vmul.f32 %v1180_v59, %v1175_v20  ;;  %v1208_v26 = vmul.f32 %v1205_v60, %v1200_v18 }
 0x439   :  { %v10682_v20 = vsel %vm1363_vm6, 1.0, %v10238_v2 }
 0x43a   :  { %10003 = vpow2.f32 %v8384_v21  ;;  %v1219_v25 = vadd.f32 %v8383_v3, %v1210_v22  ;;  %v1186_v27 = vadd.f32 %v1183_v24, %v1159_v55  ;;  %v1452_v21 = vld [vmem:[%s12090_s15 + $0x38] sm:$0xff]  ;;  %v1451_v22 = vld [vmem:[%s12090_s15 + $0x30] sm:$0xff]  ;;  %v1450_v24 = vld [vmem:[%s12090_s15 + $0x28] sm:$0xff] }
 0x43c   :  { %v8385_v28 = vmul.f32 -1.442695, %v1219_v25  ;;  %v1211_v29 = vadd.f32 %v1208_v26, %v1186_v27  ;;  %v1366_v26 = vld [vmem:[#allocation5] sm:$0xff] }
 0x43e   :  { %10005 = vpow2.f32 %v8385_v28  ;;  %v1220_v30 = vadd.f32 %v8383_v3, %v1211_v29 }
 0x440   :  { %v8386_v31 = vmul.f32 -1.442695, %v1220_v30 }
 0x442   :  { %10007 = vpow2.f32 %v8386_v31  ;;  %v1617_v31 = vld [vmem:[%s12092_s17 + $0x18] sm:$0xff] }
 0x447   :  { %v10004_v32 = vpop.eup %10003 }
 0x448   :  { %v1230_v33 = vadd.f32 1.0, %v10004_v32  ;;  %v1616_v32 = vld [vmem:[%s12092_s17 + $0x10] sm:$0xff] }
 0x44a   :  { %10009 = vrcp.f32 %v1230_v33  ;;  %v1615_v33 = vld [vmem:[%s12092_s17 + $0x8] sm:$0xff] }
 0x44b   :  { %v10006_v34 = vpop.eup %10005 }
 0x44c   :  { %v1231_v35 = vadd.f32 1.0, %v10006_v34  ;;  %v1614_v34 = vld [vmem:[%s12092_s17] sm:$0xff] }
 0x44e   :  { %10011 = vrcp.f32 %v1231_v35 }
 0x44f   :  { %v10008_v36 = vpop.eup %10007 }
 0x450   :  { %v1232_v37 = vadd.f32 1.0, %v10008_v36  ;;  %v8399_v36 = vld [vmem:[%s12091_s16] ss:$0 sm:$0xff] }
 0x452   :  { %10013 = vrcp.f32 %v1232_v37 }
 0x457   :  { %v10010_v38 = vpop.eup %10009 }
 0x458   :  { %v1239_v40 = vmul.f32 %v10010_v38, %v1218_v14 }
 0x45a   :  { %9221 = vmatmul.mubr.msk.f32.vlgmr.msra.gmra.mxu0 %vm418_vm5, %v1239_v40 }
 0x45b   :  { %v10012_v43 = vpop.eup %10011  ;;  %9223 = vmatprep.mubr.msk.f32.mxu0 %vm10239_vm0, %v10238_v2  ;;  %9250 = vmatpush3.msra.mxu0 %v1448_v41 }
 0x45c   :  { %v1240_v44 = vmul.f32 %v10012_v43, %v1219_v25  ;;  %9251 = vmatprep.subr.mxu0 %v10238_v2  ;;  %v1449_v25 = vld [vmem:[%s12090_s15 + $0x20] sm:$0xff] }
 0x45d   :  { %9252 = vmatpush3.msra.mxu0 %v1447_v42 }
 0x45e   :  { %9224 = vmatmul.mubr.msk.f32.gmra.mxu0 %vm418_vm5, %v1240_v44  ;;  %9253 = vmatprep.subr.mxu0 %v10238_v2 }
 0x45f   :  { %v10014_v47 = vpop.eup %10013  ;;  %9226 = vmatprep.mubr.msk.f32.mxu0 %vm10239_vm0, %v10238_v2  ;;  %9254 = vmatpush3.msra.mxu0 %v1446_v45 }
 0x460   :  { %v1241_v48 = vmul.f32 %v10014_v47, %v1220_v30  ;;  %9255 = vmatprep.subr.mxu0 %v10238_v2  ;;  %v1711_v47 = vld [vmem:[%s12094_s19 + $0x38] sm:$0xff] }
 0x461   :  { %9256 = vmatpush3.msra.mxu0 %v1445_v46  ;;  %v1707_v46 = vld [vmem:[%s12094_s19 + $0x18] sm:$0xff] }
 0x462   :  { %9227 = vmatmul.mubr.msk.f32.gmra.mxu0 %vm418_vm5, %v1241_v48  ;;  %9271 = vmatprep.subr.mxu0 %v10238_v2  ;;  %v1706_v48 = vld [vmem:[%s12094_s19 + $0x10] sm:$0xff] }
 0x463   :  { %9257 = vmatprep.mubr.msk.f32.mxu0 %vm10239_vm0, %v10238_v2 }
 0x466   :  { %9258 = vmatmul.mubr.msk.f32.vlgmr.msra.gmra.mxu0 %vm418_vm5, %v10493_v39 }
 0x467   :  { %9279 = vmatprep.mubr.msk.f32.mxu0 %vm10239_vm0, %v10238_v2  ;;  %9272 = vmatpush3.msra.mxu0 %v1707_v46 }
 0x468   :  { %9273 = vmatprep.subr.mxu0 %v10238_v2 }
 0x469   :  { %9274 = vmatpush3.msra.mxu0 %v1706_v48 }
 0x46a   :  { %9275 = vmatprep.subr.mxu0 %v10238_v2 }
 0x51a   :  { %v1323_v50 = vpop.f32.mrf.mxu0 }
 0x51b   :  { %v1324_v54 = vadd.f32 %v8387_v49, %v1323_v50  ;;  %v1705_v50 = vld [vmem:[%s12094_s19 + $0x8] sm:$0xff] }
 0x51c   :  { %v9222_v51 = vpop.f32.mrf.mxu0  ;;  %9276 = vmatpush3.msra.mxu0 %v1705_v50 }
 0x51d   :  { %v8391_v56 = vmul.f32 -1.442695, %v1324_v54  ;;  %v1709_v51 = vld [vmem:[%s12094_s19 + $0x28] sm:$0xff]  ;;  %9277 = vmatprep.subr.mxu0 %v10238_v2 }
 0x51e   :  { %v1328_v55 = vpop.f32.mrf.mxu0 }
 0x51f   :  { %v1329_v9 = vadd.f32 %v8387_v49, %v1328_v55  ;;  %v1708_v55 = vld [vmem:[%s12094_s19 + $0x20] sm:$0xff] }
 0x520   :  { %v9225_v8 = vpop.f32.mrf.mxu0 }
 0x521   :  { %v8392_v10 = vmul.f32 -1.442695, %v1329_v9  ;;  %v8402_v8 = vld [vmem:[%s12093_s18] ss:$0 sm:$0xff] }
 0x522   :  { %v1333_v11 = vpop.f32.mrf.mxu0 }
 0x523   :  { %10015 = vpow2.f32 %v8392_v10  ;;  %v1334_v15 = vadd.f32 %v8387_v49, %v1333_v11  ;;  %v1710_v49 = vld [vmem:[%s12094_s19 + $0x30] sm:$0xff]  ;;  %v1875_v11 = vpop.permute.xlu0 %1874 }
 0x524   :  { %v9228_v57 = vpop.f32.mrf.mxu0  ;;  %10017 = vpow2.f32 %v8391_v56  ;;  %v1893_v56 = vpop.permute.xlu1 %1892  ;;  %vm1882_vm12 = vcmp.eq.s32.totalorder %v1875_v11, %v10452_v23 }
 0x525   :  { %v8393_v59 = vmul.f32 -1.442695, %v1334_v15  ;;  %vm1900_vm11 = vcmp.eq.s32.totalorder %v1893_v56, %v10452_v23 }
 0x526   :  { %v10674_v60 = vpop.f32.mrf.mxu0 }
 0x527   :  { %10019 = vpow2.f32 %v8393_v59 }
 0x528   :  { %v9259_v61 = vpop.f32.mrf.mxu0  ;;  %v1896_v59 = vpop.permute.xlu1 %1895 }
 0x529   :  { %v10775_v61 = vsel %vm1900_vm11, 1.0, %v10238_v2  ;;  %vm1901_vm13 = vcmp.eq.s32.totalorder %v1896_v59, %v10452_v23 }
 0x530   :  { %v10016_v62 = vpop.eup %10015 }
 0x531   :  { %v10018_v63 = vpop.eup %10017  ;;  %v1347_v0 = vadd.f32 1.0, %v10016_v62  ;;  %v10778_v62 = vsel %vm1882_vm12, 1.0, %v10238_v2 }
 0x532   :  { %v1346_v3 = vadd.f32 1.0, %v10018_v63 }
 0x533   :  { %10021 = vrcp.f32 %v1347_v0 }
 0x534   :  { %v10020_v1 = vpop.eup %10019 }
 0x535   :  { %v1348_v6 = vadd.f32 1.0, %v10020_v1  ;;  %v1909_v1 = vsub.f32 %v10778_v62, %v10775_v61 }
 0x537   :  { %10023 = vrcp.f32 %v1348_v6 }
 0x538   :  { %10025 = vrcp.f32 %v1346_v3  ;;  %v10797_v3 = vsel %vm1901_vm13, 1.0, %v10238_v2 }
 0x540   :  { %v10022_v7 = vpop.eup %10021 }
 0x541   :  { %v1356_v17 = vmul.f32 %v10022_v7, %v1329_v9 }
 0x544   :  { %v10024_v13 = vpop.eup %10023 }
 0x545   :  { %v1357_v14 = vmul.f32 %v10024_v13, %v1334_v15  ;;  %v10026_v16 = vpop.eup %10025 }
 0x546   :  { %v1355_v18 = vmul.f32 %v10026_v16, %v1324_v54  ;;  %v1704_v54 = vld [vmem:[%s12094_s19] sm:$0xff] }
 0x547   :  { %9230 = vmatpush3.msra.mxu1 %v1357_v14  ;;  %9278 = vmatpush3.msra.mxu0 %v1704_v54 }
 0x548   :  { %9231 = vmatprep.subr.mxu1 %v10238_v2  ;;  %9293 = vmatprep.subr.mxu0 %v10238_v2 }
 0x549   :  { %9232 = vmatpush3.msra.mxu1 %v1356_v17 }
 0x54a   :  { %9233 = vmatprep.subr.mxu1 %v10238_v2 }
 0x54b   :  { %9234 = vmatpush3.msra.mxu1 %v1355_v18 }
 0x54c   :  { %9236 = vmatmul.mubr.msk.f32.vlgmr.msra.gmra.mxu1 %vm1367_vm10, %v10682_v20  ;;  %9238 = vmatprep.subr.mxu1 %v10238_v2 }
 0x54d   :  { %9246 = vmatprep.mubr.msk.f32.mxu1 %vm10239_vm0, %v10238_v2  ;;  %9239 = vmatpush3.msra.mxu1 %v1452_v21 }
 0x54e   :  { %9240 = vmatprep.subr.mxu1 %v10238_v2 }
 0x54f   :  { %9241 = vmatpush3.msra.mxu1 %v1451_v22 }
 0x550   :  { %9242 = vmatprep.subr.mxu1 %v10238_v2 }
 0x551   :  { %9243 = vmatpush3.msra.mxu1 %v1450_v24 }
 0x552   :  { %9244 = vmatprep.subr.mxu1 %v10238_v2 }
 0x553   :  { %9245 = vmatpush3.msra.mxu1 %v1449_v25 }
 0x554   :  { %9260 = vmatprep.subr.mxu1 %v10238_v2 }
 0x60c   :  { %v1437_v27 = vpop.f32.mrf.mxu1 }
 0x60d   :  { %v1441_v28 = vadd.f32 %v1437_v27, %v1366_v26 }
 0x60e   :  { %v9237_v29 = vpop.f32.mrf.mxu1 }
 0x60f   :  { %1442 = vst.msk [vmem:[#allocation5] sm:$0xff] %vm418_vm5, %v1441_v28 }
 0x616   :  { %v1443_v30 = vld [vmem:[#allocation5] sm:$0xff] }
 0x617   :  { %9247 = vmatmul.mubr.msk.f32.vlgmr.msra.gmra.mxu1 %vm418_vm5, %v1443_v30  ;;  %3053 = vst.msk [vmem:[#allocation5] sm:$0xff] %vm418_vm5, %v10238_v2 }
 0x618   :  { %9268 = vmatprep.mubr.msk.f32.mxu1 %vm10239_vm0, %v10238_v2  ;;  %9261 = vmatpush3.msra.mxu1 %v1617_v31 }
 0x619   :  { %9262 = vmatprep.subr.mxu1 %v10238_v2 }
 0x61a   :  { %9263 = vmatpush3.msra.mxu1 %v1616_v32 }
 0x61b   :  { %9264 = vmatprep.subr.mxu1 %v10238_v2 }
 0x61c   :  { %9265 = vmatpush3.msra.mxu1 %v1615_v33 }
 0x61d   :  { %9266 = vmatprep.subr.mxu1 %v10238_v2 }
 0x61e   :  { %9267 = vmatpush3.msra.mxu1 %v1614_v34 }
 0x61f   :  { %9282 = vmatprep.subr.mxu1 %v10238_v2 }
 0x6d7   :  { %v1522_v35 = vpop.f32.mrf.mxu1 }
 0x6d8   :  { %v1596_v37 = vadd.f32 %v10674_v60, %v1522_v35  ;;  %v1878_v60 = vpop.permute.xlu0 %1877 }
 0x6d9   :  { %v9248_v38 = vpop.f32.mrf.mxu1  ;;  %vm1883_vm14 = vcmp.eq.s32.totalorder %v1878_v60, %v10452_v23 }
 0x6da   :  { %v1606_v40 = vadd.f32 %v8399_v36, %v1596_v37  ;;  %v10800_v6 = vsel %vm1883_vm14, 1.0, %v10238_v2 }
 0x6dc   :  { %v8400_v41 = vmul.f32 -1.442695, %v1606_v40  ;;  %v1881_v0 = vpop.permute.xlu0 %1880 }
 0x6dd   :  { %vm1884_vm6 = vcmp.eq.s32.totalorder %v1881_v0, %v10452_v23 }
 0x6de   :  { %10027 = vpow2.f32 %v8400_v41  ;;  %v8407_v7 = vsel %vm1884_vm6, 1.0, %v10238_v2 }
 0x6eb   :  { %v10028_v42 = vpop.eup %10027 }
 0x6ec   :  { %v1610_v43 = vadd.f32 1.0, %v10028_v42 }
 0x6ee   :  { %10029 = vrcp.f32 %v1610_v43 }
 0x6fb   :  { %v10030_v44 = vpop.eup %10029 }
 0x6fc   :  { %v1613_v45 = vmul.f32 %v10030_v44, %v1606_v40 }
 0x6fe   :  { %9269 = vmatmul.mubr.msk.f32.vlgmr.msra.gmra.mxu1 %vm418_vm5, %v1613_v45 }
 0x6ff   :  { %9290 = vmatprep.mubr.msk.f32.mxu1 %vm10239_vm0, %v10238_v2  ;;  %9283 = vmatpush3.msra.mxu1 %v1711_v47 }
 0x700   :  { %9284 = vmatprep.subr.mxu1 %v10238_v2 }
 0x701   :  { %9285 = vmatpush3.msra.mxu1 %v1710_v49 }
 0x702   :  { %9286 = vmatprep.subr.mxu1 %v10238_v2 }
 0x703   :  { %9287 = vmatpush3.msra.mxu1 %v1709_v51 }
 0x704   :  { %9288 = vmatprep.subr.mxu1 %v10238_v2 }
 0x705   :  { %9289 = vmatpush3.msra.mxu1 %v1708_v55 }
 0x706   :  { %9304 = vmatprep.subr.mxu1 %v10238_v2 }
 0x7be   :  { %v1687_v9 = vpop.f32.mrf.mxu1 }
 0x7bf   :  { %v1691_v10 = vadd.f32 %v1687_v9, %v10493_v39  ;;  %v1899_v39 = vpop.permute.xlu1 %1898 }
 0x7c0   :  { %v9270_v15 = vpop.f32.mrf.mxu1  ;;  %vm1902_vm15 = vcmp.eq.s32.totalorder %v1899_v39, %v10452_v23 }
 0x7c1   :  { %v1699_v57 = vadd.f32 %v8402_v8, %v1691_v10 }
 0x7c3   :  { %1700 = vst.msk [vmem:[#allocation2] sm:$0xff] %vm418_vm5, %v1699_v57 }
 0x7ca   :  { %v10780_v63 = vld [vmem:[#allocation2] sm:$0xff] }
 0x7cb   :  { %9280 = vmatmul.mubr.msk.f32.vlgmr.msra.gmra.mxu0 %vm418_vm5, %v10780_v63  ;;  %9291 = vmatmul.mubr.msk.f32.vlgmr.msra.gmra.mxu1 %vm418_vm5, %v10780_v63 }
 0x7cc   :  { %9294 = vmatpush3.msra.mxu0 %v10520_v52  ;;  %9305 = vmatpush3.msra.mxu1 %v10522_v53  ;;  %v1910_v52 = vsub.f32 %v10800_v6, %v10797_v3  ;;  %v8410_v53 = vsel %vm1902_vm15, 1.0, %v10238_v2 }
 0x7cd   :  { %9295 = vmatprep.mubr.msk.f32.mxu0 %vm10239_vm0, %v10238_v2  ;;  %9306 = vmatprep.mubr.msk.f32.mxu1 %vm10239_vm0, %v10238_v2  ;;  %v1911_v12 = vsub.f32 %v8407_v7, %v8410_v53 }
 0x7ce   :  { %9315 = vmatprep.subr.mxu0 %v10238_v2  ;;  %9326 = vmatprep.subr.mxu1 %v10238_v2 }
 0x7cf   :  { %9296 = vmatmul.mubr.msk.f32.vlgmr.msra.gmra.mxu0 %vm98_vm1, %v1909_v1  ;;  %9307 = vmatmul.mubr.msk.f32.vlgmr.msra.gmra.mxu1 %vm98_vm1, %v1909_v1 }
 0x7d0   :  { %9298 = vmatprep.mubr.msk.f32.mxu0 %vm10239_vm0, %v10238_v2  ;;  %9309 = vmatprep.mubr.msk.f32.mxu1 %vm10239_vm0, %v10238_v2 }
 0x7d1   :  { %9316 = vmatpush3.msk.msra.mxu0 %vm808_vm2, %v10240_v4  ;;  %9327 = vmatpush3.msk.msra.mxu1 %vm808_vm2, %v10240_v4 }
 0x7d2   :  { %9337 = vmatprep.subr.mxu0 %v10238_v2  ;;  %9348 = vmatprep.subr.mxu1 %v10238_v2 }
 0x7d3   :  { %9299 = vmatmul.mubr.msk.f32.gmra.mxu0 %vm98_vm1, %v1910_v52  ;;  %9310 = vmatmul.mubr.msk.f32.gmra.mxu1 %vm98_vm1, %v1910_v52 }
 0x7d4   :  { %9301 = vmatprep.mubr.msk.f32.mxu0 %vm10239_vm0, %v10238_v2  ;;  %9312 = vmatprep.mubr.msk.f32.mxu1 %vm10239_vm0, %v10238_v2 }
 0x7d7   :  { %9302 = vmatmul.mubr.msk.f32.gmra.mxu0 %vm98_vm1, %v1911_v12  ;;  %9313 = vmatmul.mubr.msk.f32.gmra.mxu1 %vm98_vm1, %v1911_v12 }
 0x7d8   :  { %9317 = vmatprep.mubr.msk.f32.mxu0 %vm10239_vm0, %v10238_v2  ;;  %9328 = vmatprep.mubr.msk.f32.mxu1 %vm10239_vm0, %v10238_v2 }
 0x88b   :  { %v1792_v13 = vpop.f32.mrf.mxu0  ;;  %v1862_v14 = vpop.f32.mrf.mxu1 }
 0x88d   :  { %v9281_v16 = vpop.f32.mrf.mxu0  ;;  %v9292_v17 = vpop.f32.mrf.mxu1 }
 0x88f   :  { %v10834_v18 = vpop.f32.mrf.mxu0  ;;  %v2067_v21 = vpop.f32.mrf.mxu1 }
 0x890   :  { %v2081_v22 = vmul.f32 %v10834_v18, %v10834_v18  ;;  %v2173_v24 = vmul.f32 %v2067_v21, %v2067_v21 }
 0x891   :  { %v9297_v25 = vpop.f32.mrf.mxu0  ;;  %v9308_v26 = vpop.f32.mrf.mxu1 }
 0x892   :  { %9318 = vmatmul.mubr.msk.f32.vlgmr.msra.gmra.mxu0 %vm328_vm9, %v2081_v22  ;;  %9329 = vmatmul.mubr.msk.f32.vlgmr.msra.gmra.mxu1 %vm328_vm9, %v2173_v24 }
 0x893   :  { %9338 = vmatpush3.msra.mxu0 %v1862_v14  ;;  %9349 = vmatpush3.msra.mxu1 %v1792_v13  ;;  %v10840_v27 = vpop.f32.mrf.mxu0  ;;  %v2072_v28 = vpop.f32.mrf.mxu1 }
 0x894   :  { %v2082_v29 = vmul.f32 %v10840_v27, %v10840_v27  ;;  %v2174_v30 = vmul.f32 %v2072_v28, %v2072_v28  ;;  %9320 = vmatprep.mubr.msk.f32.mxu0 %vm10239_vm0, %v10238_v2  ;;  %9331 = vmatprep.mubr.msk.f32.mxu1 %vm10239_vm0, %v10238_v2 }
 0x895   :  { %v9300_v31 = vpop.f32.mrf.mxu0  ;;  %v9311_v32 = vpop.f32.mrf.mxu1  ;;  %9359 = vmatprep.subr.mxu0 %v10238_v2  ;;  %9376 = vmatprep.subr.mxu1 %v10238_v2 }
 0x896   :  { %9321 = vmatmul.mubr.msk.f32.gmra.mxu0 %vm328_vm9, %v2082_v29  ;;  %9332 = vmatmul.mubr.msk.f32.gmra.mxu1 %vm328_vm9, %v2174_v30  ;;  %v1717_v32 = vld [vmem:[%s12096_s21 + $0x18] sm:$0xff] }
 0x897   :  { %v10852_v33 = vpop.f32.mrf.mxu0  ;;  %v2077_v34 = vpop.f32.mrf.mxu1  ;;  %9323 = vmatprep.mubr.msk.f32.mxu0 %vm10239_vm0, %v10238_v2  ;;  %9334 = vmatprep.mubr.msk.f32.mxu1 %vm10239_vm0, %v10238_v2 }
 0x898   :  { %v2083_v35 = vmul.f32 %v10852_v33, %v10852_v33  ;;  %v2175_v36 = vmul.f32 %v2077_v34, %v2077_v34 }
 0x899   :  { %v9303_v37 = vpop.f32.mrf.mxu0  ;;  %v9314_v38 = vpop.f32.mrf.mxu1 }
 0x89a   :  { %9324 = vmatmul.mubr.msk.f32.gmra.mxu0 %vm328_vm9, %v2083_v35  ;;  %9335 = vmatmul.mubr.msk.f32.gmra.mxu1 %vm328_vm9, %v2175_v36  ;;  %v1716_v35 = vld [vmem:[%s12096_s21 + $0x10] sm:$0xff]  ;;  %v1715_v36 = vld [vmem:[%s12096_s21 + $0x8] sm:$0xff]  ;;  %v1714_v37 = vld [vmem:[%s12096_s21] sm:$0xff] }
 0x89b   :  { %9339 = vmatprep.mubr.msk.f32.mxu0 %vm10239_vm0, %v10238_v2  ;;  %9350 = vmatprep.mubr.msk.f32.mxu1 %vm10239_vm0, %v10238_v2  ;;  %v1712_v38 = vld [vmem:[%s12094_s19 + $0x40] sm:$0x3] }
 0x89e   :  { %9340 = vmatmul.mubr.msk.f32.vlgmr.msra.gmra.mxu0 %vm98_vm1, %v10775_v61  ;;  %9351 = vmatmul.mubr.msk.f32.vlgmr.msra.gmra.mxu1 %vm98_vm1, %v10778_v62 }
 0x89f   :  { %9342 = vmatprep.mubr.msk.f32.mxu0 %vm10239_vm0, %v10238_v2  ;;  %9353 = vmatprep.mubr.msk.f32.mxu1 %vm10239_vm0, %v10238_v2 }
 0x8a0   :  { %9360 = vmatpush3.msra.mxu0 %v1717_v32 }
 0x8a1   :  { %9361 = vmatprep.subr.mxu0 %v10238_v2 }
 0x8a2   :  { %9343 = vmatmul.mubr.msk.f32.gmra.mxu0 %vm98_vm1, %v10797_v3  ;;  %9354 = vmatmul.mubr.msk.f32.gmra.mxu1 %vm98_vm1, %v10800_v6 }
 0x8a3   :  { %9345 = vmatprep.mubr.msk.f32.mxu0 %vm10239_vm0, %v10238_v2  ;;  %9356 = vmatprep.mubr.msk.f32.mxu1 %vm10239_vm0, %v10238_v2 }
 0x8a4   :  { %9362 = vmatpush3.msra.mxu0 %v1716_v35 }
 0x8a5   :  { %9363 = vmatprep.subr.mxu0 %v10238_v2 }
 0x8a6   :  { %9346 = vmatmul.mubr.msk.f32.gmra.mxu0 %vm98_vm1, %v8410_v53  ;;  %9357 = vmatmul.mubr.msk.f32.gmra.mxu1 %vm98_vm1, %v8407_v7 }
 0x8a7   :  { %9367 = vmatprep.mubr.msk.f32.mxu0 %vm10239_vm0, %v10238_v2  ;;  %9384 = vmatprep.mubr.msk.f32.mxu1 %vm10239_vm0, %v10238_v2 }
 0x8a8   :  { %9364 = vmatpush3.msra.mxu0 %v1715_v36 }
 0x8a9   :  { %9365 = vmatprep.subr.mxu0 %v10238_v2 }
 0x8aa   :  { %9366 = vmatpush3.msra.mxu0 %v1714_v37 }
 0x8ab   :  { %9393 = vmatprep.subr.mxu0 %v10238_v2 }
 0x952   :  { %v2159_v40 = vpop.f32.mrf.mxu0  ;;  %v2251_v41 = vpop.f32.mrf.mxu1 }
 0x953   :  { %2470 = vperm.xlu1 %10000, %v2251_v41   ;;  %2445 = vperm.xlu0 %9999, %v2159_v40   ;;  %v2731_v42 = vadd.f32 1e-08, %v2159_v40  ;;  %v2461_v40 = vrot.slane %v1712_v38, %v10629_v19  ;;  %v2486_v41 = vrot.slane %v1712_v38, %v10635_v58 }
 0x954   :  { %v9319_v43 = vpop.f32.mrf.mxu0  ;;  %v9330_v44 = vpop.f32.mrf.mxu1 }
 0x955   :  { %10031 = vrsqrt.f32 %v2731_v42  ;;  %vm2736_vm14 = vcmp.eq.f32.partialorder %v2731_v42, inf  ;;  %v2739_v29 = vand.u32 2147483648, %v2731_v42  ;;  %vm2738_vm6 = vcmp.eq.f32.partialorder %v2731_v42, 0.0 }
 0x956   :  { %v2164_v45 = vpop.f32.mrf.mxu0  ;;  %v2256_v46 = vpop.f32.mrf.mxu1 }
 0x957   :  { %v2732_v47 = vadd.f32 1e-08, %v2164_v45  ;;  %2475 = vperm.xlu1 %10000, %v2256_v46   ;;  %2450 = vperm.xlu0 %9999, %v2164_v45  }
 0x958   :  { %v9322_v48 = vpop.f32.mrf.mxu0  ;;  %v9333_v49 = vpop.f32.mrf.mxu1 }
 0x959   :  { %10033 = vrsqrt.f32 %v2732_v47  ;;  %vm2743_vm11 = vcmp.eq.f32.partialorder %v2732_v47, inf  ;;  %v2746_v12 = vand.u32 2147483648, %v2732_v47  ;;  %vm2745_vm12 = vcmp.eq.f32.partialorder %v2732_v47, 0.0 }
 0x95a   :  { %v2169_v50 = vpop.f32.mrf.mxu0  ;;  %v2261_v51 = vpop.f32.mrf.mxu1 }
 0x95b   :  { %v2733_v54 = vadd.f32 1e-08, %v2169_v50  ;;  %2480 = vperm.xlu1 %10000, %v2261_v51   ;;  %2455 = vperm.xlu0 %9999, %v2169_v50  }
 0x95c   :  { %v9325_v55 = vpop.f32.mrf.mxu0  ;;  %v9336_v9 = vpop.f32.mrf.mxu1 }
 0x95d   :  { %10035 = vrsqrt.f32 %v2733_v54  ;;  %vm2750_vm13 = vcmp.eq.f32.partialorder %v2733_v54, inf  ;;  %v2753_v24 = vand.u32 2147483648, %v2733_v54  ;;  %vm2752_vm15 = vcmp.eq.f32.partialorder %v2733_v54, 0.0 }
 0x95e   :  { %v2340_v8 = vpop.f32.mrf.mxu0  ;;  %v2429_v56 = vpop.f32.mrf.mxu1 }
 0x95f   :  { %v2430_v10 = vadd.f32 %v2429_v56, %v2340_v8 }
 0x960   :  { %v9341_v11 = vpop.f32.mrf.mxu0  ;;  %v9352_v15 = vpop.f32.mrf.mxu1 }
 0x962   :  { %v2345_v57 = vpop.f32.mrf.mxu0  ;;  %v2434_v59 = vpop.f32.mrf.mxu1 }
 0x963   :  { %v2435_v60 = vadd.f32 %v2434_v59, %v2345_v57  ;;  %v10032_v39 = vpop.eup %10031 }
 0x964   :  { %v9344_v61 = vpop.f32.mrf.mxu0  ;;  %v9355_v62 = vpop.f32.mrf.mxu1  ;;  %v2735_v14 = vmul.f32 %v10032_v39, %v2731_v42 }
 0x966   :  { %v10034_v0 = vpop.eup %10033  ;;  %v2350_v1 = vpop.f32.mrf.mxu0  ;;  %v2737_v26 = vsel %vm2736_vm14, %v2731_v42, %v2735_v14 }
 0x967   :  { %v2439_v3 = vpop.f32.mrf.mxu1  ;;  %v2742_v52 = vmul.f32 %v10034_v0, %v2732_v47  ;;  %v2740_v31 = vsel %vm2738_vm6, %v2739_v29, %v2737_v26  ;;  %v1719_v26 = vld [vmem:[%s12098_s23] sm:$0xff] }
 0x968   :  { %v10888_v6 = vadd.f32 %v2439_v3, %v2350_v1  ;;  %v9347_v53 = vpop.f32.mrf.mxu0  ;;  %v2755_v34 = vadd.f32 1.0, %v2740_v31 }
 0x969   :  { %v9358_v7 = vpop.f32.mrf.mxu1  ;;  %v2744_v13 = vsel %vm2743_vm11, %v2732_v47, %v2742_v52  ;;  %v8431_v47 = vld [vmem:[%s12095_s20] ss:$0 sm:$0xff] }
 0x96a   :  { %v10036_v16 = vpop.eup %10035  ;;  %v2747_v17 = vsel %vm2745_vm12, %v2746_v12, %v2744_v13 }
 0x96b   :  { %v2756_v21 = vadd.f32 1.0, %v2747_v17  ;;  %v2749_v22 = vmul.f32 %v10036_v16, %v2733_v54 }
 0x96d   :  { %2765 = vperm.xlu1 %10000, %v2756_v21   ;;  %v2751_v25 = vsel %vm2750_vm13, %v2733_v54, %v2749_v22  ;;  %v1722_v22 = vld [vmem:[%s12098_s23 + $0x18] sm:$0xff] }
 0x96e   :  { %v2754_v28 = vsel %vm2752_vm15, %v2753_v24, %v2751_v25  ;;  %9377 = vmatpush3.msra.mxu1 %v1722_v22  ;;  %v1721_v24 = vld [vmem:[%s12098_s23 + $0x10] sm:$0xff]  ;;  %v1720_v25 = vld [vmem:[%s12098_s23 + $0x8] sm:$0xff] }
 0x96f   :  { %v2757_v30 = vadd.f32 1.0, %v2754_v28  ;;  %9378 = vmatprep.subr.mxu1 %v10238_v2  ;;  %v8435_v28 = vld [vmem:[%s12097_s22] ss:$0 sm:$0xff] }
 0x970   :  { %9379 = vmatpush3.msra.mxu1 %v1721_v24 }
 0x971   :  { %2770 = vperm.xlu0 %9999, %v2757_v30   ;;  %9380 = vmatprep.subr.mxu1 %v10238_v2 }
 0x972   :  { %9381 = vmatpush3.msra.mxu1 %v1720_v25 }
 0x973   :  { %9382 = vmatprep.subr.mxu1 %v10238_v2 }
 0x974   :  { %9383 = vmatpush3.msra.mxu1 %v1719_v26 }
 0x975   :  { %2760 = vperm.xlu0 %9999, %v2755_v34   ;;  %9402 = vmatprep.subr.mxu1 %v10238_v2 }
 0x9ce   :  { %v2471_v42 = vpop.permute.xlu1 %2470  ;;  %v2446_v43 = vpop.permute.xlu0 %2445 }
 0x9cf   :  { %v2462_v44 = vmul.f32 %v2461_v40, %v2446_v43  ;;  %v2487_v45 = vmul.f32 %v2486_v41, %v2471_v42 }
 0x9d1   :  { %v2465_v46 = vadd.f32 %v2462_v44, %v2430_v10 }
 0x9d2   :  { %v2476_v48 = vpop.permute.xlu1 %2475  ;;  %v2451_v49 = vpop.permute.xlu0 %2450 }
 0x9d3   :  { %v2490_v50 = vadd.f32 %v2487_v45, %v2465_v46  ;;  %v2463_v51 = vmul.f32 %v2461_v40, %v2451_v49  ;;  %v2488_v55 = vmul.f32 %v2486_v41, %v2476_v48 }
 0x9d5   :  { %v2499_v54 = vadd.f32 %v8431_v47, %v2490_v50  ;;  %v2466_v9 = vadd.f32 %v2463_v51, %v2435_v60  ;;  %v8451_v51 = vld [vmem:[%s12086_s11 + $0x60] sm:$0xff] }
 0x9d6   :  { %v2481_v8 = vpop.permute.xlu1 %2480  ;;  %v2456_v56 = vpop.permute.xlu0 %2455 }
 0x9d7   :  { %v8432_v11 = vmul.f32 -1.442695, %v2499_v54  ;;  %v2491_v15 = vadd.f32 %v2488_v55, %v2466_v9  ;;  %v2464_v57 = vmul.f32 %v2461_v40, %v2456_v56  ;;  %v2489_v61 = vmul.f32 %v2486_v41, %v2481_v8  ;;  %v8449_v8 = vld [vmem:[%s12086_s11 + $0x50] sm:$0xff]  ;;  %v8448_v56 = vld [vmem:[%s12086_s11 + $0x48] sm:$0xff] }
 0x9d9   :  { %10037 = vpow2.f32 %v8432_v11  ;;  %v2500_v59 = vadd.f32 %v8431_v47, %v2491_v15  ;;  %v2467_v10 = vadd.f32 %v2464_v57, %v10888_v6 }
 0x9db   :  { %v8433_v62 = vmul.f32 -1.442695, %v2500_v59  ;;  %v2492_v39 = vadd.f32 %v2489_v61, %v2467_v10 }
 0x9dd   :  { %10039 = vpow2.f32 %v8433_v62  ;;  %v2501_v0 = vadd.f32 %v8431_v47, %v2492_v39 }
 0x9df   :  { %v8434_v1 = vmul.f32 -1.442695, %v2501_v0 }
 0x9e1   :  { %10041 = vpow2.f32 %v8434_v1 }
 0x9e6   :  { %v10038_v3 = vpop.eup %10037 }
 0x9e7   :  { %v2511_v52 = vadd.f32 1.0, %v10038_v3 }
 0x9e9   :  { %10043 = vrcp.f32 %v2511_v52  ;;  %v10977_v52 = vld [vmem:[%s12116_s7] sm:$0xff] }
 0x9ea   :  { %v10040_v60 = vpop.eup %10039 }
 0x9eb   :  { %v2512_v53 = vadd.f32 1.0, %v10040_v60 }
 0x9ed   :  { %10045 = vrcp.f32 %v2512_v53  ;;  %v10983_v53 = vld [vmem:[%s12116_s7 + $0x8] sm:$0xff] }
 0x9ee   :  { %v10042_v7 = vpop.eup %10041 }
 0x9ef   :  { %v2513_v12 = vadd.f32 1.0, %v10042_v7 }
 0x9f1   :  { %10047 = vrcp.f32 %v2513_v12  ;;  %v10989_v12 = vld [vmem:[%s12116_s7 + $0x10] sm:$0xff] }
 0x9f6   :  { %v10044_v13 = vpop.eup %10043 }
 0x9f7   :  { %v2520_v14 = vmul.f32 %v10044_v13, %v2499_v54  ;;  %v8450_v54 = vld [vmem:[%s12086_s11 + $0x58] sm:$0xff]  ;;  %v10994_v13 = vld [vmem:[%s12117_s25] sm:$0xff] }
 0x9f9   :  { %9368 = vmatmul.mubr.msk.f32.vlgmr.msra.gmra.mxu0 %vm418_vm5, %v2520_v14  ;;  %v11001_v14 = vld [vmem:[%s12117_s25 + $0x8] sm:$0xff] }
 0x9fa   :  { %v10046_v6 = vpop.eup %10045  ;;  %9370 = vmatprep.mubr.msk.f32.mxu0 %vm10239_vm0, %v10238_v2 }
 0x9fb   :  { %v2521_v16 = vmul.f32 %v10046_v6, %v2500_v59  ;;  %v11007_v6 = vld [vmem:[%s12117_s25 + $0x10] sm:$0xff] }
 0x9fd   :  { %9371 = vmatmul.mubr.msk.f32.gmra.mxu0 %vm418_vm5, %v2521_v16  ;;  %v2771_v16 = vpop.permute.xlu0 %2770 }
 0x9fe   :  { %v10048_v17 = vpop.eup %10047  ;;  %9373 = vmatprep.mubr.msk.f32.mxu0 %vm10239_vm0, %v10238_v2 }
 0x9ff   :  { %v2522_v21 = vmul.f32 %v10048_v17, %v2501_v0  ;;  %v2766_v17 = vpop.permute.xlu1 %2765 }
 0xa01   :  { %9374 = vmatmul.mubr.msk.f32.gmra.mxu0 %vm418_vm5, %v2522_v21  ;;  %v2761_v21 = vpop.permute.xlu0 %2760 }
 0xa02   :  { %9399 = vmatprep.mubr.msk.f32.mxu0 %vm10239_vm0, %v10238_v2 }
 0xab9   :  { %v2604_v29 = vpop.f32.mrf.mxu0 }
 0xaba   :  { %v2605_v30 = vadd.f32 %v8435_v28, %v2604_v29 }
 0xabb   :  { %v9369_v31 = vpop.f32.mrf.mxu0 }
 0xabc   :  { %v8439_v32 = vmul.f32 -1.442695, %v2605_v30 }
 0xabd   :  { %v2609_v34 = vpop.f32.mrf.mxu0 }
 0xabe   :  { %10049 = vpow2.f32 %v8439_v32  ;;  %v2610_v35 = vadd.f32 %v8435_v28, %v2609_v34 }
 0xabf   :  { %v9372_v36 = vpop.f32.mrf.mxu0 }
 0xac0   :  { %v8440_v37 = vmul.f32 -1.442695, %v2610_v35 }
 0xac1   :  { %v2614_v38 = vpop.f32.mrf.mxu0 }
 0xac2   :  { %10051 = vpow2.f32 %v8440_v37  ;;  %v2615_v40 = vadd.f32 %v8435_v28, %v2614_v38 }
 0xac3   :  { %v9375_v41 = vpop.f32.mrf.mxu0 }
 0xac4   :  { %v8441_v42 = vmul.f32 -1.442695, %v2615_v40 }
 0xac6   :  { %10053 = vpow2.f32 %v8441_v42  ;;  %v8453_v42 = vld [vmem:[%s12086_s11 + $0x70] sm:$0xff] }
 0xacb   :  { %v10050_v43 = vpop.eup %10049 }
 0xacc   :  { %v2627_v44 = vadd.f32 1.0, %v10050_v43 }
 0xace   :  { %10055 = vrcp.f32 %v2627_v44 }
 0xacf   :  { %v10052_v45 = vpop.eup %10051 }
 0xad0   :  { %v2628_v46 = vadd.f32 1.0, %v10052_v45 }
 0xad2   :  { %10057 = vrcp.f32 %v2628_v46  ;;  %v11044_v46 = vld [vmem:[#allocation4] sm:$0xff] }
 0xad3   :  { %v10054_v47 = vpop.eup %10053 }
 0xad4   :  { %v2629_v48 = vadd.f32 1.0, %v10054_v47 }
 0xad6   :  { %10059 = vrcp.f32 %v2629_v48 }
 0xadb   :  { %v10056_v49 = vpop.eup %10055 }
 0xadc   :  { %v2636_v50 = vmul.f32 %v10056_v49, %v2605_v30 }
 0xade   :  { %9385 = vmatmul.mubr.msk.f32.vlgmr.msra.gmra.mxu1 %vm418_vm5, %v2636_v50 }
 0xadf   :  { %v10058_v55 = vpop.eup %10057  ;;  %9387 = vmatprep.mubr.msk.f32.mxu1 %vm10239_vm0, %v10238_v2  ;;  %9403 = vmatpush3.msra.mxu1 %v8451_v51 }
 0xae0   :  { %v2637_v9 = vmul.f32 %v10058_v55, %v2610_v35  ;;  %9404 = vmatprep.subr.mxu1 %v10238_v2 }
 0xae1   :  { %9405 = vmatpush3.msra.mxu1 %v8450_v54 }
 0xae2   :  { %9388 = vmatmul.mubr.msk.f32.gmra.mxu1 %vm418_vm5, %v2637_v9  ;;  %9406 = vmatprep.subr.mxu1 %v10238_v2 }
 0xae3   :  { %v10060_v11 = vpop.eup %10059  ;;  %9390 = vmatprep.mubr.msk.f32.mxu1 %vm10239_vm0, %v10238_v2  ;;  %9407 = vmatpush3.msra.mxu1 %v8449_v8 }
 0xae4   :  { %v2638_v15 = vmul.f32 %v10060_v11, %v2615_v40  ;;  %9408 = vmatprep.subr.mxu1 %v10238_v2 }
 0xae5   :  { %9409 = vmatpush3.msra.mxu1 %v8448_v56  ;;  %v2808_v56 = vld [vmem:[#allocation6] sm:$0xff] }
 0xae6   :  { %9391 = vmatmul.mubr.msk.f32.gmra.mxu1 %vm418_vm5, %v2638_v15  ;;  %9424 = vmatprep.subr.mxu1 %v10238_v2 }
 0xae7   :  { %9410 = vmatprep.mubr.msk.f32.mxu1 %vm10239_vm0, %v10238_v2 }
 0xaea   :  { %9411 = vmatmul.mubr.msk.f32.vlgmr.msra.gmra.mxu1 %vm418_vm5, %v10780_v63 }
 0xaeb   :  { %9426 = vmatprep.mubr.msk.f32.mxu1 %vm10239_vm0, %v10238_v2 }
 0xb9e   :  { %v2714_v57 = vpop.f32.mrf.mxu1 }
 0xba0   :  { %v9386_v59 = vpop.f32.mrf.mxu1 }
 0xba2   :  { %v2719_v61 = vpop.f32.mrf.mxu1 }
 0xba3   :  { %10061 = vtanh.f32 %v2719_v61 }
 0xba4   :  { %v9389_v10 = vpop.f32.mrf.mxu1 }
 0xba6   :  { %v2724_v62 = vpop.f32.mrf.mxu1 }
 0xba7   :  { %10063 = vtanh.f32 %v2724_v62  ;;  %v10215_v62 = vld [vmem:[#allocation3] sm:$0xff] }
 0xba8   :  { %v9392_v39 = vpop.f32.mrf.mxu1  ;;  %10065 = vtanh.f32 %v2714_v57 }
 0xba9   :  { %10067 = vrcp.f32 %v2766_v17 }
 0xbaa   :  { %v10972_v0 = vpop.f32.mrf.mxu1  ;;  %10069 = vrcp.f32 %v2771_v16 }
 0xbab   :  { %10071 = vrcp.f32 %v2761_v21 }
 0xbac   :  { %v9412_v1 = vpop.f32.mrf.mxu1 }
 0xbb0   :  { %v10062_v3 = vpop.eup %10061 }
 0xbb1   :  { %2786 = vperm.xlu0 %9999, %v10062_v3  }
 0xbb4   :  { %v10064_v60 = vpop.eup %10063 }
 0xbb5   :  { %3061 = vperm.xlu0 %9999, %v10977_v52   ;;  %2791 = vperm.xlu1 %10000, %v10064_v60   ;;  %v10066_v7 = vpop.eup %10065 }
 0xbb6   :  { %v10068_v22 = vpop.eup %10067 }
 0xbb7   :  { %v10070_v24 = vpop.eup %10069  ;;  %v2776_v26 = vmul.f32 %v10068_v22, %v10840_v27 }
 0xbb8   :  { %v2778_v28 = vmul.f32 %v10070_v24, %v10852_v33  ;;  %v10072_v29 = vpop.eup %10071  ;;  %v8455_v33 = vld [vmem:[%s12086_s11 + $0x80] sm:$0xff] }
 0xbb9   :  { %3064 = vperm.xlu0 %9999, %v10983_v53   ;;  %2781 = vperm.xlu1 %10000, %v10066_v7   ;;  %v2774_v35 = vmul.f32 %v10072_v29, %v10834_v18  ;;  %v8454_v18 = vld [vmem:[%s12086_s11 + $0x78] sm:$0xff] }
 0xbbd   :  { %3067 = vperm.xlu0 %9999, %v10989_v12   ;;  %3079 = vperm.xlu1 %10000, %v10994_v13  }
 0xbc1   :  { %3082 = vperm.xlu1 %10000, %v11001_v14  }
 0xbc5   :  { %3085 = vperm.xlu1 %10000, %v11007_v6  }
 0xc2c   :  { %v2787_v25 = vpop.permute.xlu0 %2786 }
 0xc2d   :  { %v2795_v31 = vmul.f32 %v2787_v25, %v2776_v26 }
 0xc2f   :  { %v2798_v37 = vmul.f32 15.0, %v2795_v31 }
 0xc30   :  { %v2792_v30 = vpop.permute.xlu1 %2791  ;;  %v3062_v41 = vpop.permute.xlu0 %3061 }
 0xc31   :  { %v2796_v32 = vmul.f32 %v2792_v30, %v2778_v28  ;;  %vm3069_vm12 = vcmp.eq.s32.totalorder %v3062_v41, %v10452_v23 }
 0xc32   :  { %v8465_v47 = vsel %vm3069_vm12, 1.0, %v10238_v2 }
 0xc33   :  { %v2799_v34 = vmul.f32 15.0, %v2796_v32 }
 0xc34   :  { %v2782_v36 = vpop.permute.xlu1 %2781  ;;  %v3065_v44 = vpop.permute.xlu0 %3064 }
 0xc35   :  { %v2794_v38 = vmul.f32 %v2782_v36, %v2774_v35  ;;  %9394 = vmatpush3.msra.mxu0 %v2799_v34  ;;  %vm3070_vm14 = vcmp.eq.s32.totalorder %v3065_v44, %v10452_v23 }
 0xc36   :  { %9395 = vmatprep.subr.mxu0 %v10238_v2  ;;  %v8466_v51 = vsel %vm3070_vm14, 1.0, %v10238_v2 }
 0xc37   :  { %v2797_v40 = vmul.f32 15.0, %v2794_v38  ;;  %9396 = vmatpush3.msra.mxu0 %v2798_v37 }
 0xc38   :  { %9397 = vmatprep.subr.mxu0 %v10238_v2  ;;  %v3080_v27 = vpop.permute.xlu1 %3079  ;;  %v3068_v50 = vpop.permute.xlu0 %3067 }
 0xc39   :  { %9398 = vmatpush3.msra.mxu0 %v2797_v40  ;;  %vm3087_vm11 = vcmp.eq.s32.totalorder %v3080_v27, %v10452_v23  ;;  %vm3071_vm6 = vcmp.eq.s32.totalorder %v3068_v50, %v10452_v23 }
 0xc3a   :  { %9400 = vmatmul.mubr.msk.f32.vlgmr.msra.gmra.mxu0 %vm1367_vm10, %v10682_v20  ;;  %9413 = vmatprep.subr.mxu0 %v10238_v2  ;;  %v8452_v20 = vld [vmem:[%s12086_s11 + $0x68] sm:$0xff]  ;;  %v11038_v45 = vsel %vm3087_vm11, 1.0, %v10238_v2  ;;  %v8467_v9 = vsel %vm3071_vm6, 1.0, %v10238_v2 }
 0xc3b   :  { %9414 = vmatpush3.msra.mxu0 %v8455_v33  ;;  %9421 = vmatprep.mubr.msk.f32.mxu0 %vm10239_vm0, %v10238_v2  ;;  %v3096_v49 = vsub.f32 %v8465_v47, %v11038_v45 }
 0xc3c   :  { %9415 = vmatprep.subr.mxu0 %v10238_v2  ;;  %v3083_v43 = vpop.permute.xlu1 %3082 }
 0xc3d   :  { %9416 = vmatpush3.msra.mxu0 %v8454_v18  ;;  %vm3088_vm13 = vcmp.eq.s32.totalorder %v3083_v43, %v10452_v23 }
 0xc3e   :  { %9417 = vmatprep.subr.mxu0 %v10238_v2 }
 0xc3f   :  { %9418 = vmatpush3.msra.mxu0 %v8453_v42 }
 0xc40   :  { %9419 = vmatprep.subr.mxu0 %v10238_v2  ;;  %v3086_v48 = vpop.permute.xlu1 %3085 }
 0xc41   :  { %9420 = vmatpush3.msra.mxu0 %v8452_v20  ;;  %vm3089_vm15 = vcmp.eq.s32.totalorder %v3086_v48, %v10452_v23 }
 0xc42   :  { %9422 = vmatmul.mubr.msk.f32.vlgmr.msra.gmra.mxu0 %vm418_vm5, %v10780_v63  ;;  %9435 = vmatprep.subr.mxu0 %v10238_v2  ;;  %v11054_v63 = vsel %vm3088_vm13, 1.0, %v10238_v2  ;;  %v11067_v55 = vsel %vm3089_vm15, 1.0, %v10238_v2 }
 0xc43   :  { %9436 = vmatpush3.msra.mxu0 %v11044_v46  ;;  %9437 = vmatprep.mubr.msk.f32.mxu0 %vm10239_vm0, %v10238_v2  ;;  %v3097_v54 = vsub.f32 %v8466_v51, %v11054_v63  ;;  %v3098_v8 = vsub.f32 %v8467_v9, %v11067_v55 }
 0xc44   :  { %9457 = vmatprep.subr.mxu0 %v10238_v2 }
 0xc46   :  { %9438 = vmatmul.mubr.msk.f32.vlgmr.msra.gmra.mxu0 %vm98_vm1, %v3096_v49 }
 0xc47   :  { %9440 = vmatprep.mubr.msk.f32.mxu0 %vm10239_vm0, %v10238_v2  ;;  %9458 = vmatpush3.msk.msra.mxu0 %vm808_vm2, %v10240_v4 }
 0xc48   :  { %9479 = vmatprep.subr.mxu0 %v10238_v2 }
 0xc4a   :  { %9441 = vmatmul.mubr.msk.f32.gmra.mxu0 %vm98_vm1, %v3097_v54 }
 0xc4b   :  { %9443 = vmatprep.mubr.msk.f32.mxu0 %vm10239_vm0, %v10238_v2 }
 0xc4e   :  { %9444 = vmatmul.mubr.msk.f32.gmra.mxu0 %vm98_vm1, %v3098_v8 }
 0xc4f   :  { %9459 = vmatprep.mubr.msk.f32.mxu0 %vm10239_vm0, %v10238_v2 }
 0xcfa   :  { %v2878_v11 = vpop.f32.mrf.mxu0 }
 0xcfb   :  { %v2882_v15 = vadd.f32 %v2878_v11, %v2808_v56 }
 0xcfc   :  { %v9401_v57 = vpop.f32.mrf.mxu0 }
 0xcfd   :  { %2883 = vst.msk [vmem:[#allocation6] sm:$0xff] %vm328_vm9, %v2882_v15 }
 0xd02   :  { %v3049_v59 = vpop.f32.mrf.mxu0 }
 0xd04   :  { %v2885_v61 = vld [vmem:[#allocation6] sm:$0xff]  ;;  %v9423_v10 = vpop.f32.mrf.mxu0 }
 0xd05   :  { %v2886_v39 = vadd.f32 %v10215_v62, %v2885_v61  ;;  %4342 = vst.msk [vmem:[#allocation6] sm:$0xff] %vm328_vm9, %v10238_v2 }
 0xd06   :  { %v3254_v1 = vpop.f32.mrf.mxu0 }
 0xd07   :  { %2887 = vst.msk [vmem:[#allocation3] sm:$0xff] %vm328_vm9, %v2886_v39  ;;  %v3360_v3 = vmul.f32 %v3254_v1, %v3254_v1  ;;  %v8491_v1 = vld [vmem:[%s12087_s12 + $0x1] ss:$0 sm:$0xff] }
 0xd08   :  { %v9439_v60 = vpop.f32.mrf.mxu0 }
 0xd09   :  { %9460 = vmatmul.mubr.msk.f32.vlgmr.msra.gmra.mxu0 %vm328_vm9, %v3360_v3 }
 0xd0a   :  { %9480 = vmatpush3.msra.mxu0 %v10972_v0  ;;  %v3259_v7 = vpop.f32.mrf.mxu0  ;;  %9462 = vmatprep.mubr.msk.f32.mxu0 %vm10239_vm0, %v10238_v2 }
 0xd0b   :  { %v3361_v16 = vmul.f32 %v3259_v7, %v3259_v7  ;;  %9507 = vmatprep.subr.mxu0 %v10238_v2 }
 0xd0c   :  { %v9442_v17 = vpop.f32.mrf.mxu0 }
 0xd0d   :  { %9463 = vmatmul.mubr.msk.f32.gmra.mxu0 %vm328_vm9, %v3361_v16 }
 0xd0e   :  { %v3264_v21 = vpop.f32.mrf.mxu0  ;;  %v11087_v22 = vld [vmem:[#allocation3] sm:$0xff]  ;;  %9465 = vmatprep.mubr.msk.f32.mxu0 %vm10239_vm0, %v10238_v2 }
 0xd0f   :  { %v3362_v24 = vmul.f32 %v3264_v21, %v3264_v21  ;;  %9425 = vmatpush3.msra.mxu1 %v11087_v22 }
 0xd10   :  { %9427 = vmatmul.mubr.msk.f32.vlgmr.msra.gmra.mxu1 %vm98_vm1, %v3096_v49  ;;  %v9445_v0 = vpop.f32.mrf.mxu0  ;;  %9446 = vmatprep.subr.mxu1 %v10238_v2 }
 0xd11   :  { %9466 = vmatmul.mubr.msk.f32.gmra.mxu0 %vm328_vm9, %v3362_v24  ;;  %9429 = vmatprep.mubr.msk.f32.mxu1 %vm10239_vm0, %v10238_v2 }
 0xd12   :  { %9481 = vmatprep.mubr.msk.f32.mxu0 %vm10239_vm0, %v10238_v2  ;;  %9447 = vmatpush3.msk.msra.mxu1 %vm808_vm2, %v10240_v4 }
 0xd13   :  { %9468 = vmatprep.subr.mxu1 %v10238_v2 }
 0xd14   :  { %9430 = vmatmul.mubr.msk.f32.gmra.mxu1 %vm98_vm1, %v3097_v54 }
 0xd15   :  { %9482 = vmatmul.mubr.msk.f32.vlgmr.msra.gmra.mxu0 %vm98_vm1, %v8465_v47  ;;  %9432 = vmatprep.mubr.msk.f32.mxu1 %vm10239_vm0, %v10238_v2 }
 0xd16   :  { %9484 = vmatprep.mubr.msk.f32.mxu0 %vm10239_vm0, %v10238_v2 }
 0xd18   :  { %9433 = vmatmul.mubr.msk.f32.gmra.mxu1 %vm98_vm1, %v3098_v8  ;;  %v8456_v8 = vld [vmem:[%s12086_s11 + $0x88] sm:$0x3] }
 0xd19   :  { %9485 = vmatmul.mubr.msk.f32.gmra.mxu0 %vm98_vm1, %v8466_v51  ;;  %9448 = vmatprep.mubr.msk.f32.mxu1 %vm10239_vm0, %v10238_v2  ;;  %v3648_v11 = vrot.slane %v8456_v8, %v10629_v19  ;;  %v3673_v15 = vrot.slane %v8456_v8, %v10635_v58 }
 0xd1a   :  { %9487 = vmatprep.mubr.msk.f32.mxu0 %vm10239_vm0, %v10238_v2 }
 0xd1d   :  { %9488 = vmatmul.mubr.msk.f32.gmra.mxu0 %vm98_vm1, %v8467_v9  ;;  %v8461_v9 = vld [vmem:[%s12088_s13 + $0x38] sm:$0xff] }
 0xd1e   :  { %9513 = vmatprep.mubr.msk.f32.mxu0 %vm10239_vm0, %v10238_v2 }
 0xdc9   :  { %v3438_v25 = vpop.f32.mrf.mxu0 }
 0xdca   :  { %3657 = vperm.xlu1 %10000, %v3438_v25  }
 0xdcb   :  { %v9461_v26 = vpop.f32.mrf.mxu0 }
 0xdcd   :  { %v3443_v28 = vpop.f32.mrf.mxu0 }
 0xdce   :  { %3662 = vperm.xlu1 %10000, %v3443_v28  }
 0xdcf   :  { %v9464_v29 = vpop.f32.mrf.mxu0 }
 0xdd0   :  { %v3174_v30 = vpop.f32.mrf.mxu1 }
 0xdd1   :  { %v3268_v31 = vmul.f32 %v3174_v30, %v3174_v30  ;;  %v3448_v32 = vpop.f32.mrf.mxu0 }
 0xdd2   :  { %v9428_v34 = vpop.f32.mrf.mxu1  ;;  %3667 = vperm.xlu1 %10000, %v3448_v32  }
 0xdd3   :  { %9449 = vmatmul.mubr.msk.f32.vlgmr.msra.gmra.mxu1 %vm328_vm9, %v3268_v31  ;;  %v9467_v35 = vpop.f32.mrf.mxu0 }
 0xdd4   :  { %9469 = vmatpush3.msra.mxu1 %v3049_v59  ;;  %v3179_v36 = vpop.f32.mrf.mxu1  ;;  %9451 = vmatprep.mubr.msk.f32.mxu1 %vm10239_vm0, %v10238_v2 }
 0xdd5   :  { %v3269_v37 = vmul.f32 %v3179_v36, %v3179_v36  ;;  %v3616_v38 = vpop.f32.mrf.mxu0  ;;  %9490 = vmatprep.subr.mxu1 %v10238_v2 }
 0xdd6   :  { %v9431_v40 = vpop.f32.mrf.mxu1  ;;  %4368 = vperm.xlu1 %10000, %v10994_v13  }
 0xdd7   :  { %9452 = vmatmul.mubr.msk.f32.gmra.mxu1 %vm328_vm9, %v3269_v37  ;;  %v9483_v27 = vpop.f32.mrf.mxu0 }
 0xdd8   :  { %v3184_v33 = vpop.f32.mrf.mxu1  ;;  %9454 = vmatprep.mubr.msk.f32.mxu1 %vm10239_vm0, %v10238_v2 }
 0xdd9   :  { %v3270_v41 = vmul.f32 %v3184_v33, %v3184_v33  ;;  %v3621_v18 = vpop.f32.mrf.mxu0 }
 0xdda   :  { %v9434_v42 = vpop.f32.mrf.mxu1  ;;  %4371 = vperm.xlu1 %10000, %v11001_v14  }
 0xddb   :  { %9455 = vmatmul.mubr.msk.f32.gmra.mxu1 %vm328_vm9, %v3270_v41  ;;  %v9486_v43 = vpop.f32.mrf.mxu0 }
 0xddc   :  { %9470 = vmatprep.mubr.msk.f32.mxu1 %vm10239_vm0, %v10238_v2 }
 0xddd   :  { %v3626_v20 = vpop.f32.mrf.mxu0 }
 0xdde   :  { %4374 = vperm.xlu1 %10000, %v11007_v6  }
 0xddf   :  { %9471 = vmatmul.mubr.msk.f32.vlgmr.msra.gmra.mxu1 %vm98_vm1, %v11038_v45  ;;  %v9489_v13 = vpop.f32.mrf.mxu0 }
 0xde0   :  { %9473 = vmatprep.mubr.msk.f32.mxu1 %vm10239_vm0, %v10238_v2  ;;  %9491 = vmatpush3.msra.mxu1 %v8461_v9  ;;  %v8508_v13 = vld [vmem:[%s12090_s15 + $0x58] sm:$0xff] }
 0xde1   :  { %9492 = vmatprep.subr.mxu1 %v10238_v2 }
 0xde3   :  { %9474 = vmatmul.mubr.msk.f32.gmra.mxu1 %vm98_vm1, %v11054_v63 }
 0xde4   :  { %9476 = vmatprep.mubr.msk.f32.mxu1 %vm10239_vm0, %v10238_v2 }
 0xde7   :  { %9477 = vmatmul.mubr.msk.f32.gmra.mxu1 %vm98_vm1, %v11067_v55 }
 0xde8   :  { %9498 = vmatprep.mubr.msk.f32.mxu1 %vm10239_vm0, %v10238_v2 }
 0xe45   :  { %v3658_v56 = vpop.permute.xlu1 %3657 }
 0xe46   :  { %v3674_v62 = vmul.f32 %v3673_v15, %v3658_v56 }
 0xe49   :  { %v3663_v10 = vpop.permute.xlu1 %3662 }
 0xe4a   :  { %v3675_v17 = vmul.f32 %v3673_v15, %v3663_v10 }
 0xe4d   :  { %v3668_v0 = vpop.permute.xlu1 %3667 }
 0xe4e   :  { %v3676_v31 = vmul.f32 %v3673_v15, %v3668_v0 }
 0xe93   :  { %v3346_v14 = vpop.f32.mrf.mxu1 }
 0xe94   :  { %3632 = vperm.xlu0 %9999, %v3346_v14   ;;  %v8507_v14 = vld [vmem:[%s12090_s15 + $0x50] sm:$0xff] }
 0xe95   :  { %v9450_v6 = vpop.f32.mrf.mxu1 }
 0xe97   :  { %v3351_v44 = vpop.f32.mrf.mxu1 }
 0xe98   :  { %3637 = vperm.xlu0 %9999, %v3351_v44  }
 0xe99   :  { %v9453_v45 = vpop.f32.mrf.mxu1 }
 0xe9a   :  { %v8506_v45 = vld [vmem:[%s12090_s15 + $0x48] sm:$0xff] }
 0xe9b   :  { %v3356_v47 = vpop.f32.mrf.mxu1 }
 0xe9c   :  { %3642 = vperm.xlu0 %9999, %v3356_v47   ;;  %v8505_v47 = vld [vmem:[%s12090_s15 + $0x40] sm:$0xff] }
 0xe9d   :  { %v9456_v48 = vpop.f32.mrf.mxu1 }
 0xe9f   :  { %v3527_v49 = vpop.f32.mrf.mxu1 }
 0xea0   :  { %4350 = vperm.xlu0 %9999, %v10977_v52   ;;  %v8460_v52 = vld [vmem:[%s12088_s13 + $0x30] sm:$0xff]  ;;  %v3617_v59 = vadd.f32 %v3616_v38, %v3527_v49 }
 0xea1   :  { %v9472_v50 = vpop.f32.mrf.mxu1  ;;  %9493 = vmatpush3.msra.mxu1 %v8460_v52 }
 0xea2   :  { %9494 = vmatprep.subr.mxu1 %v10238_v2  ;;  %v11194_v50 = vld [vmem:[#allocation2] sm:$0xff] }
 0xea3   :  { %v3532_v63 = vpop.f32.mrf.mxu1 }
 0xea4   :  { %4353 = vperm.xlu0 %9999, %v10983_v53   ;;  %v8459_v53 = vld [vmem:[%s12088_s13 + $0x28] sm:$0xff]  ;;  %v3622_v60 = vadd.f32 %v3621_v18, %v3532_v63  ;;  %v8495_v63 = vld [vmem:[%s12089_s14 + $0x1] ss:$0 sm:$0xff] }
 0xea5   :  { %v9475_v51 = vpop.f32.mrf.mxu1  ;;  %9495 = vmatpush3.msra.mxu1 %v8459_v53 }
 0xea6   :  { %9496 = vmatprep.subr.mxu1 %v10238_v2 }
 0xea7   :  { %v3537_v54 = vpop.f32.mrf.mxu1 }
 0xea8   :  { %4356 = vperm.xlu0 %9999, %v10989_v12   ;;  %v8458_v12 = vld [vmem:[%s12088_s13 + $0x20] sm:$0xff]  ;;  %v3627_v26 = vadd.f32 %v3626_v20, %v3537_v54 }
 0xea9   :  { %v9478_v55 = vpop.f32.mrf.mxu1  ;;  %9497 = vmatpush3.msra.mxu1 %v8458_v12 }
 0xeaa   :  { %9527 = vmatprep.subr.mxu1 %v10238_v2 }
 0xf0f   :  { %v3633_v57 = vpop.permute.xlu0 %3632 }
 0xf10   :  { %v3649_v61 = vmul.f32 %v3648_v11, %v3633_v57 }
 0xf12   :  { %v3652_v39 = vadd.f32 %v3649_v61, %v3617_v59 }
 0xf13   :  { %v3638_v3 = vpop.permute.xlu0 %3637 }
 0xf14   :  { %v3677_v7 = vadd.f32 %v3674_v62, %v3652_v39  ;;  %v3650_v16 = vmul.f32 %v3648_v11, %v3638_v3 }
 0xf16   :  { %v3686_v21 = vadd.f32 %v8491_v1, %v3677_v7  ;;  %v3653_v24 = vadd.f32 %v3650_v16, %v3622_v60  ;;  %v8502_v16 = vld [vmem:[%s12122_s26] ss:$0 sm:$0xff] }
 0xf17   :  { %v3643_v25 = vpop.permute.xlu0 %3642  ;;  %vm3831_vm11 = vcmp.eq.s32.totalorder %v8502_v16, %v10380_v5 }
 0xf18   :  { %v8492_v28 = vmul.f32 -1.442695, %v3686_v21  ;;  %v3678_v29 = vadd.f32 %v3675_v17, %v3653_v24  ;;  %v3651_v30 = vmul.f32 %v3648_v11, %v3643_v25 }
 0xf1a   :  { %10073 = vpow2.f32 %v8492_v28  ;;  %v3687_v32 = vadd.f32 %v8491_v1, %v3678_v29  ;;  %v3654_v34 = vadd.f32 %v3651_v30, %v3627_v26  ;;  %v11211_v26 = vsel %vm3831_vm11, 1.0, %v10238_v2  ;;  %v8512_v28 = vld [vmem:[%s12090_s15 + $0x78] sm:$0xff]  ;;  %v8511_v29 = vld [vmem:[%s12090_s15 + $0x70] sm:$0xff]  ;;  %v8510_v30 = vld [vmem:[%s12090_s15 + $0x68] sm:$0xff] }
 0xf1c   :  { %v8493_v35 = vmul.f32 -1.442695, %v3687_v32  ;;  %v3679_v36 = vadd.f32 %v3676_v31, %v3654_v34  ;;  %v8509_v31 = vld [vmem:[%s12090_s15 + $0x60] sm:$0xff] }
 0xf1e   :  { %10075 = vpow2.f32 %v8493_v35  ;;  %v3688_v37 = vadd.f32 %v8491_v1, %v3679_v36 }
 0xf20   :  { %v8494_v38 = vmul.f32 -1.442695, %v3688_v37 }
 0xf22   :  { %10077 = vpow2.f32 %v8494_v38  ;;  %v8521_v38 = vld [vmem:[%s12092_s17 + $0x38] sm:$0xff] }
 0xf27   :  { %v10074_v40 = vpop.eup %10073 }
 0xf28   :  { %v3698_v27 = vadd.f32 1.0, %v10074_v40  ;;  %v8520_v40 = vld [vmem:[%s12092_s17 + $0x30] sm:$0xff] }
 0xf2a   :  { %10079 = vrcp.f32 %v3698_v27  ;;  %v8519_v27 = vld [vmem:[%s12092_s17 + $0x28] sm:$0xff] }
 0xf2b   :  { %v10076_v33 = vpop.eup %10075 }
 0xf2c   :  { %v3699_v41 = vadd.f32 1.0, %v10076_v33  ;;  %v8518_v33 = vld [vmem:[%s12092_s17 + $0x20] sm:$0xff] }
 0xf2e   :  { %10081 = vrcp.f32 %v3699_v41 }
 0xf2f   :  { %v10078_v18 = vpop.eup %10077 }
 0xf30   :  { %v3700_v42 = vadd.f32 1.0, %v10078_v18  ;;  %v8516_v18 = vld [vmem:[%s12091_s16 + $0x1] ss:$0 sm:$0xff] }
 0xf32   :  { %10083 = vrcp.f32 %v3700_v42 }
 0xf37   :  { %v10080_v43 = vpop.eup %10079 }
 0xf38   :  { %v3707_v20 = vmul.f32 %v10080_v43, %v3686_v21 }
 0xf3a   :  { %9499 = vmatmul.mubr.msk.f32.vlgmr.msra.gmra.mxu1 %vm418_vm5, %v3707_v20 }
 0xf3b   :  { %v10082_v6 = vpop.eup %10081  ;;  %9501 = vmatprep.mubr.msk.f32.mxu1 %vm10239_vm0, %v10238_v2  ;;  %9528 = vmatpush3.msra.mxu1 %v8508_v13 }
 0xf3c   :  { %v3708_v44 = vmul.f32 %v10082_v6, %v3687_v32  ;;  %9529 = vmatprep.subr.mxu1 %v10238_v2  ;;  %v3834_v32 = vld [vmem:[#allocation5] sm:$0xff] }
 0xf3d   :  { %9530 = vmatpush3.msra.mxu1 %v8507_v14 }
 0xf3e   :  { %9502 = vmatmul.mubr.msk.f32.gmra.mxu1 %vm418_vm5, %v3708_v44  ;;  %9531 = vmatprep.subr.mxu1 %v10238_v2 }
 0xf3f   :  { %v10084_v48 = vpop.eup %10083  ;;  %9504 = vmatprep.mubr.msk.f32.mxu1 %vm10239_vm0, %v10238_v2  ;;  %9532 = vmatpush3.msra.mxu1 %v8506_v45 }
 0xf40   :  { %v3709_v49 = vmul.f32 %v10084_v48, %v3688_v37  ;;  %9533 = vmatprep.subr.mxu1 %v10238_v2  ;;  %v8532_v48 = vld [vmem:[%s12094_s19 + $0x80] sm:$0xff] }
 0xf41   :  { %9534 = vmatpush3.msra.mxu1 %v8505_v47  ;;  %v8528_v47 = vld [vmem:[%s12094_s19 + $0x60] sm:$0xff] }
 0xf42   :  { %9505 = vmatmul.mubr.msk.f32.gmra.mxu1 %vm418_vm5, %v3709_v49  ;;  %9549 = vmatprep.subr.mxu1 %v10238_v2  ;;  %v8527_v49 = vld [vmem:[%s12094_s19 + $0x58] sm:$0xff] }
 0xf43   :  { %9535 = vmatprep.mubr.msk.f32.mxu1 %vm10239_vm0, %v10238_v2 }
 0xf46   :  { %9536 = vmatmul.mubr.msk.f32.vlgmr.msra.gmra.mxu1 %vm418_vm5, %v11194_v50 }
 0xf47   :  { %9557 = vmatprep.mubr.msk.f32.mxu1 %vm10239_vm0, %v10238_v2  ;;  %9550 = vmatpush3.msra.mxu1 %v8528_v47 }
 0xf48   :  { %9551 = vmatprep.subr.mxu1 %v10238_v2 }
 0xf49   :  { %9552 = vmatpush3.msra.mxu1 %v8527_v49 }
 0xf4a   :  { %9553 = vmatprep.subr.mxu1 %v10238_v2 }
 0xffa   :  { %v3791_v51 = vpop.f32.mrf.mxu1 }
 0xffb   :  { %v3792_v55 = vadd.f32 %v8495_v63, %v3791_v51  ;;  %v8526_v51 = vld [vmem:[%s12094_s19 + $0x50] sm:$0xff] }
 0xffc   :  { %v9500_v54 = vpop.f32.mrf.mxu1  ;;  %9554 = vmatpush3.msra.mxu1 %v8526_v51 }
 0xffd   :  { %v8499_v12 = vmul.f32 -1.442695, %v3792_v55  ;;  %v8530_v54 = vld [vmem:[%s12094_s19 + $0x70] sm:$0xff]  ;;  %9555 = vmatprep.subr.mxu1 %v10238_v2 }
 0xffe   :  { %v3796_v9 = vpop.f32.mrf.mxu1 }
 0xfff   :  { %v3797_v52 = vadd.f32 %v8495_v63, %v3796_v9  ;;  %v8529_v9 = vld [vmem:[%s12094_s19 + $0x68] sm:$0xff] }
0x1000   :  { %v9503_v53 = vpop.f32.mrf.mxu1 }
0x1001   :  { %v8500_v8 = vmul.f32 -1.442695, %v3797_v52  ;;  %v8524_v53 = vld [vmem:[%s12093_s18 + $0x1] ss:$0 sm:$0xff] }
0x1002   :  { %v3801_v56 = vpop.f32.mrf.mxu1 }
0x1003   :  { %10085 = vpow2.f32 %v8500_v8  ;;  %v3802_v11 = vadd.f32 %v8495_v63, %v3801_v56  ;;  %v8531_v63 = vld [vmem:[%s12094_s19 + $0x78] sm:$0xff]  ;;  %v4351_v8 = vpop.permute.xlu0 %4350 }
0x1004   :  { %v9506_v15 = vpop.f32.mrf.mxu1  ;;  %10087 = vpow2.f32 %v8499_v12  ;;  %vm4358_vm12 = vcmp.eq.s32.totalorder %v4351_v8, %v10452_v23 }
0x1005   :  { %v8501_v57 = vmul.f32 -1.442695, %v3802_v11  ;;  %v4369_v15 = vpop.permute.xlu1 %4368 }
0x1006   :  { %v11203_v59 = vpop.f32.mrf.mxu1  ;;  %vm4376_vm13 = vcmp.eq.s32.totalorder %v4369_v15, %v10452_v23 }
0x1007   :  { %10089 = vpow2.f32 %v8501_v57  ;;  %v4354_v57 = vpop.permute.xlu0 %4353 }
0x1008   :  { %v9537_v61 = vpop.f32.mrf.mxu1  ;;  %vm4359_vm14 = vcmp.eq.s32.totalorder %v4354_v57, %v10452_v23 }
0x1009   :  { %v11304_v61 = vsel %vm4358_vm12, 1.0, %v10238_v2 }
0x1010   :  { %v10086_v10 = vpop.eup %10085 }
0x1011   :  { %v10088_v62 = vpop.eup %10087  ;;  %v3815_v39 = vadd.f32 1.0, %v10086_v10 }
0x1012   :  { %v3814_v3 = vadd.f32 1.0, %v10088_v62  ;;  %v4357_v62 = vpop.permute.xlu0 %4356 }
0x1013   :  { %10091 = vrcp.f32 %v3815_v39  ;;  %vm4360_vm6 = vcmp.eq.s32.totalorder %v4357_v62, %v10452_v23 }
0x1014   :  { %v10090_v1 = vpop.eup %10089 }
0x1015   :  { %v3816_v60 = vadd.f32 1.0, %v10090_v1 }
0x1017   :  { %10093 = vrcp.f32 %v3816_v60  ;;  %v8548_v60 = vsel %vm4360_vm6, 1.0, %v10238_v2 }
0x1018   :  { %10095 = vrcp.f32 %v3814_v3  ;;  %v11326_v3 = vsel %vm4359_vm14, 1.0, %v10238_v2 }
0x1020   :  { %v10092_v7 = vpop.eup %10091 }
0x1021   :  { %v3824_v0 = vmul.f32 %v10092_v7, %v3797_v52 }
0x1024   :  { %v10094_v17 = vpop.eup %10093 }
0x1025   :  { %v3825_v21 = vmul.f32 %v10094_v17, %v3802_v11  ;;  %v10096_v24 = vpop.eup %10095 }
0x1026   :  { %v3823_v25 = vmul.f32 %v10096_v24, %v3792_v55  ;;  %v8525_v55 = vld [vmem:[%s12094_s19 + $0x48] sm:$0xff] }
0x1027   :  { %9508 = vmatpush3.msra.mxu0 %v3825_v21  ;;  %9556 = vmatpush3.msra.mxu1 %v8525_v55 }
0x1028   :  { %9509 = vmatprep.subr.mxu0 %v10238_v2  ;;  %9571 = vmatprep.subr.mxu1 %v10238_v2 }
0x1029   :  { %9510 = vmatpush3.msra.mxu0 %v3824_v0 }
0x102a   :  { %9511 = vmatprep.subr.mxu0 %v10238_v2 }
0x102b   :  { %9512 = vmatpush3.msra.mxu0 %v3823_v25 }
0x102c   :  { %9514 = vmatmul.mubr.msk.f32.vlgmr.msra.gmra.mxu0 %vm1367_vm10, %v11211_v26  ;;  %9516 = vmatprep.subr.mxu0 %v10238_v2 }
0x102d   :  { %9524 = vmatprep.mubr.msk.f32.mxu0 %vm10239_vm0, %v10238_v2  ;;  %9517 = vmatpush3.msra.mxu0 %v8512_v28 }
0x102e   :  { %9518 = vmatprep.subr.mxu0 %v10238_v2 }
0x102f   :  { %9519 = vmatpush3.msra.mxu0 %v8511_v29 }
0x1030   :  { %9520 = vmatprep.subr.mxu0 %v10238_v2 }
0x1031   :  { %9521 = vmatpush3.msra.mxu0 %v8510_v30 }
0x1032   :  { %9522 = vmatprep.subr.mxu0 %v10238_v2 }
0x1033   :  { %9523 = vmatpush3.msra.mxu0 %v8509_v31 }
0x1034   :  { %9538 = vmatprep.subr.mxu0 %v10238_v2 }
0x10ec   :  { %v3904_v34 = vpop.f32.mrf.mxu0 }
0x10ed   :  { %v3908_v35 = vadd.f32 %v3904_v34, %v3834_v32 }
0x10ee   :  { %v9515_v36 = vpop.f32.mrf.mxu0 }
0x10ef   :  { %3909 = vst.msk [vmem:[#allocation5] sm:$0xff] %vm418_vm5, %v3908_v35 }
0x10f6   :  { %v3910_v37 = vld [vmem:[#allocation5] sm:$0xff] }
0x10f7   :  { %9525 = vmatmul.mubr.msk.f32.vlgmr.msra.gmra.mxu0 %vm418_vm5, %v3910_v37  ;;  %5529 = vst.msk [vmem:[#allocation5] sm:$0xff] %vm418_vm5, %v10238_v2 }
0x10f8   :  { %9546 = vmatprep.mubr.msk.f32.mxu0 %vm10239_vm0, %v10238_v2  ;;  %9539 = vmatpush3.msra.mxu0 %v8521_v38 }
0x10f9   :  { %9540 = vmatprep.subr.mxu0 %v10238_v2 }
0x10fa   :  { %9541 = vmatpush3.msra.mxu0 %v8520_v40 }
0x10fb   :  { %9542 = vmatprep.subr.mxu0 %v10238_v2 }
0x10fc   :  { %9543 = vmatpush3.msra.mxu0 %v8519_v27 }
0x10fd   :  { %9544 = vmatprep.subr.mxu0 %v10238_v2 }
0x10fe   :  { %9545 = vmatpush3.msra.mxu0 %v8518_v33 }
0x10ff   :  { %9560 = vmatprep.subr.mxu0 %v10238_v2 }
0x11b7   :  { %v3990_v41 = vpop.f32.mrf.mxu0 }
0x11b8   :  { %v4064_v42 = vadd.f32 %v11203_v59, %v3990_v41  ;;  %v4372_v59 = vpop.permute.xlu1 %4371 }
0x11b9   :  { %v9526_v43 = vpop.f32.mrf.mxu0  ;;  %vm4377_vm15 = vcmp.eq.s32.totalorder %v4372_v59, %v10452_v23 }
0x11ba   :  { %v4075_v20 = vadd.f32 %v8516_v18, %v4064_v42 }
0x11bc   :  { %v8517_v13 = vmul.f32 -1.442695, %v4075_v20  ;;  %v4375_v1 = vpop.permute.xlu1 %4374 }
0x11bd   :  { %vm4378_vm11 = vcmp.eq.s32.totalorder %v4375_v1, %v10452_v23 }
0x11be   :  { %10097 = vpow2.f32 %v8517_v13  ;;  %v8551_v7 = vsel %vm4378_vm11, 1.0, %v10238_v2 }
0x11bf   :  { %v4387_v16 = vsub.f32 %v8548_v60, %v8551_v7 }
0x11cb   :  { %v10098_v14 = vpop.eup %10097 }
0x11cc   :  { %v4079_v6 = vadd.f32 1.0, %v10098_v14 }
0x11ce   :  { %10099 = vrcp.f32 %v4079_v6 }
0x11db   :  { %v10100_v44 = vpop.eup %10099 }
0x11dc   :  { %v4082_v45 = vmul.f32 %v10100_v44, %v4075_v20 }
0x11de   :  { %9547 = vmatmul.mubr.msk.f32.vlgmr.msra.gmra.mxu0 %vm418_vm5, %v4082_v45 }
0x11df   :  { %9568 = vmatprep.mubr.msk.f32.mxu0 %vm10239_vm0, %v10238_v2  ;;  %9561 = vmatpush3.msra.mxu0 %v8532_v48 }
0x11e0   :  { %9562 = vmatprep.subr.mxu0 %v10238_v2 }
0x11e1   :  { %9563 = vmatpush3.msra.mxu0 %v8531_v63 }
0x11e2   :  { %9564 = vmatprep.subr.mxu0 %v10238_v2 }
0x11e3   :  { %9565 = vmatpush3.msra.mxu0 %v8530_v54 }
0x11e4   :  { %9566 = vmatprep.subr.mxu0 %v10238_v2 }
0x11e5   :  { %9567 = vmatpush3.msra.mxu0 %v8529_v9 }
0x11e6   :  { %9582 = vmatprep.subr.mxu0 %v10238_v2 }
0x129e   :  { %v4157_v52 = vpop.f32.mrf.mxu0 }
0x129f   :  { %v4161_v12 = vadd.f32 %v4157_v52, %v11194_v50  ;;  %v11314_v50 = vsel %vm4376_vm13, 1.0, %v10238_v2 }
0x12a0   :  { %v9548_v56 = vpop.f32.mrf.mxu0  ;;  %v4385_v39 = vsub.f32 %v11304_v61, %v11314_v50 }
0x12a1   :  { %v4170_v11 = vadd.f32 %v8524_v53, %v4161_v12 }
0x12a3   :  { %4171 = vst.msk [vmem:[#allocation2] sm:$0xff] %vm418_vm5, %v4170_v11 }
0x12aa   :  { %v11306_v10 = vld [vmem:[#allocation2] sm:$0xff] }
0x12ab   :  { %9558 = vmatmul.mubr.msk.f32.vlgmr.msra.gmra.mxu1 %vm418_vm5, %v11306_v10  ;;  %9569 = vmatmul.mubr.msk.f32.vlgmr.msra.gmra.mxu0 %vm418_vm5, %v11306_v10 }
0x12ac   :  { %9572 = vmatpush3.msra.mxu1 %v11087_v22  ;;  %9583 = vmatpush3.msra.mxu0 %v11044_v46  ;;  %v8550_v46 = vsel %vm4377_vm15, 1.0, %v10238_v2 }
0x12ad   :  { %9573 = vmatprep.mubr.msk.f32.mxu1 %vm10239_vm0, %v10238_v2  ;;  %9584 = vmatprep.mubr.msk.f32.mxu0 %vm10239_vm0, %v10238_v2  ;;  %v4386_v22 = vsub.f32 %v11326_v3, %v8550_v46 }
0x12ae   :  { %9593 = vmatprep.subr.mxu1 %v10238_v2  ;;  %9604 = vmatprep.subr.mxu0 %v10238_v2 }
0x12af   :  { %9574 = vmatmul.mubr.msk.f32.vlgmr.msra.gmra.mxu1 %vm98_vm1, %v4385_v39  ;;  %9585 = vmatmul.mubr.msk.f32.vlgmr.msra.gmra.mxu0 %vm98_vm1, %v4385_v39 }
0x12b0   :  { %9576 = vmatprep.mubr.msk.f32.mxu1 %vm10239_vm0, %v10238_v2  ;;  %9587 = vmatprep.mubr.msk.f32.mxu0 %vm10239_vm0, %v10238_v2 }
0x12b1   :  { %9594 = vmatpush3.msk.msra.mxu1 %vm808_vm2, %v10240_v4  ;;  %9605 = vmatpush3.msk.msra.mxu0 %vm808_vm2, %v10240_v4 }
0x12b2   :  { %9615 = vmatprep.subr.mxu1 %v10238_v2  ;;  %9626 = vmatprep.subr.mxu0 %v10238_v2 }
0x12b3   :  { %9577 = vmatmul.mubr.msk.f32.gmra.mxu1 %vm98_vm1, %v4386_v22  ;;  %9588 = vmatmul.mubr.msk.f32.gmra.mxu0 %vm98_vm1, %v4386_v22 }
0x12b4   :  { %9579 = vmatprep.mubr.msk.f32.mxu1 %vm10239_vm0, %v10238_v2  ;;  %9590 = vmatprep.mubr.msk.f32.mxu0 %vm10239_vm0, %v10238_v2 }
0x12b7   :  { %9580 = vmatmul.mubr.msk.f32.gmra.mxu1 %vm98_vm1, %v4387_v16  ;;  %9591 = vmatmul.mubr.msk.f32.gmra.mxu0 %vm98_vm1, %v4387_v16 }
0x12b8   :  { %9595 = vmatprep.mubr.msk.f32.mxu1 %vm10239_vm0, %v10238_v2  ;;  %9606 = vmatprep.mubr.msk.f32.mxu0 %vm10239_vm0, %v10238_v2 }
0x136b   :  { %v4268_v17 = vpop.f32.mrf.mxu1  ;;  %v4338_v21 = vpop.f32.mrf.mxu0 }
0x136d   :  { %v9559_v24 = vpop.f32.mrf.mxu1  ;;  %v9570_v0 = vpop.f32.mrf.mxu0 }
0x136f   :  { %v11360_v25 = vpop.f32.mrf.mxu1  ;;  %v4543_v28 = vpop.f32.mrf.mxu0 }
0x1370   :  { %v4557_v29 = vmul.f32 %v11360_v25, %v11360_v25  ;;  %v4649_v30 = vmul.f32 %v4543_v28, %v4543_v28 }
0x1371   :  { %v9575_v31 = vpop.f32.mrf.mxu1  ;;  %v9586_v32 = vpop.f32.mrf.mxu0 }
0x1372   :  { %9596 = vmatmul.mubr.msk.f32.vlgmr.msra.gmra.mxu1 %vm328_vm9, %v4557_v29  ;;  %9607 = vmatmul.mubr.msk.f32.vlgmr.msra.gmra.mxu0 %vm328_vm9, %v4649_v30 }
0x1373   :  { %9616 = vmatpush3.msra.mxu1 %v4338_v21  ;;  %9627 = vmatpush3.msra.mxu0 %v4268_v17  ;;  %v11366_v34 = vpop.f32.mrf.mxu1  ;;  %v4548_v35 = vpop.f32.mrf.mxu0 }
0x1374   :  { %v4558_v36 = vmul.f32 %v11366_v34, %v11366_v34  ;;  %v4650_v37 = vmul.f32 %v4548_v35, %v4548_v35  ;;  %9598 = vmatprep.mubr.msk.f32.mxu1 %vm10239_vm0, %v10238_v2  ;;  %9609 = vmatprep.mubr.msk.f32.mxu0 %vm10239_vm0, %v10238_v2 }
0x1375   :  { %v9578_v38 = vpop.f32.mrf.mxu1  ;;  %v9589_v40 = vpop.f32.mrf.mxu0  ;;  %9637 = vmatprep.subr.mxu1 %v10238_v2  ;;  %9654 = vmatprep.subr.mxu0 %v10238_v2 }
0x1376   :  { %9599 = vmatmul.mubr.msk.f32.gmra.mxu1 %vm328_vm9, %v4558_v36  ;;  %9610 = vmatmul.mubr.msk.f32.gmra.mxu0 %vm328_vm9, %v4650_v37  ;;  %v8538_v40 = vld [vmem:[%s12096_s21 + $0x38] sm:$0xff] }
0x1377   :  { %v11378_v27 = vpop.f32.mrf.mxu1  ;;  %v4553_v33 = vpop.f32.mrf.mxu0  ;;  %9601 = vmatprep.mubr.msk.f32.mxu1 %vm10239_vm0, %v10238_v2  ;;  %9612 = vmatprep.mubr.msk.f32.mxu0 %vm10239_vm0, %v10238_v2 }
0x1378   :  { %v4559_v41 = vmul.f32 %v11378_v27, %v11378_v27  ;;  %v4651_v18 = vmul.f32 %v4553_v33, %v4553_v33 }
0x1379   :  { %v9581_v42 = vpop.f32.mrf.mxu1  ;;  %v9592_v43 = vpop.f32.mrf.mxu0 }
0x137a   :  { %9602 = vmatmul.mubr.msk.f32.gmra.mxu1 %vm328_vm9, %v4559_v41  ;;  %9613 = vmatmul.mubr.msk.f32.gmra.mxu0 %vm328_vm9, %v4651_v18  ;;  %v8537_v41 = vld [vmem:[%s12096_s21 + $0x30] sm:$0xff]  ;;  %v8536_v18 = vld [vmem:[%s12096_s21 + $0x28] sm:$0xff]  ;;  %v8535_v42 = vld [vmem:[%s12096_s21 + $0x20] sm:$0xff] }
0x137b   :  { %9617 = vmatprep.mubr.msk.f32.mxu1 %vm10239_vm0, %v10238_v2  ;;  %9628 = vmatprep.mubr.msk.f32.mxu0 %vm10239_vm0, %v10238_v2  ;;  %v8533_v43 = vld [vmem:[%s12094_s19 + $0x88] sm:$0x3] }
0x137e   :  { %9618 = vmatmul.mubr.msk.f32.vlgmr.msra.gmra.mxu1 %vm98_vm1, %v11314_v50  ;;  %9629 = vmatmul.mubr.msk.f32.vlgmr.msra.gmra.mxu0 %vm98_vm1, %v11304_v61 }
0x137f   :  { %9620 = vmatprep.mubr.msk.f32.mxu1 %vm10239_vm0, %v10238_v2  ;;  %9631 = vmatprep.mubr.msk.f32.mxu0 %vm10239_vm0, %v10238_v2 }
0x1380   :  { %9638 = vmatpush3.msra.mxu1 %v8538_v40 }
0x1381   :  { %9639 = vmatprep.subr.mxu1 %v10238_v2 }
0x1382   :  { %9621 = vmatmul.mubr.msk.f32.gmra.mxu1 %vm98_vm1, %v8550_v46  ;;  %9632 = vmatmul.mubr.msk.f32.gmra.mxu0 %vm98_vm1, %v11326_v3 }
0x1383   :  { %9623 = vmatprep.mubr.msk.f32.mxu1 %vm10239_vm0, %v10238_v2  ;;  %9634 = vmatprep.mubr.msk.f32.mxu0 %vm10239_vm0, %v10238_v2 }
0x1384   :  { %9640 = vmatpush3.msra.mxu1 %v8537_v41 }
0x1385   :  { %9641 = vmatprep.subr.mxu1 %v10238_v2 }
0x1386   :  { %9624 = vmatmul.mubr.msk.f32.gmra.mxu1 %vm98_vm1, %v8551_v7  ;;  %9635 = vmatmul.mubr.msk.f32.gmra.mxu0 %vm98_vm1, %v8548_v60 }
0x1387   :  { %9645 = vmatprep.mubr.msk.f32.mxu1 %vm10239_vm0, %v10238_v2  ;;  %9662 = vmatprep.mubr.msk.f32.mxu0 %vm10239_vm0, %v10238_v2 }
0x1388   :  { %9642 = vmatpush3.msra.mxu1 %v8536_v18 }
0x1389   :  { %9643 = vmatprep.subr.mxu1 %v10238_v2 }
0x138a   :  { %9644 = vmatpush3.msra.mxu1 %v8535_v42 }
0x138b   :  { %9671 = vmatprep.subr.mxu1 %v10238_v2 }
0x1432   :  { %v4635_v20 = vpop.f32.mrf.mxu1  ;;  %v4727_v13 = vpop.f32.mrf.mxu0 }
0x1433   :  { %4921 = vperm.xlu0 %9999, %v4635_v20   ;;  %4946 = vperm.xlu1 %10000, %v4727_v13   ;;  %v5207_v14 = vadd.f32 1e-08, %v4635_v20  ;;  %v4937_v20 = vrot.slane %v8533_v43, %v10629_v19  ;;  %v4962_v13 = vrot.slane %v8533_v43, %v10635_v58 }
0x1434   :  { %v9597_v6 = vpop.f32.mrf.mxu1  ;;  %v9608_v44 = vpop.f32.mrf.mxu0 }
0x1435   :  { %10101 = vrsqrt.f32 %v5207_v14  ;;  %vm5212_vm15 = vcmp.eq.f32.partialorder %v5207_v14, inf  ;;  %v5215_v36 = vand.u32 2147483648, %v5207_v14  ;;  %vm5214_vm11 = vcmp.eq.f32.partialorder %v5207_v14, 0.0 }
0x1436   :  { %v4640_v45 = vpop.f32.mrf.mxu1  ;;  %v4732_v47 = vpop.f32.mrf.mxu0 }
0x1437   :  { %v5208_v48 = vadd.f32 1e-08, %v4640_v45  ;;  %4926 = vperm.xlu0 %9999, %v4640_v45   ;;  %4951 = vperm.xlu1 %10000, %v4732_v47  }
0x1438   :  { %v9600_v49 = vpop.f32.mrf.mxu1  ;;  %v9611_v63 = vpop.f32.mrf.mxu0 }
0x1439   :  { %10103 = vrsqrt.f32 %v5208_v48  ;;  %vm5219_vm12 = vcmp.eq.f32.partialorder %v5208_v48, inf  ;;  %v5222_v16 = vand.u32 2147483648, %v5208_v48  ;;  %vm5221_vm13 = vcmp.eq.f32.partialorder %v5208_v48, 0.0 }
0x143a   :  { %v4645_v51 = vpop.f32.mrf.mxu1  ;;  %v4737_v54 = vpop.f32.mrf.mxu0 }
0x143b   :  { %v5209_v55 = vadd.f32 1e-08, %v4645_v51  ;;  %4931 = vperm.xlu0 %9999, %v4645_v51   ;;  %4956 = vperm.xlu1 %10000, %v4737_v54  }
0x143c   :  { %v9603_v9 = vpop.f32.mrf.mxu1  ;;  %v9614_v52 = vpop.f32.mrf.mxu0 }
0x143d   :  { %10105 = vrsqrt.f32 %v5209_v55  ;;  %vm5226_vm14 = vcmp.eq.f32.partialorder %v5209_v55, inf  ;;  %v5229_v30 = vand.u32 2147483648, %v5209_v55  ;;  %vm5228_vm6 = vcmp.eq.f32.partialorder %v5209_v55, 0.0 }
0x143e   :  { %v4816_v53 = vpop.f32.mrf.mxu1  ;;  %v4905_v12 = vpop.f32.mrf.mxu0 }
0x143f   :  { %v4906_v8 = vadd.f32 %v4905_v12, %v4816_v53 }
0x1440   :  { %v9619_v56 = vpop.f32.mrf.mxu1  ;;  %v9630_v11 = vpop.f32.mrf.mxu0 }
0x1442   :  { %v4821_v15 = vpop.f32.mrf.mxu1  ;;  %v4910_v57 = vpop.f32.mrf.mxu0 }
0x1443   :  { %v4911_v59 = vadd.f32 %v4910_v57, %v4821_v15  ;;  %v10102_v62 = vpop.eup %10101 }
0x1444   :  { %v9622_v61 = vpop.f32.mrf.mxu1  ;;  %v9633_v50 = vpop.f32.mrf.mxu0  ;;  %v5211_v21 = vmul.f32 %v10102_v62, %v5207_v14 }
0x1446   :  { %v10104_v39 = vpop.eup %10103  ;;  %v4826_v1 = vpop.f32.mrf.mxu1  ;;  %v5213_v32 = vsel %vm5212_vm15, %v5207_v14, %v5211_v21 }
0x1447   :  { %v4915_v3 = vpop.f32.mrf.mxu0  ;;  %v5218_v22 = vmul.f32 %v10104_v39, %v5208_v48  ;;  %v5216_v38 = vsel %vm5214_vm11, %v5215_v36, %v5213_v32  ;;  %v8540_v32 = vld [vmem:[%s12098_s23 + $0x20] sm:$0xff] }
0x1448   :  { %v11413_v46 = vadd.f32 %v4915_v3, %v4826_v1  ;;  %v9625_v60 = vpop.f32.mrf.mxu1  ;;  %v5231_v33 = vadd.f32 1.0, %v5216_v38 }
0x1449   :  { %v9636_v7 = vpop.f32.mrf.mxu0  ;;  %v5220_v17 = vsel %vm5219_vm12, %v5208_v48, %v5218_v22  ;;  %v8572_v48 = vld [vmem:[%s12095_s20 + $0x1] ss:$0 sm:$0xff] }
0x144a   :  { %v10106_v24 = vpop.eup %10105  ;;  %v5223_v0 = vsel %vm5221_vm13, %v5222_v16, %v5220_v17 }
0x144b   :  { %v5232_v28 = vadd.f32 1.0, %v5223_v0  ;;  %v5225_v29 = vmul.f32 %v10106_v24, %v5209_v55 }
0x144d   :  { %5241 = vperm.xlu1 %10000, %v5232_v28   ;;  %v5227_v31 = vsel %vm5226_vm14, %v5209_v55, %v5225_v29  ;;  %v8543_v29 = vld [vmem:[%s12098_s23 + $0x38] sm:$0xff] }
0x144e   :  { %v5230_v35 = vsel %vm5228_vm6, %v5229_v30, %v5227_v31  ;;  %9655 = vmatpush3.msra.mxu0 %v8543_v29  ;;  %v8542_v30 = vld [vmem:[%s12098_s23 + $0x30] sm:$0xff]  ;;  %v8541_v31 = vld [vmem:[%s12098_s23 + $0x28] sm:$0xff] }
0x144f   :  { %v5233_v37 = vadd.f32 1.0, %v5230_v35  ;;  %9656 = vmatprep.subr.mxu0 %v10238_v2  ;;  %v8576_v35 = vld [vmem:[%s12097_s22 + $0x1] ss:$0 sm:$0xff] }
0x1450   :  { %9657 = vmatpush3.msra.mxu0 %v8542_v30 }
0x1451   :  { %5246 = vperm.xlu0 %9999, %v5233_v37   ;;  %9658 = vmatprep.subr.mxu0 %v10238_v2 }
0x1452   :  { %9659 = vmatpush3.msra.mxu0 %v8541_v31 }
0x1453   :  { %9660 = vmatprep.subr.mxu0 %v10238_v2 }
0x1454   :  { %9661 = vmatpush3.msra.mxu0 %v8540_v32 }
0x1455   :  { %5236 = vperm.xlu0 %9999, %v5231_v33   ;;  %9680 = vmatprep.subr.mxu0 %v10238_v2 }
0x14ae   :  { %v4922_v14 = vpop.permute.xlu0 %4921  ;;  %v4947_v6 = vpop.permute.xlu1 %4946 }
0x14af   :  { %v4938_v44 = vmul.f32 %v4937_v20, %v4922_v14  ;;  %v4963_v47 = vmul.f32 %v4962_v13, %v4947_v6 }
0x14b1   :  { %v4941_v45 = vadd.f32 %v4938_v44, %v4906_v8 }
0x14b2   :  { %v4927_v49 = vpop.permute.xlu0 %4926  ;;  %v4952_v63 = vpop.permute.xlu1 %4951 }
0x14b3   :  { %v4966_v51 = vadd.f32 %v4963_v47, %v4941_v45  ;;  %v4939_v54 = vmul.f32 %v4937_v20, %v4927_v49  ;;  %v4964_v52 = vmul.f32 %v4962_v13, %v4952_v63 }
0x14b5   :  { %v4975_v55 = vadd.f32 %v8572_v48, %v4966_v51  ;;  %v4942_v9 = vadd.f32 %v4939_v54, %v4911_v59  ;;  %v8592_v54 = vld [vmem:[%s12086_s11 + $0xa8] sm:$0xff] }
0x14b6   :  { %v4932_v53 = vpop.permute.xlu0 %4931  ;;  %v4957_v12 = vpop.permute.xlu1 %4956 }
0x14b7   :  { %v8573_v56 = vmul.f32 -1.442695, %v4975_v55  ;;  %v4967_v11 = vadd.f32 %v4964_v52, %v4942_v9  ;;  %v4940_v15 = vmul.f32 %v4937_v20, %v4932_v53  ;;  %v4965_v61 = vmul.f32 %v4962_v13, %v4957_v12  ;;  %v8590_v53 = vld [vmem:[%s12086_s11 + $0x98] sm:$0xff]  ;;  %v8589_v12 = vld [vmem:[%s12086_s11 + $0x90] sm:$0xff] }
0x14b9   :  { %10107 = vpow2.f32 %v8573_v56  ;;  %v4976_v57 = vadd.f32 %v8572_v48, %v4967_v11  ;;  %v4943_v8 = vadd.f32 %v4940_v15, %v11413_v46 }
0x14bb   :  { %v8574_v50 = vmul.f32 -1.442695, %v4976_v57  ;;  %v4968_v62 = vadd.f32 %v4965_v61, %v4943_v8 }
0x14bd   :  { %10109 = vpow2.f32 %v8574_v50  ;;  %v4977_v39 = vadd.f32 %v8572_v48, %v4968_v62 }
0x14bf   :  { %v8575_v1 = vmul.f32 -1.442695, %v4977_v39 }
0x14c1   :  { %10111 = vpow2.f32 %v8575_v1 }
0x14c6   :  { %v10108_v3 = vpop.eup %10107 }
0x14c7   :  { %v4987_v22 = vadd.f32 1.0, %v10108_v3 }
0x14c9   :  { %10113 = vrcp.f32 %v4987_v22  ;;  %v11502_v22 = vld [vmem:[%s12116_s7] sm:$0xff] }
0x14ca   :  { %v10110_v59 = vpop.eup %10109 }
0x14cb   :  { %v4988_v60 = vadd.f32 1.0, %v10110_v59 }
0x14cd   :  { %10115 = vrcp.f32 %v4988_v60  ;;  %v11508_v60 = vld [vmem:[%s12116_s7 + $0x8] sm:$0xff] }
0x14ce   :  { %v10112_v7 = vpop.eup %10111 }
0x14cf   :  { %v4989_v16 = vadd.f32 1.0, %v10112_v7 }
0x14d1   :  { %10117 = vrcp.f32 %v4989_v16  ;;  %v11514_v16 = vld [vmem:[%s12116_s7 + $0x10] sm:$0xff] }
0x14d6   :  { %v10114_v17 = vpop.eup %10113 }
0x14d7   :  { %v4996_v21 = vmul.f32 %v10114_v17, %v4975_v55  ;;  %v8591_v55 = vld [vmem:[%s12086_s11 + $0xa0] sm:$0xff] }
0x14d8   :  { %v11519_v17 = vld [vmem:[%s12117_s25] sm:$0xff] }
0x14d9   :  { %9646 = vmatmul.mubr.msk.f32.vlgmr.msra.gmra.mxu1 %vm418_vm5, %v4996_v21  ;;  %v11526_v21 = vld [vmem:[%s12117_s25 + $0x8] sm:$0xff] }
0x14da   :  { %v10116_v46 = vpop.eup %10115  ;;  %9648 = vmatprep.mubr.msk.f32.mxu1 %vm10239_vm0, %v10238_v2 }
0x14db   :  { %v4997_v24 = vmul.f32 %v10116_v46, %v4976_v57  ;;  %v11532_v46 = vld [vmem:[%s12117_s25 + $0x10] sm:$0xff] }
0x14dd   :  { %9649 = vmatmul.mubr.msk.f32.gmra.mxu1 %vm418_vm5, %v4997_v24  ;;  %v5247_v24 = vpop.permute.xlu0 %5246 }
0x14de   :  { %v10118_v0 = vpop.eup %10117  ;;  %9651 = vmatprep.mubr.msk.f32.mxu1 %vm10239_vm0, %v10238_v2 }
0x14df   :  { %v4998_v28 = vmul.f32 %v10118_v0, %v4977_v39  ;;  %v5242_v0 = vpop.permute.xlu1 %5241 }
0x14e1   :  { %9652 = vmatmul.mubr.msk.f32.gmra.mxu1 %vm418_vm5, %v4998_v28  ;;  %v5237_v28 = vpop.permute.xlu0 %5236 }
0x14e2   :  { %9677 = vmatprep.mubr.msk.f32.mxu1 %vm10239_vm0, %v10238_v2 }
0x1599   :  { %v5080_v36 = vpop.f32.mrf.mxu1 }
0x159a   :  { %v5081_v37 = vadd.f32 %v8576_v35, %v5080_v36 }
0x159b   :  { %v9647_v38 = vpop.f32.mrf.mxu1 }
0x159c   :  { %v8580_v40 = vmul.f32 -1.442695, %v5081_v37 }
0x159d   :  { %v5085_v33 = vpop.f32.mrf.mxu1 }
0x159e   :  { %10119 = vpow2.f32 %v8580_v40  ;;  %v5086_v41 = vadd.f32 %v8576_v35, %v5085_v33 }
0x159f   :  { %v9650_v18 = vpop.f32.mrf.mxu1 }
0x15a0   :  { %v8581_v42 = vmul.f32 -1.442695, %v5086_v41 }
0x15a1   :  { %v5090_v43 = vpop.f32.mrf.mxu1 }
0x15a2   :  { %10121 = vpow2.f32 %v8581_v42  ;;  %v5091_v20 = vadd.f32 %v8576_v35, %v5090_v43 }
0x15a3   :  { %v9653_v13 = vpop.f32.mrf.mxu1 }
0x15a4   :  { %v8582_v14 = vmul.f32 -1.442695, %v5091_v20 }
0x15a6   :  { %10123 = vpow2.f32 %v8582_v14  ;;  %v8594_v14 = vld [vmem:[%s12086_s11 + $0xb8] sm:$0xff] }
0x15ab   :  { %v10120_v6 = vpop.eup %10119 }
0x15ac   :  { %v5103_v44 = vadd.f32 1.0, %v10120_v6 }
0x15ae   :  { %10125 = vrcp.f32 %v5103_v44 }
0x15af   :  { %v10122_v45 = vpop.eup %10121 }
0x15b0   :  { %v5104_v47 = vadd.f32 1.0, %v10122_v45 }
0x15b2   :  { %10127 = vrcp.f32 %v5104_v47  ;;  %v11569_v47 = vld [vmem:[#allocation4] sm:$0xff] }
0x15b3   :  { %v10124_v48 = vpop.eup %10123 }
0x15b4   :  { %v5105_v49 = vadd.f32 1.0, %v10124_v48 }
0x15b6   :  { %10129 = vrcp.f32 %v5105_v49 }
0x15bb   :  { %v10126_v63 = vpop.eup %10125 }
0x15bc   :  { %v5112_v51 = vmul.f32 %v10126_v63, %v5081_v37 }
0x15be   :  { %9663 = vmatmul.mubr.msk.f32.vlgmr.msra.gmra.mxu0 %vm418_vm5, %v5112_v51 }
0x15bf   :  { %v10128_v9 = vpop.eup %10127  ;;  %9665 = vmatprep.mubr.msk.f32.mxu0 %vm10239_vm0, %v10238_v2  ;;  %9681 = vmatpush3.msra.mxu0 %v8592_v54 }
0x15c0   :  { %v5113_v52 = vmul.f32 %v10128_v9, %v5086_v41  ;;  %9682 = vmatprep.subr.mxu0 %v10238_v2 }
0x15c1   :  { %9683 = vmatpush3.msra.mxu0 %v8591_v55 }
0x15c2   :  { %9666 = vmatmul.mubr.msk.f32.gmra.mxu0 %vm418_vm5, %v5113_v52  ;;  %9684 = vmatprep.subr.mxu0 %v10238_v2 }
0x15c3   :  { %v10130_v56 = vpop.eup %10129  ;;  %9668 = vmatprep.mubr.msk.f32.mxu0 %vm10239_vm0, %v10238_v2  ;;  %9685 = vmatpush3.msra.mxu0 %v8590_v53 }
0x15c4   :  { %v5114_v11 = vmul.f32 %v10130_v56, %v5091_v20  ;;  %9686 = vmatprep.subr.mxu0 %v10238_v2 }
0x15c5   :  { %9687 = vmatpush3.msra.mxu0 %v8589_v12  ;;  %v5284_v12 = vld [vmem:[#allocation6] sm:$0xff] }
0x15c6   :  { %9669 = vmatmul.mubr.msk.f32.gmra.mxu0 %vm418_vm5, %v5114_v11  ;;  %9702 = vmatprep.subr.mxu0 %v10238_v2 }
0x15c7   :  { %9688 = vmatprep.mubr.msk.f32.mxu0 %vm10239_vm0, %v10238_v2 }
0x15ca   :  { %9689 = vmatmul.mubr.msk.f32.vlgmr.msra.gmra.mxu0 %vm418_vm5, %v11306_v10 }
0x15cb   :  { %9704 = vmatprep.mubr.msk.f32.mxu0 %vm10239_vm0, %v10238_v2 }
0x167e   :  { %v5190_v15 = vpop.f32.mrf.mxu0 }
0x1680   :  { %v9664_v57 = vpop.f32.mrf.mxu0 }
0x1682   :  { %v5195_v8 = vpop.f32.mrf.mxu0 }
0x1683   :  { %10131 = vtanh.f32 %v5195_v8  ;;  %v5360_v8 = vld [vmem:[#allocation3] sm:$0xff] }
0x1684   :  { %v9667_v61 = vpop.f32.mrf.mxu0 }
0x1686   :  { %v5200_v50 = vpop.f32.mrf.mxu0 }
0x1687   :  { %10133 = vtanh.f32 %v5200_v50 }
0x1688   :  { %v9670_v62 = vpop.f32.mrf.mxu0  ;;  %10135 = vtanh.f32 %v5190_v15 }
0x1689   :  { %10137 = vrcp.f32 %v5242_v0 }
0x168a   :  { %v11497_v39 = vpop.f32.mrf.mxu0  ;;  %10139 = vrcp.f32 %v5247_v24 }
0x168b   :  { %10141 = vrcp.f32 %v5237_v28 }
0x168c   :  { %v9690_v1 = vpop.f32.mrf.mxu0 }
0x1690   :  { %v10132_v3 = vpop.eup %10131 }
0x1691   :  { %5262 = vperm.xlu0 %9999, %v10132_v3  }
0x1694   :  { %v10134_v59 = vpop.eup %10133 }
0x1695   :  { %5537 = vperm.xlu0 %9999, %v11502_v22   ;;  %5267 = vperm.xlu1 %10000, %v10134_v59   ;;  %v10136_v7 = vpop.eup %10135 }
0x1696   :  { %v10138_v29 = vpop.eup %10137 }
0x1697   :  { %v10140_v30 = vpop.eup %10139  ;;  %v5252_v32 = vmul.f32 %v10138_v29, %v11366_v34 }
0x1698   :  { %v5254_v35 = vmul.f32 %v10140_v30, %v11378_v27  ;;  %v10142_v36 = vpop.eup %10141  ;;  %v8596_v27 = vld [vmem:[%s12086_s11 + $0xc8] sm:$0xff] }
0x1699   :  { %5540 = vperm.xlu0 %9999, %v11508_v60   ;;  %5257 = vperm.xlu1 %10000, %v10136_v7   ;;  %v5250_v41 = vmul.f32 %v10142_v36, %v11360_v25  ;;  %v8595_v25 = vld [vmem:[%s12086_s11 + $0xc0] sm:$0xff] }
0x169d   :  { %5543 = vperm.xlu0 %9999, %v11514_v16   ;;  %5555 = vperm.xlu1 %10000, %v11519_v17  }
0x16a1   :  { %5558 = vperm.xlu1 %10000, %v11526_v21  }
0x16a5   :  { %5561 = vperm.xlu1 %10000, %v11532_v46  }
0x170c   :  { %v5263_v31 = vpop.permute.xlu0 %5262 }
0x170d   :  { %v5271_v38 = vmul.f32 %v5263_v31, %v5252_v32 }
0x170f   :  { %v5274_v42 = vmul.f32 15.0, %v5271_v38 }
0x1710   :  { %v5268_v37 = vpop.permute.xlu1 %5267  ;;  %v5538_v13 = vpop.permute.xlu0 %5537 }
0x1711   :  { %v5272_v40 = vmul.f32 %v5268_v37, %v5254_v35  ;;  %vm5545_vm13 = vcmp.eq.s32.totalorder %v5538_v13, %v10452_v23 }
0x1712   :  { %v8606_v48 = vsel %vm5545_vm13, 1.0, %v10238_v2 }
0x1713   :  { %v5275_v33 = vmul.f32 15.0, %v5272_v40 }
0x1714   :  { %v5258_v18 = vpop.permute.xlu1 %5257  ;;  %v5541_v44 = vpop.permute.xlu0 %5540 }
0x1715   :  { %v5270_v43 = vmul.f32 %v5258_v18, %v5250_v41  ;;  %9672 = vmatpush3.msra.mxu1 %v5275_v33  ;;  %vm5546_vm15 = vcmp.eq.s32.totalorder %v5541_v44, %v10452_v23 }
0x1716   :  { %9673 = vmatprep.subr.mxu1 %v10238_v2  ;;  %v8607_v54 = vsel %vm5546_vm15, 1.0, %v10238_v2 }
0x1717   :  { %v5273_v20 = vmul.f32 15.0, %v5270_v43  ;;  %9674 = vmatpush3.msra.mxu1 %v5274_v42 }
0x1718   :  { %9675 = vmatprep.subr.mxu1 %v10238_v2  ;;  %v5556_v34 = vpop.permute.xlu1 %5555  ;;  %v5544_v51 = vpop.permute.xlu0 %5543 }
0x1719   :  { %9676 = vmatpush3.msra.mxu1 %v5273_v20  ;;  %vm5563_vm12 = vcmp.eq.s32.totalorder %v5556_v34, %v10452_v23  ;;  %vm5547_vm11 = vcmp.eq.s32.totalorder %v5544_v51, %v10452_v23 }
0x171a   :  { %9678 = vmatmul.mubr.msk.f32.vlgmr.msra.gmra.mxu1 %vm1367_vm10, %v11211_v26  ;;  %9691 = vmatprep.subr.mxu1 %v10238_v2  ;;  %v8593_v26 = vld [vmem:[%s12086_s11 + $0xb0] sm:$0xff]  ;;  %v11563_v45 = vsel %vm5563_vm12, 1.0, %v10238_v2  ;;  %v8608_v52 = vsel %vm5547_vm11, 1.0, %v10238_v2 }
0x171b   :  { %9692 = vmatpush3.msra.mxu1 %v8596_v27  ;;  %9699 = vmatprep.mubr.msk.f32.mxu1 %vm10239_vm0, %v10238_v2  ;;  %v5572_v63 = vsub.f32 %v8606_v48, %v11563_v45 }
0x171c   :  { %9693 = vmatprep.subr.mxu1 %v10238_v2  ;;  %v5559_v6 = vpop.permute.xlu1 %5558 }
0x171d   :  { %9694 = vmatpush3.msra.mxu1 %v8595_v25  ;;  %vm5564_vm14 = vcmp.eq.s32.totalorder %v5559_v6, %v10452_v23 }
0x171e   :  { %9695 = vmatprep.subr.mxu1 %v10238_v2 }
0x171f   :  { %9696 = vmatpush3.msra.mxu1 %v8594_v14 }
0x1720   :  { %9697 = vmatprep.subr.mxu1 %v10238_v2  ;;  %v5562_v49 = vpop.permute.xlu1 %5561 }
0x1721   :  { %9698 = vmatpush3.msra.mxu1 %v8593_v26  ;;  %vm5565_vm6 = vcmp.eq.s32.totalorder %v5562_v49, %v10452_v23 }
0x1722   :  { %9700 = vmatmul.mubr.msk.f32.vlgmr.msra.gmra.mxu1 %vm418_vm5, %v11306_v10  ;;  %9713 = vmatprep.subr.mxu1 %v10238_v2  ;;  %v11579_v10 = vsel %vm5564_vm14, 1.0, %v10238_v2  ;;  %v11592_v9 = vsel %vm5565_vm6, 1.0, %v10238_v2 }
0x1723   :  { %9714 = vmatpush3.msra.mxu1 %v11569_v47  ;;  %9715 = vmatprep.mubr.msk.f32.mxu1 %vm10239_vm0, %v10238_v2  ;;  %v5573_v55 = vsub.f32 %v8607_v54, %v11579_v10  ;;  %v5574_v53 = vsub.f32 %v8608_v52, %v11592_v9 }
0x1724   :  { %9735 = vmatprep.subr.mxu1 %v10238_v2 }
0x1726   :  { %9716 = vmatmul.mubr.msk.f32.vlgmr.msra.gmra.mxu1 %vm98_vm1, %v5572_v63 }
0x1727   :  { %9718 = vmatprep.mubr.msk.f32.mxu1 %vm10239_vm0, %v10238_v2  ;;  %9736 = vmatpush3.msk.msra.mxu1 %vm808_vm2, %v10240_v4 }
0x1728   :  { %9757 = vmatprep.subr.mxu1 %v10238_v2 }
0x172a   :  { %9719 = vmatmul.mubr.msk.f32.gmra.mxu1 %vm98_vm1, %v5573_v55 }
0x172b   :  { %9721 = vmatprep.mubr.msk.f32.mxu1 %vm10239_vm0, %v10238_v2 }
0x172e   :  { %9722 = vmatmul.mubr.msk.f32.gmra.mxu1 %vm98_vm1, %v5574_v53 }
0x172f   :  { %9737 = vmatprep.mubr.msk.f32.mxu1 %vm10239_vm0, %v10238_v2 }
0x17da   :  { %v5354_v56 = vpop.f32.mrf.mxu1 }
0x17db   :  { %v5358_v11 = vadd.f32 %v5354_v56, %v5284_v12 }
0x17dc   :  { %v9679_v15 = vpop.f32.mrf.mxu1 }
0x17dd   :  { %5359 = vst.msk [vmem:[#allocation6] sm:$0xff] %vm328_vm9, %v5358_v11 }
0x17e2   :  { %v5525_v57 = vpop.f32.mrf.mxu1 }
0x17e4   :  { %v5361_v61 = vld [vmem:[#allocation6] sm:$0xff]  ;;  %v9701_v50 = vpop.f32.mrf.mxu1 }
0x17e5   :  { %v5362_v62 = vadd.f32 %v5361_v61, %v5360_v8  ;;  %6818 = vst.msk [vmem:[#allocation6] sm:$0xff] %vm328_vm9, %v10238_v2 }
0x17e6   :  { %v5730_v1 = vpop.f32.mrf.mxu1 }
0x17e7   :  { %5363 = vst.msk [vmem:[#allocation3] sm:$0xff] %vm328_vm9, %v5362_v62  ;;  %v5836_v3 = vmul.f32 %v5730_v1, %v5730_v1  ;;  %v8632_v1 = vld [vmem:[%s12087_s12 + $0x2] ss:$0 sm:$0xff] }
0x17e8   :  { %v9717_v59 = vpop.f32.mrf.mxu1 }
0x17e9   :  { %9738 = vmatmul.mubr.msk.f32.vlgmr.msra.gmra.mxu1 %vm328_vm9, %v5836_v3 }
0x17ea   :  { %9758 = vmatpush3.msra.mxu1 %v11497_v39  ;;  %v5735_v7 = vpop.f32.mrf.mxu1  ;;  %9740 = vmatprep.mubr.msk.f32.mxu1 %vm10239_vm0, %v10238_v2 }
0x17eb   :  { %v5837_v24 = vmul.f32 %v5735_v7, %v5735_v7  ;;  %9785 = vmatprep.subr.mxu1 %v10238_v2 }
0x17ec   :  { %v9720_v0 = vpop.f32.mrf.mxu1 }
0x17ed   :  { %9741 = vmatmul.mubr.msk.f32.gmra.mxu1 %vm328_vm9, %v5837_v24 }
0x17ee   :  { %v5740_v28 = vpop.f32.mrf.mxu1  ;;  %v11612_v29 = vld [vmem:[#allocation3] sm:$0xff]  ;;  %9743 = vmatprep.mubr.msk.f32.mxu1 %vm10239_vm0, %v10238_v2 }
0x17ef   :  { %v5838_v30 = vmul.f32 %v5740_v28, %v5740_v28  ;;  %9703 = vmatpush3.msra.mxu0 %v11612_v29 }
0x17f0   :  { %9705 = vmatmul.mubr.msk.f32.vlgmr.msra.gmra.mxu0 %vm98_vm1, %v5572_v63  ;;  %v9723_v39 = vpop.f32.mrf.mxu1  ;;  %9724 = vmatprep.subr.mxu0 %v10238_v2 }
0x17f1   :  { %9744 = vmatmul.mubr.msk.f32.gmra.mxu1 %vm328_vm9, %v5838_v30  ;;  %9707 = vmatprep.mubr.msk.f32.mxu0 %vm10239_vm0, %v10238_v2 }
0x17f2   :  { %9759 = vmatprep.mubr.msk.f32.mxu1 %vm10239_vm0, %v10238_v2  ;;  %9725 = vmatpush3.msk.msra.mxu0 %vm808_vm2, %v10240_v4 }
0x17f3   :  { %9746 = vmatprep.subr.mxu0 %v10238_v2 }
0x17f4   :  { %9708 = vmatmul.mubr.msk.f32.gmra.mxu0 %vm98_vm1, %v5573_v55 }
0x17f5   :  { %9760 = vmatmul.mubr.msk.f32.vlgmr.msra.gmra.mxu1 %vm98_vm1, %v8606_v48  ;;  %9710 = vmatprep.mubr.msk.f32.mxu0 %vm10239_vm0, %v10238_v2 }
0x17f6   :  { %9762 = vmatprep.mubr.msk.f32.mxu1 %vm10239_vm0, %v10238_v2 }
0x17f8   :  { %9711 = vmatmul.mubr.msk.f32.gmra.mxu0 %vm98_vm1, %v5574_v53  ;;  %v8597_v53 = vld [vmem:[%s12086_s11 + $0xd0] sm:$0x3] }
0x17f9   :  { %9763 = vmatmul.mubr.msk.f32.gmra.mxu1 %vm98_vm1, %v8607_v54  ;;  %9726 = vmatprep.mubr.msk.f32.mxu0 %vm10239_vm0, %v10238_v2  ;;  %v6124_v56 = vrot.slane %v8597_v53, %v10629_v19  ;;  %v6149_v11 = vrot.slane %v8597_v53, %v10635_v58 }
0x17fa   :  { %9765 = vmatprep.mubr.msk.f32.mxu1 %vm10239_vm0, %v10238_v2 }
0x17fd   :  { %9766 = vmatmul.mubr.msk.f32.gmra.mxu1 %vm98_vm1, %v8608_v52  ;;  %v8602_v52 = vld [vmem:[%s12088_s13 + $0x58] sm:$0xff] }
0x17fe   :  { %9791 = vmatprep.mubr.msk.f32.mxu1 %vm10239_vm0, %v10238_v2 }
0x18a9   :  { %v5914_v31 = vpop.f32.mrf.mxu1 }
0x18aa   :  { %6133 = vperm.xlu1 %10000, %v5914_v31  }
0x18ab   :  { %v9739_v32 = vpop.f32.mrf.mxu1 }
0x18ad   :  { %v5919_v35 = vpop.f32.mrf.mxu1 }
0x18ae   :  { %6138 = vperm.xlu1 %10000, %v5919_v35  }
0x18af   :  { %v9742_v36 = vpop.f32.mrf.mxu1 }
0x18b0   :  { %v5650_v37 = vpop.f32.mrf.mxu0 }
0x18b1   :  { %v5744_v38 = vmul.f32 %v5650_v37, %v5650_v37  ;;  %v5924_v40 = vpop.f32.mrf.mxu1 }
0x18b2   :  { %6143 = vperm.xlu1 %10000, %v5924_v40   ;;  %v9706_v33 = vpop.f32.mrf.mxu0 }
0x18b3   :  { %9727 = vmatmul.mubr.msk.f32.vlgmr.msra.gmra.mxu0 %vm328_vm9, %v5744_v38  ;;  %v9745_v41 = vpop.f32.mrf.mxu1 }
0x18b4   :  { %9747 = vmatpush3.msra.mxu0 %v5525_v57  ;;  %v5655_v18 = vpop.f32.mrf.mxu0  ;;  %9729 = vmatprep.mubr.msk.f32.mxu0 %vm10239_vm0, %v10238_v2 }
0x18b5   :  { %v5745_v42 = vmul.f32 %v5655_v18, %v5655_v18  ;;  %v6092_v43 = vpop.f32.mrf.mxu1  ;;  %9768 = vmatprep.subr.mxu0 %v10238_v2 }
0x18b6   :  { %6844 = vperm.xlu1 %10000, %v11519_v17   ;;  %v9709_v20 = vpop.f32.mrf.mxu0 }
0x18b7   :  { %9730 = vmatmul.mubr.msk.f32.gmra.mxu0 %vm328_vm9, %v5745_v42  ;;  %v9761_v34 = vpop.f32.mrf.mxu1 }
0x18b8   :  { %v5660_v27 = vpop.f32.mrf.mxu0  ;;  %9732 = vmatprep.mubr.msk.f32.mxu0 %vm10239_vm0, %v10238_v2 }
0x18b9   :  { %v5746_v13 = vmul.f32 %v5660_v27, %v5660_v27  ;;  %v6097_v25 = vpop.f32.mrf.mxu1 }
0x18ba   :  { %6847 = vperm.xlu1 %10000, %v11526_v21   ;;  %v9712_v14 = vpop.f32.mrf.mxu0 }
0x18bb   :  { %9733 = vmatmul.mubr.msk.f32.gmra.mxu0 %vm328_vm9, %v5746_v13  ;;  %v9764_v6 = vpop.f32.mrf.mxu1 }
0x18bc   :  { %9748 = vmatprep.mubr.msk.f32.mxu0 %vm10239_vm0, %v10238_v2 }
0x18bd   :  { %v6102_v17 = vpop.f32.mrf.mxu1 }
0x18be   :  { %6850 = vperm.xlu1 %10000, %v11532_v46  }
0x18bf   :  { %9749 = vmatmul.mubr.msk.f32.vlgmr.msra.gmra.mxu0 %vm98_vm1, %v11563_v45  ;;  %v9767_v26 = vpop.f32.mrf.mxu1 }
0x18c0   :  { %9751 = vmatprep.mubr.msk.f32.mxu0 %vm10239_vm0, %v10238_v2  ;;  %9769 = vmatpush3.msra.mxu0 %v8602_v52  ;;  %v8649_v26 = vld [vmem:[%s12090_s15 + $0x98] sm:$0xff] }
0x18c1   :  { %9770 = vmatprep.subr.mxu0 %v10238_v2 }
0x18c3   :  { %9752 = vmatmul.mubr.msk.f32.gmra.mxu0 %vm98_vm1, %v11579_v10 }
0x18c4   :  { %9754 = vmatprep.mubr.msk.f32.mxu0 %vm10239_vm0, %v10238_v2 }
0x18c7   :  { %9755 = vmatmul.mubr.msk.f32.gmra.mxu0 %vm98_vm1, %v11592_v9 }
0x18c8   :  { %9776 = vmatprep.mubr.msk.f32.mxu0 %vm10239_vm0, %v10238_v2 }
0x1925   :  { %v6134_v12 = vpop.permute.xlu1 %6133 }
0x1926   :  { %v6150_v50 = vmul.f32 %v6149_v11, %v6134_v12 }
0x1929   :  { %v6139_v61 = vpop.permute.xlu1 %6138 }
0x192a   :  { %v6151_v0 = vmul.f32 %v6149_v11, %v6139_v61 }
0x192d   :  { %v6144_v39 = vpop.permute.xlu1 %6143 }
0x192e   :  { %v6152_v38 = vmul.f32 %v6149_v11, %v6144_v39 }
0x1973   :  { %v5822_v21 = vpop.f32.mrf.mxu0 }
0x1974   :  { %6108 = vperm.xlu0 %9999, %v5822_v21   ;;  %v8648_v21 = vld [vmem:[%s12090_s15 + $0x90] sm:$0xff] }
0x1975   :  { %v9728_v46 = vpop.f32.mrf.mxu0 }
0x1977   :  { %v5827_v44 = vpop.f32.mrf.mxu0 }
0x1978   :  { %6113 = vperm.xlu0 %9999, %v5827_v44  }
0x1979   :  { %v9731_v45 = vpop.f32.mrf.mxu0 }
0x197a   :  { %v8647_v45 = vld [vmem:[%s12090_s15 + $0x88] sm:$0xff] }
0x197b   :  { %v5832_v48 = vpop.f32.mrf.mxu0 }
0x197c   :  { %6118 = vperm.xlu0 %9999, %v5832_v48   ;;  %v8646_v48 = vld [vmem:[%s12090_s15 + $0x80] sm:$0xff] }
0x197d   :  { %v9734_v49 = vpop.f32.mrf.mxu0 }
0x197f   :  { %v6003_v63 = vpop.f32.mrf.mxu0 }
0x1980   :  { %6826 = vperm.xlu0 %9999, %v11502_v22   ;;  %v8601_v22 = vld [vmem:[%s12088_s13 + $0x50] sm:$0xff]  ;;  %v6093_v57 = vadd.f32 %v6092_v43, %v6003_v63 }
0x1981   :  { %v9750_v51 = vpop.f32.mrf.mxu0  ;;  %9771 = vmatpush3.msra.mxu0 %v8601_v22 }
0x1982   :  { %9772 = vmatprep.subr.mxu0 %v10238_v2  ;;  %v11719_v51 = vld [vmem:[#allocation2] sm:$0xff] }
0x1983   :  { %v6008_v10 = vpop.f32.mrf.mxu0 }
0x1984   :  { %6829 = vperm.xlu0 %9999, %v11508_v60   ;;  %v8600_v60 = vld [vmem:[%s12088_s13 + $0x48] sm:$0xff]  ;;  %v6098_v59 = vadd.f32 %v6097_v25, %v6008_v10  ;;  %v8636_v10 = vld [vmem:[%s12089_s14 + $0x2] ss:$0 sm:$0xff] }
0x1985   :  { %v9753_v54 = vpop.f32.mrf.mxu0  ;;  %9773 = vmatpush3.msra.mxu0 %v8600_v60 }
0x1986   :  { %9774 = vmatprep.subr.mxu0 %v10238_v2 }
0x1987   :  { %v6013_v55 = vpop.f32.mrf.mxu0 }
0x1988   :  { %6832 = vperm.xlu0 %9999, %v11514_v16   ;;  %v8599_v16 = vld [vmem:[%s12088_s13 + $0x40] sm:$0xff]  ;;  %v6103_v32 = vadd.f32 %v6102_v17, %v6013_v55 }
0x1989   :  { %v9756_v9 = vpop.f32.mrf.mxu0  ;;  %9775 = vmatpush3.msra.mxu0 %v8599_v16 }
0x198a   :  { %9805 = vmatprep.subr.mxu0 %v10238_v2 }
0x19ef   :  { %v6109_v15 = vpop.permute.xlu0 %6108 }
0x19f0   :  { %v6125_v8 = vmul.f32 %v6124_v56, %v6109_v15 }
0x19f2   :  { %v6128_v62 = vadd.f32 %v6125_v8, %v6093_v57 }
0x19f3   :  { %v6114_v3 = vpop.permute.xlu0 %6113 }
0x19f4   :  { %v6153_v7 = vadd.f32 %v6150_v50, %v6128_v62  ;;  %v6126_v24 = vmul.f32 %v6124_v56, %v6114_v3 }
0x19f6   :  { %v6162_v28 = vadd.f32 %v8632_v1, %v6153_v7  ;;  %v6129_v30 = vadd.f32 %v6126_v24, %v6098_v59  ;;  %v8643_v24 = vld [vmem:[%s12122_s26] ss:$0 sm:$0xff] }
0x19f7   :  { %v6119_v31 = vpop.permute.xlu0 %6118  ;;  %vm6307_vm12 = vcmp.eq.s32.totalorder %v8643_v24, %v10380_v5 }
0x19f8   :  { %v8633_v35 = vmul.f32 -1.442695, %v6162_v28  ;;  %v6154_v36 = vadd.f32 %v6151_v0, %v6129_v30  ;;  %v6127_v37 = vmul.f32 %v6124_v56, %v6119_v31 }
0x19fa   :  { %10143 = vpow2.f32 %v8633_v35  ;;  %v6163_v40 = vadd.f32 %v8632_v1, %v6154_v36  ;;  %v6130_v33 = vadd.f32 %v6127_v37, %v6103_v32  ;;  %v11736_v32 = vsel %vm6307_vm12, 1.0, %v10238_v2  ;;  %v8653_v35 = vld [vmem:[%s12090_s15 + $0xb8] sm:$0xff]  ;;  %v8652_v36 = vld [vmem:[%s12090_s15 + $0xb0] sm:$0xff]  ;;  %v8651_v37 = vld [vmem:[%s12090_s15 + $0xa8] sm:$0xff] }
0x19fc   :  { %v8634_v41 = vmul.f32 -1.442695, %v6163_v40  ;;  %v6155_v18 = vadd.f32 %v6152_v38, %v6130_v33  ;;  %v8650_v38 = vld [vmem:[%s12090_s15 + $0xa0] sm:$0xff] }
0x19fe   :  { %10145 = vpow2.f32 %v8634_v41  ;;  %v6164_v42 = vadd.f32 %v8632_v1, %v6155_v18 }
0x1a00   :  { %v8635_v43 = vmul.f32 -1.442695, %v6164_v42 }
0x1a02   :  { %10147 = vpow2.f32 %v8635_v43  ;;  %v8662_v43 = vld [vmem:[%s12092_s17 + $0x58] sm:$0xff] }
0x1a07   :  { %v10144_v20 = vpop.eup %10143 }
0x1a08   :  { %v6174_v34 = vadd.f32 1.0, %v10144_v20  ;;  %v8661_v20 = vld [vmem:[%s12092_s17 + $0x50] sm:$0xff] }
0x1a0a   :  { %10149 = vrcp.f32 %v6174_v34  ;;  %v8660_v34 = vld [vmem:[%s12092_s17 + $0x48] sm:$0xff] }
0x1a0b   :  { %v10146_v27 = vpop.eup %10145 }
0x1a0c   :  { %v6175_v13 = vadd.f32 1.0, %v10146_v27  ;;  %v8659_v27 = vld [vmem:[%s12092_s17 + $0x40] sm:$0xff] }
0x1a0e   :  { %10151 = vrcp.f32 %v6175_v13 }
0x1a0f   :  { %v10148_v25 = vpop.eup %10147 }
0x1a10   :  { %v6176_v14 = vadd.f32 1.0, %v10148_v25  ;;  %v8657_v25 = vld [vmem:[%s12091_s16 + $0x2] ss:$0 sm:$0xff] }
0x1a12   :  { %10153 = vrcp.f32 %v6176_v14 }
0x1a17   :  { %v10150_v6 = vpop.eup %10149 }
0x1a18   :  { %v6183_v17 = vmul.f32 %v10150_v6, %v6162_v28 }
0x1a1a   :  { %9777 = vmatmul.mubr.msk.f32.vlgmr.msra.gmra.mxu0 %vm418_vm5, %v6183_v17 }
0x1a1b   :  { %v10152_v46 = vpop.eup %10151  ;;  %9779 = vmatprep.mubr.msk.f32.mxu0 %vm10239_vm0, %v10238_v2  ;;  %9806 = vmatpush3.msra.mxu0 %v8649_v26 }
0x1a1c   :  { %v6184_v44 = vmul.f32 %v10152_v46, %v6163_v40  ;;  %9807 = vmatprep.subr.mxu0 %v10238_v2  ;;  %v6310_v40 = vld [vmem:[#allocation5] sm:$0xff] }
0x1a1d   :  { %9808 = vmatpush3.msra.mxu0 %v8648_v21 }
0x1a1e   :  { %9780 = vmatmul.mubr.msk.f32.gmra.mxu0 %vm418_vm5, %v6184_v44  ;;  %9809 = vmatprep.subr.mxu0 %v10238_v2 }
0x1a1f   :  { %v10154_v49 = vpop.eup %10153  ;;  %9782 = vmatprep.mubr.msk.f32.mxu0 %vm10239_vm0, %v10238_v2  ;;  %9810 = vmatpush3.msra.mxu0 %v8647_v45 }
0x1a20   :  { %v6185_v63 = vmul.f32 %v10154_v49, %v6164_v42  ;;  %9811 = vmatprep.subr.mxu0 %v10238_v2  ;;  %v8673_v49 = vld [vmem:[%s12094_s19 + $0xc8] sm:$0xff] }
0x1a21   :  { %9812 = vmatpush3.msra.mxu0 %v8646_v48  ;;  %v8669_v48 = vld [vmem:[%s12094_s19 + $0xa8] sm:$0xff] }
0x1a22   :  { %9783 = vmatmul.mubr.msk.f32.gmra.mxu0 %vm418_vm5, %v6185_v63  ;;  %9827 = vmatprep.subr.mxu0 %v10238_v2  ;;  %v8668_v63 = vld [vmem:[%s12094_s19 + $0xa0] sm:$0xff] }
0x1a23   :  { %9813 = vmatprep.mubr.msk.f32.mxu0 %vm10239_vm0, %v10238_v2 }
0x1a26   :  { %9814 = vmatmul.mubr.msk.f32.vlgmr.msra.gmra.mxu0 %vm418_vm5, %v11719_v51 }
0x1a27   :  { %9835 = vmatprep.mubr.msk.f32.mxu0 %vm10239_vm0, %v10238_v2  ;;  %9828 = vmatpush3.msra.mxu0 %v8669_v48 }
0x1a28   :  { %9829 = vmatprep.subr.mxu0 %v10238_v2 }
0x1a29   :  { %9830 = vmatpush3.msra.mxu0 %v8668_v63 }
0x1a2a   :  { %9831 = vmatprep.subr.mxu0 %v10238_v2 }
0x1ada   :  { %v6267_v54 = vpop.f32.mrf.mxu0 }
0x1adb   :  { %v6268_v9 = vadd.f32 %v8636_v10, %v6267_v54  ;;  %v8667_v54 = vld [vmem:[%s12094_s19 + $0x98] sm:$0xff] }
0x1adc   :  { %v9778_v55 = vpop.f32.mrf.mxu0  ;;  %9832 = vmatpush3.msra.mxu0 %v8667_v54 }
0x1add   :  { %v8640_v16 = vmul.f32 -1.442695, %v6268_v9  ;;  %v8671_v55 = vld [vmem:[%s12094_s19 + $0xb8] sm:$0xff]  ;;  %9833 = vmatprep.subr.mxu0 %v10238_v2 }
0x1ade   :  { %v6272_v52 = vpop.f32.mrf.mxu0 }
0x1adf   :  { %v6273_v22 = vadd.f32 %v8636_v10, %v6272_v52  ;;  %v8670_v52 = vld [vmem:[%s12094_s19 + $0xb0] sm:$0xff] }
0x1ae0   :  { %v9781_v60 = vpop.f32.mrf.mxu0 }
0x1ae1   :  { %v8641_v53 = vmul.f32 -1.442695, %v6273_v22  ;;  %v8665_v60 = vld [vmem:[%s12093_s18 + $0x2] ss:$0 sm:$0xff] }
0x1ae2   :  { %v6277_v12 = vpop.f32.mrf.mxu0 }
0x1ae3   :  { %10155 = vpow2.f32 %v8641_v53  ;;  %v6278_v56 = vadd.f32 %v8636_v10, %v6277_v12  ;;  %v8672_v10 = vld [vmem:[%s12094_s19 + $0xc0] sm:$0xff]  ;;  %v6827_v53 = vpop.permute.xlu0 %6826 }
0x1ae4   :  { %v9784_v11 = vpop.f32.mrf.mxu0  ;;  %10157 = vpow2.f32 %v8640_v16  ;;  %vm6834_vm13 = vcmp.eq.s32.totalorder %v6827_v53, %v10452_v23 }
0x1ae5   :  { %v8642_v15 = vmul.f32 -1.442695, %v6278_v56  ;;  %v6845_v11 = vpop.permute.xlu1 %6844 }
0x1ae6   :  { %v11728_v57 = vpop.f32.mrf.mxu0  ;;  %vm6852_vm14 = vcmp.eq.s32.totalorder %v6845_v11, %v10452_v23 }
0x1ae7   :  { %10159 = vpow2.f32 %v8642_v15  ;;  %v6830_v15 = vpop.permute.xlu0 %6829 }
0x1ae8   :  { %v9815_v8 = vpop.f32.mrf.mxu0  ;;  %vm6835_vm15 = vcmp.eq.s32.totalorder %v6830_v15, %v10452_v23 }
0x1ae9   :  { %v11827_v8 = vsel %vm6834_vm13, 1.0, %v10238_v2 }
0x1af0   :  { %v10156_v61 = vpop.eup %10155 }
0x1af1   :  { %v10158_v50 = vpop.eup %10157  ;;  %v6291_v62 = vadd.f32 1.0, %v10156_v61 }
0x1af2   :  { %v6290_v3 = vadd.f32 1.0, %v10158_v50  ;;  %v6833_v50 = vpop.permute.xlu0 %6832 }
0x1af3   :  { %10161 = vrcp.f32 %v6291_v62  ;;  %vm6836_vm11 = vcmp.eq.s32.totalorder %v6833_v50, %v10452_v23 }
0x1af4   :  { %v10160_v1 = vpop.eup %10159 }
0x1af5   :  { %v6292_v59 = vadd.f32 1.0, %v10160_v1 }
0x1af7   :  { %10163 = vrcp.f32 %v6292_v59  ;;  %v8689_v59 = vsel %vm6836_vm11, 1.0, %v10238_v2 }
0x1af8   :  { %10165 = vrcp.f32 %v6290_v3  ;;  %v11849_v3 = vsel %vm6835_vm15, 1.0, %v10238_v2 }
0x1b00   :  { %v10162_v7 = vpop.eup %10161 }
0x1b01   :  { %v6300_v39 = vmul.f32 %v10162_v7, %v6273_v22 }
0x1b04   :  { %v10164_v0 = vpop.eup %10163 }
0x1b05   :  { %v6301_v28 = vmul.f32 %v10164_v0, %v6278_v56  ;;  %v10166_v30 = vpop.eup %10165 }
0x1b06   :  { %v6299_v31 = vmul.f32 %v10166_v30, %v6268_v9  ;;  %v8666_v9 = vld [vmem:[%s12094_s19 + $0x90] sm:$0xff] }
0x1b07   :  { %9786 = vmatpush3.msra.mxu1 %v6301_v28  ;;  %9834 = vmatpush3.msra.mxu0 %v8666_v9 }
0x1b08   :  { %9787 = vmatprep.subr.mxu1 %v10238_v2  ;;  %9849 = vmatprep.subr.mxu0 %v10238_v2 }
0x1b09   :  { %9788 = vmatpush3.msra.mxu1 %v6300_v39 }
0x1b0a   :  { %9789 = vmatprep.subr.mxu1 %v10238_v2 }
0x1b0b   :  { %9790 = vmatpush3.msra.mxu1 %v6299_v31 }
0x1b0c   :  { %9792 = vmatmul.mubr.msk.f32.vlgmr.msra.gmra.mxu1 %vm1367_vm10, %v11736_v32  ;;  %9794 = vmatprep.subr.mxu1 %v10238_v2 }
0x1b0d   :  { %9802 = vmatprep.mubr.msk.f32.mxu1 %vm10239_vm0, %v10238_v2  ;;  %9795 = vmatpush3.msra.mxu1 %v8653_v35 }
0x1b0e   :  { %9796 = vmatprep.subr.mxu1 %v10238_v2 }
0x1b0f   :  { %9797 = vmatpush3.msra.mxu1 %v8652_v36 }
0x1b10   :  { %9798 = vmatprep.subr.mxu1 %v10238_v2 }
0x1b11   :  { %9799 = vmatpush3.msra.mxu1 %v8651_v37 }
0x1b12   :  { %9800 = vmatprep.subr.mxu1 %v10238_v2 }
0x1b13   :  { %9801 = vmatpush3.msra.mxu1 %v8650_v38 }
0x1b14   :  { %9816 = vmatprep.subr.mxu1 %v10238_v2 }
0x1bcc   :  { %v6380_v33 = vpop.f32.mrf.mxu1 }
0x1bcd   :  { %v6384_v41 = vadd.f32 %v6380_v33, %v6310_v40 }
0x1bce   :  { %v9793_v18 = vpop.f32.mrf.mxu1 }
0x1bcf   :  { %6385 = vst.msk [vmem:[#allocation5] sm:$0xff] %vm418_vm5, %v6384_v41 }
0x1bd6   :  { %v6386_v42 = vld [vmem:[#allocation5] sm:$0xff] }
0x1bd7   :  { %9803 = vmatmul.mubr.msk.f32.vlgmr.msra.gmra.mxu1 %vm418_vm5, %v6386_v42 }
0x1bd8   :  { %9824 = vmatprep.mubr.msk.f32.mxu1 %vm10239_vm0, %v10238_v2  ;;  %9817 = vmatpush3.msra.mxu1 %v8662_v43 }
0x1bd9   :  { %9818 = vmatprep.subr.mxu1 %v10238_v2 }
0x1bda   :  { %9819 = vmatpush3.msra.mxu1 %v8661_v20 }
0x1bdb   :  { %9820 = vmatprep.subr.mxu1 %v10238_v2 }
0x1bdc   :  { %9821 = vmatpush3.msra.mxu1 %v8660_v34 }
0x1bdd   :  { %9822 = vmatprep.subr.mxu1 %v10238_v2 }
0x1bde   :  { %9823 = vmatpush3.msra.mxu1 %v8659_v27 }
0x1bdf   :  { %9838 = vmatprep.subr.mxu1 %v10238_v2 }
0x1c97   :  { %v6466_v13 = vpop.f32.mrf.mxu1 }
0x1c98   :  { %v6540_v14 = vadd.f32 %v11728_v57, %v6466_v13  ;;  %v6848_v57 = vpop.permute.xlu1 %6847 }
0x1c99   :  { %v9804_v6 = vpop.f32.mrf.mxu1  ;;  %vm6853_vm6 = vcmp.eq.s32.totalorder %v6848_v57, %v10452_v23 }
0x1c9a   :  { %v6551_v17 = vadd.f32 %v8657_v25, %v6540_v14 }
0x1c9c   :  { %v8658_v26 = vmul.f32 -1.442695, %v6551_v17  ;;  %v6851_v1 = vpop.permute.xlu1 %6850 }
0x1c9d   :  { %vm6854_vm12 = vcmp.eq.s32.totalorder %v6851_v1, %v10452_v23 }
0x1c9e   :  { %10167 = vpow2.f32 %v8658_v26  ;;  %v8692_v7 = vsel %vm6854_vm12, 1.0, %v10238_v2 }
0x1c9f   :  { %v6863_v24 = vsub.f32 %v8689_v59, %v8692_v7 }
0x1cab   :  { %v10168_v21 = vpop.eup %10167 }
0x1cac   :  { %v6555_v46 = vadd.f32 1.0, %v10168_v21 }
0x1cae   :  { %10169 = vrcp.f32 %v6555_v46 }
0x1cbb   :  { %v10170_v44 = vpop.eup %10169 }
0x1cbc   :  { %v6558_v45 = vmul.f32 %v10170_v44, %v6551_v17 }
0x1cbe   :  { %9825 = vmatmul.mubr.msk.f32.vlgmr.msra.gmra.mxu1 %vm418_vm5, %v6558_v45 }
0x1cbf   :  { %9846 = vmatprep.mubr.msk.f32.mxu1 %vm10239_vm0, %v10238_v2  ;;  %9839 = vmatpush3.msra.mxu1 %v8673_v49 }
0x1cc0   :  { %9840 = vmatprep.subr.mxu1 %v10238_v2 }
0x1cc1   :  { %9841 = vmatpush3.msra.mxu1 %v8672_v10 }
0x1cc2   :  { %9842 = vmatprep.subr.mxu1 %v10238_v2 }
0x1cc3   :  { %9843 = vmatpush3.msra.mxu1 %v8671_v55 }
0x1cc4   :  { %9844 = vmatprep.subr.mxu1 %v10238_v2 }
0x1cc5   :  { %9845 = vmatpush3.msra.mxu1 %v8670_v52 }
0x1cc6   :  { %9860 = vmatprep.subr.mxu1 %v10238_v2 }
0x1d7e   :  { %v6633_v22 = vpop.f32.mrf.mxu1 }
0x1d7f   :  { %v6637_v16 = vadd.f32 %v6633_v22, %v11719_v51  ;;  %v11837_v51 = vsel %vm6852_vm14, 1.0, %v10238_v2 }
0x1d80   :  { %v9826_v12 = vpop.f32.mrf.mxu1  ;;  %v6861_v62 = vsub.f32 %v11827_v8, %v11837_v51 }
0x1d81   :  { %v6646_v56 = vadd.f32 %v8665_v60, %v6637_v16 }
0x1d83   :  { %6647 = vst.msk [vmem:[#allocation2] sm:$0xff] %vm418_vm5, %v6646_v56 }
0x1d8a   :  { %v11829_v61 = vld [vmem:[#allocation2] sm:$0xff] }
0x1d8b   :  { %9836 = vmatmul.mubr.msk.f32.vlgmr.msra.gmra.mxu0 %vm418_vm5, %v11829_v61  ;;  %9847 = vmatmul.mubr.msk.f32.vlgmr.msra.gmra.mxu1 %vm418_vm5, %v11829_v61 }
0x1d8c   :  { %9850 = vmatpush3.msra.mxu0 %v11612_v29  ;;  %9861 = vmatpush3.msra.mxu1 %v11569_v47  ;;  %v8691_v47 = vsel %vm6853_vm6, 1.0, %v10238_v2 }
0x1d8d   :  { %9851 = vmatprep.mubr.msk.f32.mxu0 %vm10239_vm0, %v10238_v2  ;;  %9862 = vmatprep.mubr.msk.f32.mxu1 %vm10239_vm0, %v10238_v2  ;;  %v6862_v29 = vsub.f32 %v11849_v3, %v8691_v47 }
0x1d8e   :  { %9871 = vmatprep.subr.mxu0 %v10238_v2  ;;  %9882 = vmatprep.subr.mxu1 %v10238_v2 }
0x1d8f   :  { %9852 = vmatmul.mubr.msk.f32.vlgmr.msra.gmra.mxu0 %vm98_vm1, %v6861_v62  ;;  %9863 = vmatmul.mubr.msk.f32.vlgmr.msra.gmra.mxu1 %vm98_vm1, %v6861_v62 }
0x1d90   :  { %9854 = vmatprep.mubr.msk.f32.mxu0 %vm10239_vm0, %v10238_v2  ;;  %9865 = vmatprep.mubr.msk.f32.mxu1 %vm10239_vm0, %v10238_v2 }
0x1d91   :  { %9872 = vmatpush3.msk.msra.mxu0 %vm808_vm2, %v10240_v4  ;;  %9883 = vmatpush3.msk.msra.mxu1 %vm808_vm2, %v10240_v4 }
0x1d92   :  { %9893 = vmatprep.subr.mxu0 %v10238_v2  ;;  %9904 = vmatprep.subr.mxu1 %v10238_v2 }
0x1d93   :  { %9855 = vmatmul.mubr.msk.f32.gmra.mxu0 %vm98_vm1, %v6862_v29  ;;  %9866 = vmatmul.mubr.msk.f32.gmra.mxu1 %vm98_vm1, %v6862_v29 }
0x1d94   :  { %9857 = vmatprep.mubr.msk.f32.mxu0 %vm10239_vm0, %v10238_v2  ;;  %9868 = vmatprep.mubr.msk.f32.mxu1 %vm10239_vm0, %v10238_v2 }
0x1d97   :  { %9858 = vmatmul.mubr.msk.f32.gmra.mxu0 %vm98_vm1, %v6863_v24  ;;  %9869 = vmatmul.mubr.msk.f32.gmra.mxu1 %vm98_vm1, %v6863_v24 }
0x1d98   :  { %9873 = vmatprep.mubr.msk.f32.mxu0 %vm10239_vm0, %v10238_v2  ;;  %9884 = vmatprep.mubr.msk.f32.mxu1 %vm10239_vm0, %v10238_v2 }
0x1e4b   :  { %v6744_v0 = vpop.f32.mrf.mxu0  ;;  %v6814_v28 = vpop.f32.mrf.mxu1 }
0x1e4d   :  { %v9837_v30 = vpop.f32.mrf.mxu0  ;;  %v9848_v39 = vpop.f32.mrf.mxu1 }
0x1e4f   :  { %v11883_v31 = vpop.f32.mrf.mxu0  ;;  %v7019_v35 = vpop.f32.mrf.mxu1 }
0x1e50   :  { %v7033_v36 = vmul.f32 %v11883_v31, %v11883_v31  ;;  %v7125_v37 = vmul.f32 %v7019_v35, %v7019_v35 }
0x1e51   :  { %v9853_v38 = vpop.f32.mrf.mxu0  ;;  %v9864_v40 = vpop.f32.mrf.mxu1 }
0x1e52   :  { %9874 = vmatmul.mubr.msk.f32.vlgmr.msra.gmra.mxu0 %vm328_vm9, %v7033_v36  ;;  %9885 = vmatmul.mubr.msk.f32.vlgmr.msra.gmra.mxu1 %vm328_vm9, %v7125_v37 }
0x1e53   :  { %9894 = vmatpush3.msra.mxu0 %v6814_v28  ;;  %9905 = vmatpush3.msra.mxu1 %v6744_v0  ;;  %v11889_v33 = vpop.f32.mrf.mxu0  ;;  %v7024_v41 = vpop.f32.mrf.mxu1 }
0x1e54   :  { %v7034_v18 = vmul.f32 %v11889_v33, %v11889_v33  ;;  %v7126_v42 = vmul.f32 %v7024_v41, %v7024_v41  ;;  %9876 = vmatprep.mubr.msk.f32.mxu0 %vm10239_vm0, %v10238_v2  ;;  %9887 = vmatprep.mubr.msk.f32.mxu1 %vm10239_vm0, %v10238_v2 }
0x1e55   :  { %v9856_v43 = vpop.f32.mrf.mxu0  ;;  %v9867_v20 = vpop.f32.mrf.mxu1  ;;  %9915 = vmatprep.subr.mxu0 %v10238_v2  ;;  %9932 = vmatprep.subr.mxu1 %v10238_v2 }
0x1e56   :  { %9877 = vmatmul.mubr.msk.f32.gmra.mxu0 %vm328_vm9, %v7034_v18  ;;  %9888 = vmatmul.mubr.msk.f32.gmra.mxu1 %vm328_vm9, %v7126_v42  ;;  %v8679_v20 = vld [vmem:[%s12096_s21 + $0x58] sm:$0xff] }
0x1e57   :  { %v11901_v34 = vpop.f32.mrf.mxu0  ;;  %v7029_v27 = vpop.f32.mrf.mxu1  ;;  %9879 = vmatprep.mubr.msk.f32.mxu0 %vm10239_vm0, %v10238_v2  ;;  %9890 = vmatprep.mubr.msk.f32.mxu1 %vm10239_vm0, %v10238_v2 }
0x1e58   :  { %v7035_v13 = vmul.f32 %v11901_v34, %v11901_v34  ;;  %v7127_v25 = vmul.f32 %v7029_v27, %v7029_v27 }
0x1e59   :  { %v9859_v14 = vpop.f32.mrf.mxu0  ;;  %v9870_v6 = vpop.f32.mrf.mxu1 }
0x1e5a   :  { %9880 = vmatmul.mubr.msk.f32.gmra.mxu0 %vm328_vm9, %v7035_v13  ;;  %9891 = vmatmul.mubr.msk.f32.gmra.mxu1 %vm328_vm9, %v7127_v25  ;;  %v8678_v13 = vld [vmem:[%s12096_s21 + $0x50] sm:$0xff]  ;;  %v8677_v25 = vld [vmem:[%s12096_s21 + $0x48] sm:$0xff]  ;;  %v8676_v14 = vld [vmem:[%s12096_s21 + $0x40] sm:$0xff] }
0x1e5b   :  { %9895 = vmatprep.mubr.msk.f32.mxu0 %vm10239_vm0, %v10238_v2  ;;  %9906 = vmatprep.mubr.msk.f32.mxu1 %vm10239_vm0, %v10238_v2  ;;  %v8674_v6 = vld [vmem:[%s12094_s19 + $0xd0] sm:$0x3] }
0x1e5e   :  { %9896 = vmatmul.mubr.msk.f32.vlgmr.msra.gmra.mxu0 %vm98_vm1, %v11837_v51  ;;  %9907 = vmatmul.mubr.msk.f32.vlgmr.msra.gmra.mxu1 %vm98_vm1, %v11827_v8 }
0x1e5f   :  { %9898 = vmatprep.mubr.msk.f32.mxu0 %vm10239_vm0, %v10238_v2  ;;  %9909 = vmatprep.mubr.msk.f32.mxu1 %vm10239_vm0, %v10238_v2 }
0x1e60   :  { %9916 = vmatpush3.msra.mxu0 %v8679_v20 }
0x1e61   :  { %9917 = vmatprep.subr.mxu0 %v10238_v2 }
0x1e62   :  { %9899 = vmatmul.mubr.msk.f32.gmra.mxu0 %vm98_vm1, %v8691_v47  ;;  %9910 = vmatmul.mubr.msk.f32.gmra.mxu1 %vm98_vm1, %v11849_v3 }
0x1e63   :  { %9901 = vmatprep.mubr.msk.f32.mxu0 %vm10239_vm0, %v10238_v2  ;;  %9912 = vmatprep.mubr.msk.f32.mxu1 %vm10239_vm0, %v10238_v2 }
0x1e64   :  { %9918 = vmatpush3.msra.mxu0 %v8678_v13 }
0x1e65   :  { %9919 = vmatprep.subr.mxu0 %v10238_v2 }
0x1e66   :  { %9902 = vmatmul.mubr.msk.f32.gmra.mxu0 %vm98_vm1, %v8692_v7  ;;  %9913 = vmatmul.mubr.msk.f32.gmra.mxu1 %vm98_vm1, %v8689_v59 }
0x1e67   :  { %9923 = vmatprep.mubr.msk.f32.mxu0 %vm10239_vm0, %v10238_v2  ;;  %9940 = vmatprep.mubr.msk.f32.mxu1 %vm10239_vm0, %v10238_v2 }
0x1e68   :  { %9920 = vmatpush3.msra.mxu0 %v8677_v25 }
0x1e69   :  { %9921 = vmatprep.subr.mxu0 %v10238_v2 }
0x1e6a   :  { %9922 = vmatpush3.msra.mxu0 %v8676_v14 }
0x1e6b   :  { %9949 = vmatprep.subr.mxu0 %v10238_v2 }
0x1f12   :  { %v7111_v17 = vpop.f32.mrf.mxu0  ;;  %v7203_v26 = vpop.f32.mrf.mxu1 }
0x1f13   :  { %7422 = vperm.xlu1 %10000, %v7203_v26   ;;  %7397 = vperm.xlu0 %9999, %v7111_v17   ;;  %v7683_v21 = vadd.f32 1e-08, %v7111_v17  ;;  %v7413_v17 = vrot.slane %v8674_v6, %v10629_v19  ;;  %v7438_v26 = vrot.slane %v8674_v6, %v10635_v58 }
0x1f14   :  { %v9875_v46 = vpop.f32.mrf.mxu0  ;;  %v9886_v44 = vpop.f32.mrf.mxu1 }
0x1f15   :  { %10171 = vrsqrt.f32 %v7683_v21  ;;  %vm7688_vm6 = vcmp.eq.f32.partialorder %v7683_v21, inf  ;;  %v7691_v18 = vand.u32 2147483648, %v7683_v21  ;;  %vm7690_vm12 = vcmp.eq.f32.partialorder %v7683_v21, 0.0 }
0x1f16   :  { %v7116_v45 = vpop.f32.mrf.mxu0  ;;  %v7208_v48 = vpop.f32.mrf.mxu1 }
0x1f17   :  { %v7684_v49 = vadd.f32 1e-08, %v7116_v45  ;;  %7427 = vperm.xlu1 %10000, %v7208_v48   ;;  %7402 = vperm.xlu0 %9999, %v7116_v45  }
0x1f18   :  { %v9878_v63 = vpop.f32.mrf.mxu0  ;;  %v9889_v10 = vpop.f32.mrf.mxu1 }
0x1f19   :  { %10173 = vrsqrt.f32 %v7684_v49  ;;  %vm7695_vm13 = vcmp.eq.f32.partialorder %v7684_v49, inf  ;;  %v7698_v24 = vand.u32 2147483648, %v7684_v49  ;;  %vm7697_vm14 = vcmp.eq.f32.partialorder %v7684_v49, 0.0 }
0x1f1a   :  { %v7121_v54 = vpop.f32.mrf.mxu0  ;;  %v7213_v55 = vpop.f32.mrf.mxu1 }
0x1f1b   :  { %v7685_v9 = vadd.f32 1e-08, %v7121_v54  ;;  %7432 = vperm.xlu1 %10000, %v7213_v55   ;;  %7407 = vperm.xlu0 %9999, %v7121_v54  }
0x1f1c   :  { %v9881_v52 = vpop.f32.mrf.mxu0  ;;  %v9892_v22 = vpop.f32.mrf.mxu1 }
0x1f1d   :  { %10175 = vrsqrt.f32 %v7685_v9  ;;  %vm7702_vm15 = vcmp.eq.f32.partialorder %v7685_v9, inf  ;;  %v7705_v37 = vand.u32 2147483648, %v7685_v9  ;;  %vm7704_vm11 = vcmp.eq.f32.partialorder %v7685_v9, 0.0 }
0x1f1e   :  { %v7292_v60 = vpop.f32.mrf.mxu0  ;;  %v7381_v16 = vpop.f32.mrf.mxu1 }
0x1f1f   :  { %v7382_v53 = vadd.f32 %v7381_v16, %v7292_v60 }
0x1f20   :  { %v9897_v12 = vpop.f32.mrf.mxu0  ;;  %v9908_v56 = vpop.f32.mrf.mxu1 }
0x1f22   :  { %v7297_v11 = vpop.f32.mrf.mxu0  ;;  %v7386_v15 = vpop.f32.mrf.mxu1 }
0x1f23   :  { %v7387_v57 = vadd.f32 %v7386_v15, %v7297_v11  ;;  %v10172_v50 = vpop.eup %10171 }
0x1f24   :  { %v9900_v8 = vpop.f32.mrf.mxu0  ;;  %v9911_v51 = vpop.f32.mrf.mxu1  ;;  %v7687_v28 = vmul.f32 %v10172_v50, %v7683_v21 }
0x1f26   :  { %v10174_v62 = vpop.eup %10173  ;;  %v7302_v1 = vpop.f32.mrf.mxu0  ;;  %v7689_v40 = vsel %vm7688_vm6, %v7683_v21, %v7687_v28 }
0x1f27   :  { %v7391_v3 = vpop.f32.mrf.mxu1  ;;  %v7694_v29 = vmul.f32 %v10174_v62, %v7684_v49  ;;  %v7692_v43 = vsel %vm7690_vm12, %v7691_v18, %v7689_v40 }
0x1f28   :  { %v11936_v47 = vadd.f32 %v7391_v3, %v7302_v1  ;;  %v9903_v59 = vpop.f32.mrf.mxu0  ;;  %v7707_v27 = vadd.f32 1.0, %v7692_v43 }
0x1f29   :  { %v9914_v7 = vpop.f32.mrf.mxu1  ;;  %v7696_v0 = vsel %vm7695_vm13, %v7684_v49, %v7694_v29  ;;  %v8713_v49 = vld [vmem:[%s12095_s20 + $0x2] ss:$0 sm:$0xff] }
0x1f2a   :  { %v10176_v30 = vpop.eup %10175  ;;  %v7699_v39 = vsel %vm7697_vm14, %v7698_v24, %v7696_v0 }
0x1f2b   :  { %v7708_v35 = vadd.f32 1.0, %v7699_v39  ;;  %v7701_v36 = vmul.f32 %v10176_v30, %v7685_v9  ;;  %v8684_v39 = vld [vmem:[%s12098_s23 + $0x58] sm:$0xff] }
0x1f2c   :  { %9933 = vmatpush3.msra.mxu1 %v8684_v39 }
0x1f2d   :  { %7717 = vperm.xlu1 %10000, %v7708_v35   ;;  %v7703_v38 = vsel %vm7702_vm15, %v7685_v9, %v7701_v36  ;;  %9934 = vmatprep.subr.mxu1 %v10238_v2  ;;  %v8683_v35 = vld [vmem:[%s12098_s23 + $0x50] sm:$0xff]  ;;  %v8682_v36 = vld [vmem:[%s12098_s23 + $0x48] sm:$0xff] }
0x1f2e   :  { %v7706_v41 = vsel %vm7704_vm11, %v7705_v37, %v7703_v38  ;;  %9935 = vmatpush3.msra.mxu1 %v8683_v35  ;;  %v8681_v37 = vld [vmem:[%s12098_s23 + $0x40] sm:$0xff] }
0x1f2f   :  { %v7709_v42 = vadd.f32 1.0, %v7706_v41  ;;  %9936 = vmatprep.subr.mxu1 %v10238_v2  ;;  %v8717_v38 = vld [vmem:[%s12097_s22 + $0x2] ss:$0 sm:$0xff] }
0x1f30   :  { %9937 = vmatpush3.msra.mxu1 %v8682_v36 }
0x1f31   :  { %7722 = vperm.xlu0 %9999, %v7709_v42   ;;  %9938 = vmatprep.subr.mxu1 %v10238_v2 }
0x1f32   :  { %9939 = vmatpush3.msra.mxu1 %v8681_v37 }
0x1f33   :  { %9958 = vmatprep.subr.mxu1 %v10238_v2 }
0x1f35   :  { %7712 = vperm.xlu0 %9999, %v7707_v27  }
0x1f8e   :  { %v7423_v21 = vpop.permute.xlu1 %7422  ;;  %v7398_v46 = vpop.permute.xlu0 %7397 }
0x1f8f   :  { %v7414_v44 = vmul.f32 %v7413_v17, %v7398_v46  ;;  %v7439_v45 = vmul.f32 %v7438_v26, %v7423_v21 }
0x1f91   :  { %v7417_v48 = vadd.f32 %v7414_v44, %v7382_v53 }
0x1f92   :  { %v7428_v63 = vpop.permute.xlu1 %7427  ;;  %v7403_v10 = vpop.permute.xlu0 %7402 }
0x1f93   :  { %v7442_v54 = vadd.f32 %v7439_v45, %v7417_v48  ;;  %v7415_v55 = vmul.f32 %v7413_v17, %v7403_v10  ;;  %v7440_v52 = vmul.f32 %v7438_v26, %v7428_v63  ;;  %v7844_v10 = vld [vmem:[%s12084_s9 + $0x18] sm:$0xff] }
0x1f95   :  { %v7451_v9 = vadd.f32 %v8713_v49, %v7442_v54  ;;  %v7418_v22 = vadd.f32 %v7415_v55, %v7387_v57  ;;  %v7843_v54 = vld [vmem:[%s12084_s9 + $0x10] sm:$0xff] }
0x1f96   :  { %v7433_v60 = vpop.permute.xlu1 %7432  ;;  %v7408_v19 = vpop.permute.xlu0 %7407 }
0x1f97   :  { %v8714_v16 = vmul.f32 -1.442695, %v7451_v9  ;;  %v7443_v58 = vadd.f32 %v7440_v52, %v7418_v22  ;;  %v7416_v12 = vmul.f32 %v7413_v17, %v7408_v19  ;;  %v7441_v11 = vmul.f32 %v7438_v26, %v7433_v60  ;;  %v7842_v52 = vld [vmem:[%s12084_s9 + $0x8] sm:$0xff]  ;;  %v7841_v22 = vld [vmem:[%s12084_s9] sm:$0xff] }
0x1f99   :  { %10177 = vpow2.f32 %v8714_v16  ;;  %v7452_v56 = vadd.f32 %v8713_v49, %v7443_v58  ;;  %v7419_v53 = vadd.f32 %v7416_v12, %v11936_v47 }
0x1f9b   :  { %v8715_v15 = vmul.f32 -1.442695, %v7452_v56  ;;  %v7444_v8 = vadd.f32 %v7441_v11, %v7419_v53 }
0x1f9d   :  { %10179 = vpow2.f32 %v8715_v15  ;;  %v7453_v51 = vadd.f32 %v8713_v49, %v7444_v8 }
0x1f9f   :  { %v8716_v50 = vmul.f32 -1.442695, %v7453_v51 }
0x1fa1   :  { %10181 = vpow2.f32 %v8716_v50 }
0x1fa6   :  { %v10178_v62 = vpop.eup %10177 }
0x1fa7   :  { %v7463_v1 = vadd.f32 1.0, %v10178_v62  ;;  %v7926_v62 = vld [vmem:[%s12118_s28] sm:$0xff] }
0x1fa9   :  { %10183 = vrcp.f32 %v7463_v1 }
0x1faa   :  { %v10180_v57 = vpop.eup %10179 }
0x1fab   :  { %v7464_v3 = vadd.f32 1.0, %v10180_v57  ;;  %v7718_v57 = vpop.permute.xlu1 %7717 }
0x1fac   :  { %v7723_v1 = vpop.permute.xlu0 %7722 }
0x1fad   :  { %10185 = vrcp.f32 %v7464_v3 }
0x1fae   :  { %v10182_v29 = vpop.eup %10181 }
0x1faf   :  { %v7465_v59 = vadd.f32 1.0, %v10182_v29 }
0x1fb0   :  { %v7713_v3 = vpop.permute.xlu0 %7712 }
0x1fb1   :  { %10187 = vrcp.f32 %v7465_v59 }
0x1fb6   :  { %v10184_v7 = vpop.eup %10183 }
0x1fb7   :  { %v7472_v24 = vmul.f32 %v10184_v7, %v7451_v9 }
0x1fb9   :  { %9924 = vmatmul.mubr.msk.f32.vlgmr.msra.gmra.mxu0 %vm418_vm5, %v7472_v24 }
0x1fba   :  { %v10186_v47 = vpop.eup %10185  ;;  %9926 = vmatprep.mubr.msk.f32.mxu0 %vm10239_vm0, %v10238_v2 }
0x1fbb   :  { %v7473_v0 = vmul.f32 %v10186_v47, %v7452_v56 }
0x1fbd   :  { %9927 = vmatmul.mubr.msk.f32.gmra.mxu0 %vm418_vm5, %v7473_v0 }
0x1fbe   :  { %v10188_v28 = vpop.eup %10187  ;;  %9929 = vmatprep.mubr.msk.f32.mxu0 %vm10239_vm0, %v10238_v2 }
0x1fbf   :  { %v7474_v30 = vmul.f32 %v10188_v28, %v7453_v51 }
0x1fc1   :  { %9930 = vmatmul.mubr.msk.f32.gmra.mxu0 %vm418_vm5, %v7474_v30 }
0x1fc2   :  { %9955 = vmatprep.mubr.msk.f32.mxu0 %vm10239_vm0, %v10238_v2 }
0x2079   :  { %v7556_v40 = vpop.f32.mrf.mxu0 }
0x207a   :  { %v7557_v41 = vadd.f32 %v8717_v38, %v7556_v40 }
0x207b   :  { %v9925_v18 = vpop.f32.mrf.mxu0 }
0x207c   :  { %v8721_v42 = vmul.f32 -1.442695, %v7557_v41 }
0x207d   :  { %v7561_v43 = vpop.f32.mrf.mxu0 }
0x207e   :  { %10189 = vpow2.f32 %v8721_v42  ;;  %v7562_v20 = vadd.f32 %v8717_v38, %v7561_v43  ;;  %v7836_v42 = vld [vmem:[#allocation3] sm:$0xff] }
0x207f   :  { %v9928_v27 = vpop.f32.mrf.mxu0 }
0x2080   :  { %v8722_v13 = vmul.f32 -1.442695, %v7562_v20  ;;  %v8173_v27 = vadd.s32 3, %v10380_v5 }
0x2081   :  { %v7566_v25 = vpop.f32.mrf.mxu0 }
0x2082   :  { %10191 = vpow2.f32 %v8722_v13  ;;  %v7567_v14 = vadd.f32 %v8717_v38, %v7566_v25 }
0x2083   :  { %v9931_v6 = vpop.f32.mrf.mxu0 }
0x2084   :  { %v8723_v17 = vmul.f32 -1.442695, %v7567_v14  ;;  %v8730_v6 = vld [vmem:[%s12085_s10] ss:$0 sm:$0xff]  ;;  %s10242_s10 = smov [#allocation7]  }
0x2085   :  { %s8337_s6 = sshll.u32 %s10242_s10, 4  ;;  %s8338_s6 = int_to_ptr.vmem [resolvable:$true] %s8337_s6 }
0x2086   :  { %10193 = vpow2.f32 %v8723_v17  ;;  %s10216_s29 = scalar_lea.vmem %s8338_s6, 128  ;;  %p10221_p1 = scmp.lt.s32.totalorder %s8338_s6, %s8338_s6 }
0x2087   :  { %p10217_p0 = scmp.ne.s32.totalorder %s8338_s6, %s10216_s29  ;;  %p10222_p2 = scmp.lt.s32.totalorder %s10216_s29, %s10216_s29 }
0x2089   :  { %p10223_p3 = por %p10222_p2, %p10221_p1 }
0x208b   :  { %v10190_v26 = vpop.eup %10189  ;;  %p10224_p4 = pnand %p10223_p3, %p10217_p0 }
0x208c   :  { %v7579_v21 = vadd.f32 1.0, %v10190_v26 }
0x208e   :  { %10195 = vrcp.f32 %v7579_v21 }
0x208f   :  { %v10192_v46 = vpop.eup %10191 }
0x2090   :  { %v7580_v44 = vadd.f32 1.0, %v10192_v46 }
0x2092   :  { %10197 = vrcp.f32 %v7580_v44 }
0x2093   :  { %v10194_v45 = vpop.eup %10193 }
0x2094   :  { %v7581_v48 = vadd.f32 1.0, %v10194_v45 }
0x2096   :  { %10199 = vrcp.f32 %v7581_v48 }
0x209b   :  { %v10196_v49 = vpop.eup %10195 }
0x209c   :  { %v7588_v63 = vmul.f32 %v10196_v49, %v7557_v41 }
0x209e   :  { %9941 = vmatmul.mubr.msk.f32.vlgmr.msra.gmra.mxu1 %vm418_vm5, %v7588_v63 }
0x209f   :  { %v10198_v55 = vpop.eup %10197  ;;  %9943 = vmatprep.mubr.msk.f32.mxu1 %vm10239_vm0, %v10238_v2  ;;  %9959 = vmatpush3.msra.mxu1 %v7844_v10 }
0x20a0   :  { %v7589_v9 = vmul.f32 %v10198_v55, %v7562_v20  ;;  %9960 = vmatprep.subr.mxu1 %v10238_v2 }
0x20a1   :  { %9961 = vmatpush3.msra.mxu1 %v7843_v54 }
0x20a2   :  { %9944 = vmatmul.mubr.msk.f32.gmra.mxu1 %vm418_vm5, %v7589_v9  ;;  %9962 = vmatprep.subr.mxu1 %v10238_v2 }
0x20a3   :  { %v10200_v60 = vpop.eup %10199  ;;  %9946 = vmatprep.mubr.msk.f32.mxu1 %vm10239_vm0, %v10238_v2  ;;  %9963 = vmatpush3.msra.mxu1 %v7842_v52 }
0x20a4   :  { %v7590_v19 = vmul.f32 %v10200_v60, %v7567_v14  ;;  %9964 = vmatprep.subr.mxu1 %v10238_v2 }
0x20a5   :  { %9965 = vmatpush3.msra.mxu1 %v7841_v22  ;;  %v8168_v22 = vld [vmem:[#allocation4] sm:$0xff] }
0x20a6   :  { %9947 = vmatmul.mubr.msk.f32.gmra.mxu1 %vm418_vm5, %v7590_v19  ;;  %9979 = vmatprep.subr.mxu1 %v10238_v2 }
0x20a7   :  { %9966 = vmatprep.mubr.msk.f32.mxu1 %vm10239_vm0, %v10238_v2 }
0x20aa   :  { %9967 = vmatmul.mubr.msk.f32.vlgmr.msra.gmra.mxu1 %vm418_vm5, %v11829_v61 }
0x20ab   :  { %9981 = vmatprep.mubr.msk.f32.mxu1 %vm10239_vm0, %v10238_v2 }
0x215e   :  { %v7666_v16 = vpop.f32.mrf.mxu1 }
0x2160   :  { %v9942_v58 = vpop.f32.mrf.mxu1 }
0x2162   :  { %v7671_v12 = vpop.f32.mrf.mxu1 }
0x2163   :  { %10201 = vtanh.f32 %v7671_v12 }
0x2164   :  { %v9945_v56 = vpop.f32.mrf.mxu1 }
0x2166   :  { %v7676_v11 = vpop.f32.mrf.mxu1 }
0x2167   :  { %10203 = vtanh.f32 %v7676_v11 }
0x2168   :  { %v9948_v53 = vpop.f32.mrf.mxu1  ;;  %10205 = vtanh.f32 %v7666_v16 }
0x2169   :  { %10207 = vrcp.f32 %v7718_v57 }
0x216a   :  { %v12020_v15 = vpop.f32.mrf.mxu1  ;;  %10209 = vrcp.f32 %v7723_v1 }
0x216b   :  { %10211 = vrcp.f32 %v7713_v3 }
0x216c   :  { %v9968_v8 = vpop.f32.mrf.mxu1 }
0x2170   :  { %v10202_v51 = vpop.eup %10201 }
0x2171   :  { %7738 = vperm.xlu0 %9999, %v10202_v51  }
0x2174   :  { %v10204_v50 = vpop.eup %10203 }
0x2175   :  { %7743 = vperm.xlu1 %10000, %v10204_v50   ;;  %v10206_v61 = vpop.eup %10205 }
0x2176   :  { %v10208_v29 = vpop.eup %10207 }
0x2177   :  { %v10210_v59 = vpop.eup %10209  ;;  %v7728_v24 = vmul.f32 %v10208_v29, %v11889_v33 }
0x2178   :  { %v7730_v47 = vmul.f32 %v10210_v59, %v11901_v34  ;;  %v10212_v0 = vpop.eup %10211 }
0x2179   :  { %7733 = vperm.xlu1 %10000, %v10206_v61   ;;  %v7726_v36 = vmul.f32 %v10212_v0, %v11883_v31  ;;  %v7760_v31 = vld [vmem:[#allocation6] sm:$0xff] }
0x217d   :  { %7928 = vperm.xlu1 %10000, %v7926_v62  }
0x21ec   :  { %v7739_v7 = vpop.permute.xlu0 %7738 }
0x21ed   :  { %v7747_v30 = vmul.f32 %v7739_v7, %v7728_v24 }
0x21ef   :  { %v7750_v38 = vmul.f32 15.0, %v7747_v30 }
0x21f0   :  { %v7744_v28 = vpop.permute.xlu1 %7743 }
0x21f1   :  { %v7748_v39 = vmul.f32 %v7744_v28, %v7730_v47 }
0x21f3   :  { %v7751_v35 = vmul.f32 15.0, %v7748_v39 }
0x21f4   :  { %v7734_v37 = vpop.permute.xlu1 %7733 }
0x21f5   :  { %v7746_v40 = vmul.f32 %v7734_v37, %v7726_v36  ;;  %9950 = vmatpush3.msra.mxu0 %v7751_v35 }
0x21f6   :  { %9951 = vmatprep.subr.mxu0 %v10238_v2 }
0x21f7   :  { %v7749_v41 = vmul.f32 15.0, %v7746_v40  ;;  %9952 = vmatpush3.msra.mxu0 %v7750_v38 }
0x21f8   :  { %9953 = vmatprep.subr.mxu0 %v10238_v2  ;;  %v7929_v49 = vpop.permute.xlu1 %7928 }
0x21f9   :  { %9954 = vmatpush3.msra.mxu0 %v7749_v41 }
0x21fa   :  { %9956 = vmatmul.mubr.msk.f32.vlgmr.msra.gmra.mxu0 %vm1367_vm10, %v11736_v32  ;;  %9969 = vmatprep.subr.mxu0 %v10238_v2  ;;  %v8733_v32 = vld [vmem:[%s12115_s2] ss:$0 sm:$0xff]  ;;  %vm8174_vm10 = vcmp.eq.s32.totalorder %v10452_v23, %v8173_v27 }
0x21fb   :  { %9971 = vmatprep.mubr.msk.f32.mxu0 %vm10239_vm0, %v10238_v2  ;;  %vm7938_vm5 = vcmp.eq.s32.totalorder %v8733_v32, %v10380_v5  ;;  %v8740_v14 = vsel %vm8174_vm10, 1.0, %v10238_v2 }
0x21fc   :  { %v8734_v13 = vsel %vm7938_vm5, 1.0, %v10238_v2 }
0x22ba   :  { %v7830_v33 = vpop.f32.mrf.mxu0 }
0x22bb   :  { %v7834_v34 = vadd.f32 %v7830_v33, %v7760_v31 }
0x22bc   :  { %v9957_v18 = vpop.f32.mrf.mxu0 }
0x22bd   :  { %7835 = vst.msk [vmem:[#allocation6] sm:$0xff] %vm328_vm9, %v7834_v34 }
0x22c4   :  { %v7837_v43 = vld [vmem:[#allocation6] sm:$0xff] }
0x22c5   :  { %v7838_v20 = vadd.f32 %v7837_v43, %v7836_v42 }
0x22c7   :  { %7839 = vst.msk [vmem:[#allocation3] sm:$0xff] %vm328_vm9, %v7838_v20 }
0x22ce   :  { %v7925_v25 = vld [vmem:[#allocation3] sm:$0xff] }
0x22cf   :  { %9970 = vmatpush3.msra.mxu0 %v7925_v25 }
0x22d0   :  { %9972 = vmatmul.mubr.msk.f32.vlgmr.msra.gmra.mxu0 %vm98_vm1, %v8734_v13  ;;  %9974 = vmatprep.subr.mxu0 %v10238_v2 }
0x22d1   :  { %9975 = vmatpush3.msra.mxu0 %v10240_v4  ;;  %9976 = vmatprep.mubr.msk.f32.mxu0 %vm10239_vm0, %v10238_v2  ;;  %v7922_v4 = vadd.f32 %v8730_v6, %v12020_v15 }
0x22d2   :  { %9984 = vmatprep.subr.mxu0 %v10238_v2 }
0x22d4   :  { %9977 = vmatmul.mubr.msk.f32.vlgmr.msra.gmra.mxu0 %vm98_vm1, %v8734_v13  ;;  %vm7930_vm1 = vcmp.eq.s32.totalorder %v7929_v49, %v10452_v23 }
0x22d5   :  { %9985 = vmatpush3.msk.msra.mxu0 %vm344_vm3, %v8740_v14  ;;  %9986 = vmatprep.mubr.msk.f32.mxu0 %vm10239_vm0, %v10238_v2  ;;  %v8732_v54 = vsel %vm7930_vm1, 1.0, %v10238_v2  ;;  %vm8170_vm3 = vcmp.eq.s32.totalorder %v10452_v23, %v10380_v5 }
0x22d6   :  { %v8739_v55 = vsel %vm8170_vm3, 1.0, %v10238_v2 }
0x22d8   :  { %9987 = vmatmul.mubr.msk.f32.vlgmr.msra.gmra.mxu0 %vm340_vm4, %v7922_v4  ;;  %vm8329_vm4 = vcmask 72704  }
0x2390   :  { %v8010_v17 = vpop.f32.mrf.mxu0 }
0x2392   :  { %v9973_v26 = vpop.f32.mrf.mxu0 }
0x2394   :  { %v8080_v21 = vpop.f32.mrf.mxu0 }
0x2395   :  { %8086 = vperm.xlu0 %9999, %v8080_v21  }
0x2396   :  { %v9978_v46 = vpop.f32.mrf.mxu0 }
0x2398   :  { %v8249_v44 = vpop.f32.mrf.mxu0 }
0x239a   :  { %v9988_v45 = vpop.f32.mrf.mxu0 }
0x2410   :  { %v8087_v48 = vpop.permute.xlu0 %8086 }
0x2411   :  { %10213 = vrcp.f32 %v8087_v48 }
0x241e   :  { %v10214_v63 = vpop.eup %10213 }
0x241f   :  { %v8090_v10 = vmul.f32 %v10214_v63, %v8010_v17 }
0x2421   :  { %9980 = vmatpush3.msk.msra.mxu1 %vm253_vm7, %v8090_v10 }
0x2422   :  { %9982 = vmatmul.mubr.msk.f32.vlgmr.msra.gmra.mxu1 %vm249_vm8, %v8732_v54  ;;  %9989 = vmatprep.subr.mxu1 %v10238_v2 }
0x2423   :  { %9991 = vmatprep.mubr.msk.f32.mxu1 %vm10239_vm0, %v10238_v2  ;;  %9990 = vmatpush3.msk.msra.mxu1 %vm808_vm2, %v8739_v55 }
0x24e2   :  { %v8163_v9 = vpop.f32.mrf.mxu1 }
0x24e3   :  { %v8167_v52 = vsub.f32 %v7925_v25, %v8163_v9 }
0x24e4   :  { %v9983_v60 = vpop.f32.mrf.mxu1 }
0x24e5   :  { %v8169_v19 = vsub.f32 %v8167_v52, %v8168_v22 }
0x24e7   :  { %9992 = vmatmul.mubr.msk.f32.vlgmr.msra.gmra.mxu1 %vm328_vm9, %v8169_v19 }
0x25a7   :  { %v8325_v16 = vpop.f32.mrf.mxu1 }
0x25a8   :  { %v8326_v58 = vadd.f32 %v8325_v16, %v8249_v44 }
0x25a9   :  { %v9993_v12 = vpop.f32.mrf.mxu1 }
0x25aa   :  { %8330 = vst.msk [vmem:[#allocation7] sm:$0xff] %vm8329_vm4, %v8326_v58 }
0x25ab   :  { %10227 = shalt.err (!%p10224_p4)
}
0x25ac   :  { %8340 = dma.vmem_to_hbm [thread:$0]  %s8338_s6, 128, %s12099_s24, [#allocation8]  }
0x25ad   :  { %10236 = dma.done.wait [#allocation8], 128  }
0x25ae   :  { %10237 = vsyncadd [#allocation8], 4294967168 }
0x25af   :  { %8344 = vsyncpa [#allocation8], 1 }

</bundles_post_ra>
